<compile_context>
chip_gen: v6e
topology: v6e:2x2x1
jax: 0.10.0
libtpu: 0.0.40
codegen_flags: <defaults>
</compile_context>

<pallas_src>
import numpy as np
import jax
import jax.numpy as jnp
from jax.experimental import pallas as pl
from jax.experimental.pallas import tpu as pltpu


# ----------------------------------------------------------------------------
# Fused decoder kernel: L-layer LSTM wavefront over T steps + packed projection
# ----------------------------------------------------------------------------
def make_decoder_forward(T, B, E, H, V, L, lens):
    """Returns (callable, n_packed) running the whole decoder in one pallas_call.

    Kernel inputs (all full-array VMEM blocks, gridless single invocation):
      x        : (T*B, E)  bf16  time-major flattened sequence (row = t*B + b)
      per layer: w_ih (in_dim, 4H) bf16, w_hh (H, 4H) bf16, bias (1, 4H) f32
      lin_w    : (H, V) bf16, lin_b: (1, V) f32
    Output: packed logits (n_pad, V) f32; rows [0, n_packed) follow
    pack_padded_sequence ordering (timestep-major, batch-prefix order).
    """
    G = 4 * H
    N = T * B

    # pack_padded_sequence bookkeeping (static; lens sorted descending).
    n_valid = [sum(1 for ln in lens if ln > t) for t in range(T)]
    offsets, acc = [], 0
    for t in range(T):
        offsets.append(acc)
        acc += n_valid[t]
    n_packed = acc
    n_pad = ((n_packed + 7) // 8) * 8     # sublane-aligned packed row count

    def kernel(*refs):
        x_ref = refs[0]                       # (N, E) bf16
        w_refs = refs[1:1 + 3 * L]            # per layer: w_ih, w_hh, bias
        lin_w_ref = refs[1 + 3 * L]           # (H, V) bf16
        lin_b_ref = refs[2 + 3 * L]           # (1, V) f32
        out_ref = refs[3 + 3 * L]             # (n_pad, V) f32
        xbuf, pbuf = refs[4 + 3 * L:]         # VMEM scratch

        # ---- Stage 1: layer-0 input projection, batched over ALL timesteps
        # (one big (N,E)x(E,4H) MXU matmul, bias folded in once).
        xbuf[...] = (jnp.dot(x_ref[...], w_refs[0][...],
                             preferred_element_type=jnp.float32)
                     + w_refs[2][...])

        # One aligned full store so the padded tail rows (>= n_packed) of the
        # packed hidden buffer are well defined.
        pbuf[...] = jnp.zeros_like(pbuf)

        # ---- Stage 2: layer wavefront over the recurrence.
        # h: bf16 register values (MXU-operand shadow); c: f32 register
        # values.  No per-step VMEM state traffic.
        h = [jnp.zeros((B, H), jnp.bfloat16) for _ in range(L)]
        c = [jnp.zeros((B, H), jnp.float32) for _ in range(L)]

        # TODO(synk): for caption-length T (>~16) replace this static unroll
        # with lax.fori_loop(..., unroll=2-4) to bound vreg live ranges.
        for k in range(T + L - 1):
            # Descending layer order: when layer l runs, h[l-1] still holds
            # its step-(k-1) value == layer (l-1)'s output at time t = k - l,
            # which is exactly layer l's input.
            for l in range(L - 1, -1, -1):
                t = k - l
                if not (0 <= t < T):
                    continue

                if l == 0:
                    x_proj = xbuf[t * B:(t + 1) * B, :]          # aligned read
                else:
                    # Upper-layer input projection on the fly (small matmul,
                    # overlaps with the other layers' work this step).
                    x_proj = (jnp.dot(h[l - 1], w_refs[3 * l][...],
                                      preferred_element_type=jnp.float32)
                              + w_refs[3 * l + 2][...])

                # W_hh indexed INSIDE the dot -> streamed from VMEM each step
                # instead of pinning 32 vregs across the unrolled loop.
                gates = x_proj + jnp.dot(h[l], w_refs[3 * l + 1][...],
                                         preferred_element_type=jnp.float32)

                # Gate layout is [i | f | o | g] (reordered offline): one wide
                # sigmoid + one tanh per step instead of four EUP pushes.
                sig = jax.nn.sigmoid(gates[:, :3 * H])
                g_g = jnp.tanh(gates[:, 3 * H:])
                i_g = sig[:, 0 * H:1 * H]
                f_g = sig[:, 1 * H:2 * H]
                o_g = sig[:, 2 * H:3 * H]

                c_new = f_g * c[l] + i_g * g_g
                h_f32 = o_g * jnp.tanh(c_new)
                c[l] = c_new
                h[l] = h_f32.astype(jnp.bfloat16)    # MXU-operand shadow

                if l == L - 1 and n_valid[t] > 0:
                    # Valid rows at time t are a contiguous batch prefix
                    # (lens sorted desc): write them straight at the packed
                    # offset -> kernel emits pack_padded_sequence ordering.
                    pbuf[offsets[t]:offsets[t] + n_valid[t], :] = \
                        h_f32[:n_valid[t], :]

        # ---- Stage 3: packed output projection.  One batched MXU matmul over
        # only the valid rows; (n_pad, V) lane-dense unmasked store.
        logits = (jnp.dot(pbuf[...].astype(jnp.bfloat16), lin_w_ref[...],
                          preferred_element_type=jnp.float32)
                  + lin_b_ref[...])
        out_ref[...] = logits

    def call(x_flat, lstm_params, lin_w, lin_b):
        flat_inputs = [x_flat]
        in_specs = [pl.BlockSpec((N, E), lambda: (0, 0))]
        bytes_acc = x_flat.size * x_flat.dtype.itemsize
        for (w_ih, w_hh, bias) in lstm_params:
            for arr in (w_ih, w_hh, bias):
                flat_inputs.append(arr)
                in_specs.append(pl.BlockSpec(arr.shape, lambda: (0, 0)))
                bytes_acc += arr.size * arr.dtype.itemsize
        flat_inputs += [lin_w, lin_b]
        in_specs += [pl.BlockSpec(lin_w.shape, lambda: (0, 0)),
                     pl.BlockSpec(lin_b.shape, lambda: (0, 0))]
        bytes_acc += lin_w.size * lin_w.dtype.itemsize
        bytes_acc += lin_b.size * lin_b.dtype.itemsize
        bytes_acc += n_pad * V * 4                     # output writeback

        flops = (2 * N * E * G                         # layer-0 input proj
                 + 2 * N * H * G * max(L - 1, 0)       # upper-layer input proj
                 + 2 * L * T * B * H * G               # recurrent h @ W_hh
                 + 2 * n_pad * H * V)                  # output projection
        transcendentals = L * T * B * 5 * H            # 3 sigmoid + 2 tanh / H

        return pl.pallas_call(
            kernel,
            out_shape=jax.ShapeDtypeStruct((n_pad, V), jnp.float32),
            in_specs=in_specs,
            out_specs=pl.BlockSpec((n_pad, V), lambda: (0, 0)),
            scratch_shapes=[
                pltpu.VMEM((N, G), jnp.float32),       # layer-0 projected inputs
                pltpu.VMEM((n_pad, H), jnp.float32),   # packed top-layer hiddens
            ],
            compiler_params=pltpu.CompilerParams(
                vmem_limit_bytes=32 * 1024 * 1024),    # explicit; v5e default is 16 MiB
            cost_estimate=pl.CostEstimate(
                flops=flops, transcendentals=transcendentals,
                bytes_accessed=bytes_acc),
        )(*flat_inputs)

    return call, n_packed


# ----------------------------------------------------------------------------
# Model wrapper (glue in plain JAX)
# ----------------------------------------------------------------------------
class LSTMModelPallas:
    def __init__(self, embedding_size, hidden_layer_size, vocabulary_size,
                 num_layers, key):
        self.E = embedding_size
        self.H = hidden_layer_size
        self.V = vocabulary_size
        self.L = num_layers
        # NOTE: for best layout, E / H / V should be multiples of 128 (lane
        # dim); the kernel is still correct otherwise, just slower.

        keys = jax.random.split(key, 3 + 4 * num_layers)
        k = iter(keys)
        s = 1.0 / np.sqrt(hidden_layer_size)

        # Embedding table (vocab, E), ~N(0,1) like nn.Embedding default.
        self.emb = jax.random.normal(next(k), (self.V, self.E), jnp.float32)

        # LSTM weights stored transposed ((in_dim, 4H) / (H, 4H)) in bf16.
        # Gate COLUMN ORDER is [i | f | o | g] (PyTorch stores [i | f | g | o]):
        # the offline reorder lets the kernel do one wide sigmoid + one tanh.
        # bias_ih + bias_hh folded into one f32 (1, 4H) per layer.
        self.lstm_params = []
        for layer in range(num_layers):
            in_dim = self.E if layer == 0 else self.H
            w_ih = jax.random.uniform(next(k), (in_dim, 4 * self.H),
                                      jnp.float32, -s, s).astype(jnp.bfloat16)
            w_hh = jax.random.uniform(next(k), (self.H, 4 * self.H),
                                      jnp.float32, -s, s).astype(jnp.bfloat16)
            b_ih = jax.random.uniform(next(k), (1, 4 * self.H),
                                      jnp.float32, -s, s)
            b_hh = jax.random.uniform(next(k), (1, 4 * self.H),
                                      jnp.float32, -s, s)
            self.lstm_params.append((w_ih, w_hh, b_ih + b_hh))

        # Linear layer (H -> V), stored transposed; weight bf16, bias f32.
        self.lin_w = jax.random.uniform(next(k), (self.H, self.V),
                                        jnp.float32, -s, s).astype(jnp.bfloat16)
        self.lin_b = jax.random.uniform(next(k), (1, self.V),
                                        jnp.float32, -s, s)

    def forward(self, input_features, capts, lens):
        """input_features: (B, E) f32, capts: (B, Tcap) int32,
        lens: python list of ints, sorted descending, lens[b] <= Tcap+1."""
        B, Tcap = capts.shape
        T = Tcap + 1

        # Embedding lookup + concat image feature as timestep 0 (glue).
        emb = jnp.take(self.emb, capts, axis=0)                      # (B, Tcap, E)
        seq = jnp.concatenate([input_features[:, None, :], emb], 1)  # (B, T, E)

        # Time-major flatten (row index t*B + b), fed to the kernel in bf16
        # (halves input DMA; matmuls are bf16-operand / f32-accumulate anyway).
        x_flat = (jnp.transpose(seq, (1, 0, 2))
                  .reshape(T * B, self.E).astype(jnp.bfloat16))

        decoder, n_packed = make_decoder_forward(
            T, B, self.E, self.H, self.V, self.L, lens)
        out = decoder(x_flat, self.lstm_params, self.lin_w, self.lin_b)

        # Kernel already emits pack_padded_sequence row ordering; just drop
        # the sublane-alignment padding (no HBM gather pass).
        return out[:n_packed]                                        # (sum(lens), V)

    # Pure-JAX reference for validation (f32, HIGHEST precision).
    def forward_ref(self, input_features, capts, lens):
        B, Tcap = capts.shape
        T = Tcap + 1
        H = self.H
        hp = jax.lax.Precision.HIGHEST
        emb = jnp.take(self.emb, capts, axis=0)
        seq = jnp.concatenate([input_features[:, None, :], emb], 1)  # (B, T, E)

        h = [jnp.zeros((B, H), jnp.float32) for _ in range(self.L)]
        c = [jnp.zeros((B, H), jnp.float32) for _ in range(self.L)]
        outs = []
        for t in range(T):
            x = seq[:, t, :]
            for l in range(self.L):
                w_ih, w_hh, bias = self.lstm_params[l]
                g = (jnp.dot(x, w_ih.astype(jnp.float32), precision=hp)
                     + jnp.dot(h[l], w_hh.astype(jnp.float32), precision=hp)
                     + bias)
                # Gate column layout [i | f | o | g] (matches kernel weights).
                i_g = jax.nn.sigmoid(g[:, 0:H])
                f_g = jax.nn.sigmoid(g[:, H:2 * H])
                o_g = jax.nn.sigmoid(g[:, 2 * H:3 * H])
                g_g = jnp.tanh(g[:, 3 * H:4 * H])
                c[l] = f_g * c[l] + i_g * g_g
                h[l] = o_g * jnp.tanh(c[l])
                x = h[l]
            outs.append(x)
        out_bth = jnp.stack(outs, axis=1)                            # (B, T, H)

        b_idx, t_idx = [], []
        for t in range(T):
            for b in range(B):
                if lens[b] > t:
                    b_idx.append(b)
                    t_idx.append(t)
        packed = out_bth[jnp.array(b_idx), jnp.array(t_idx)]
        return (jnp.dot(packed, self.lin_w.astype(jnp.float32), precision=hp)
                + self.lin_b)


# ----------------------------------------------------------------------------
if __name__ == "__main__":
    key = jax.random.PRNGKey(0)
    k_model, k_feat, k_capt = jax.random.split(key, 3)

    # Small but layout-friendly shapes: B fills the 8-sublane dim, E/H/V are
    # multiples of 128 so gate slices and output stores are lane-aligned.
    B = 8              # batch
    E = 128            # embedding_size
    H = 128            # hidden_layer_size
    V = 256            # vocabulary_size
    L = 2              # num_layers
    Tcap = 7           # caption length (total seq length T = 8)
    lens = [8, 8, 7, 6, 5, 4, 3, 2]   # sorted descending, per pack_padded_sequence

    model = LSTMModelPallas(E, H, V, L, k_model)

    input_features = jax.random.normal(k_feat, (B, E), jnp.float32)
    capts = jax.random.randint(k_capt, (B, Tcap), 0, V, jnp.int32)

    out = jax.block_until_ready(model.forward(input_features, capts, lens))
    ref = jax.block_until_ready(model.forward_ref(input_features, capts, lens))

    assert out.shape == (sum(lens), V), out.shape
    # Tolerance covers the deliberate bf16 matmul-operand casts in the kernel
    # (f32 accumulation + f32 gate math); reference is pure f32 HIGHEST.
    np.testing.assert_allclose(np.asarray(out), np.asarray(ref),
                               rtol=2e-2, atol=2e-2)

    # TODO(synk): greedy `sample()` decode loop not implemented (forward only).
    print("KERNEL_OK")
</pallas_src>

<mosaic_0001>
module attributes {stable_mosaic.version = 11 : i64} {
  func.func @kernel(%arg0: memref<64x128xbf16, #tpu.memory_space<vmem>>, %arg1: memref<128x512xbf16, #tpu.memory_space<vmem>>, %arg2: memref<128x512xbf16, #tpu.memory_space<vmem>>, %arg3: memref<1x512xf32, #tpu.memory_space<vmem>>, %arg4: memref<128x512xbf16, #tpu.memory_space<vmem>>, %arg5: memref<128x512xbf16, #tpu.memory_space<vmem>>, %arg6: memref<1x512xf32, #tpu.memory_space<vmem>>, %arg7: memref<128x256xbf16, #tpu.memory_space<vmem>>, %arg8: memref<1x256xf32, #tpu.memory_space<vmem>>, %arg9: memref<48x256xf32, #tpu.memory_space<vmem>>, %arg10: memref<64x512xf32, #tpu.memory_space<vmem>>, %arg11: memref<48x128xf32, #tpu.memory_space<vmem>>) attributes {dimension_semantics = [], scalar_prefetch = 0 : i64, scratch_operands = 2 : i64, tpu.core_type = #tpu.core_type<tc>} {
    %c0 = arith.constant 0 : index
    %c0_0 = arith.constant 0 : index
    %0 = vector.load %arg0[%c0, %c0_0] : memref<64x128xbf16, #tpu.memory_space<vmem>>, vector<64x128xbf16>
    %c0_1 = arith.constant 0 : index
    %c0_2 = arith.constant 0 : index
    %1 = vector.load %arg1[%c0_1, %c0_2] : memref<128x512xbf16, #tpu.memory_space<vmem>>, vector<128x512xbf16>
    %cst = arith.constant dense<0.000000e+00> : vector<64x512xf32>
    %2 = tpu.matmul %0, %1, %cst {dimension_numbers = #tpu.dot_dimension_numbers<[1], [0], [0], [1], [0, 0, 1, 1], [], []>} : vector<64x128xbf16>, vector<128x512xbf16>, vector<64x512xf32> -> vector<64x512xf32>
    %c0_3 = arith.constant 0 : index
    %c0_4 = arith.constant 0 : index
    %3 = vector.load %arg3[%c0_3, %c0_4] : memref<1x512xf32, #tpu.memory_space<vmem>>, vector<1x512xf32>
    %4 = vector.broadcast %3 : vector<1x512xf32> to vector<64x512xf32>
    %5 = arith.addf %2, %4 : vector<64x512xf32>
    %c0_5 = arith.constant 0 : index
    %c0_6 = arith.constant 0 : index
    %6 = vector.load %arg10[%c0_5, %c0_6] : memref<64x512xf32, #tpu.memory_space<vmem>>, vector<64x512xf32>
    tpu.vector_store %arg10[%c0_5, %c0_6], %5 {strides = array<i32>} : memref<64x512xf32, #tpu.memory_space<vmem>>, vector<64x512xf32>,
    %cst_7 = arith.constant 0.000000e+00 : f32
    %7 = vector.broadcast %cst_7 : f32 to vector<48x128xf32>
    %c0_8 = arith.constant 0 : index
    %c0_9 = arith.constant 0 : index
    %8 = vector.load %arg11[%c0_8, %c0_9] : memref<48x128xf32, #tpu.memory_space<vmem>>, vector<48x128xf32>
    tpu.vector_store %arg11[%c0_8, %c0_9], %7 {strides = array<i32>} : memref<48x128xf32, #tpu.memory_space<vmem>>, vector<48x128xf32>,
    %cst_10 = arith.constant 0.000000e+00 : bf16
    %9 = vector.broadcast %cst_10 : bf16 to vector<8x128xbf16>
    %cst_11 = arith.constant 0.000000e+00 : bf16
    %10 = vector.broadcast %cst_11 : bf16 to vector<8x128xbf16>
    %cst_12 = arith.constant 0.000000e+00 : f32
    %11 = vector.broadcast %cst_12 : f32 to vector<8x128xf32>
    %cst_13 = arith.constant 0.000000e+00 : f32
    %12 = vector.broadcast %cst_13 : f32 to vector<8x128xf32>
    %c0_14 = arith.constant 0 : index
    %c0_15 = arith.constant 0 : index
    %13 = vector.load %arg10[%c0_14, %c0_15] : memref<64x512xf32, #tpu.memory_space<vmem>>, vector<8x512xf32>
    %c0_16 = arith.constant 0 : index
    %c0_17 = arith.constant 0 : index
    %14 = vector.load %arg2[%c0_16, %c0_17] : memref<128x512xbf16, #tpu.memory_space<vmem>>, vector<128x512xbf16>
    %cst_18 = arith.constant dense<0.000000e+00> : vector<8x512xf32>
    %15 = tpu.matmul %9, %14, %cst_18 {dimension_numbers = #tpu.dot_dimension_numbers<[1], [0], [0], [1], [0, 0, 1, 1], [], []>} : vector<8x128xbf16>, vector<128x512xbf16>, vector<8x512xf32> -> vector<8x512xf32>
    %16 = arith.addf %13, %15 : vector<8x512xf32>
    %17 = vector.extract_strided_slice %16 {offsets = [0, 0], sizes = [8, 384], strides = [1, 1]} : vector<8x512xf32> to vector<8x384xf32>
    %18 = arith.negf %17 : vector<8x384xf32>
    %19 = math.exp %18 : vector<8x384xf32>
    %cst_19 = arith.constant 1.000000e+00 : f32
    %20 = vector.broadcast %cst_19 : f32 to vector<8x384xf32>
    %21 = arith.addf %20, %19 : vector<8x384xf32>
    %22 = arith.divf %20, %21 : vector<8x384xf32>
    %23 = vector.extract_strided_slice %16 {offsets = [0, 384], sizes = [8, 128], strides = [1, 1]} : vector<8x512xf32> to vector<8x128xf32>
    %24 = math.tanh %23 : vector<8x128xf32>
    %25 = vector.extract_strided_slice %22 {offsets = [0, 0], sizes = [8, 128], strides = [1, 1]} : vector<8x384xf32> to vector<8x128xf32>
    %26 = vector.extract_strided_slice %22 {offsets = [0, 128], sizes = [8, 128], strides = [1, 1]} : vector<8x384xf32> to vector<8x128xf32>
    %27 = vector.extract_strided_slice %22 {offsets = [0, 256], sizes = [8, 128], strides = [1, 1]} : vector<8x384xf32> to vector<8x128xf32>
    %28 = arith.mulf %26, %11 : vector<8x128xf32>
    %29 = arith.mulf %25, %24 : vector<8x128xf32>
    %30 = arith.addf %28, %29 : vector<8x128xf32>
    %31 = math.tanh %30 : vector<8x128xf32>
    %32 = arith.mulf %27, %31 : vector<8x128xf32>
    %33 = arith.truncf %32 : vector<8x128xf32> to vector<8x128xbf16>
    %c0_20 = arith.constant 0 : index
    %c0_21 = arith.constant 0 : index
    %34 = vector.load %arg4[%c0_20, %c0_21] : memref<128x512xbf16, #tpu.memory_space<vmem>>, vector<128x512xbf16>
    %cst_22 = arith.constant dense<0.000000e+00> : vector<8x512xf32>
    %35 = tpu.matmul %33, %34, %cst_22 {dimension_numbers = #tpu.dot_dimension_numbers<[1], [0], [0], [1], [0, 0, 1, 1], [], []>} : vector<8x128xbf16>, vector<128x512xbf16>, vector<8x512xf32> -> vector<8x512xf32>
    %c0_23 = arith.constant 0 : index
    %c0_24 = arith.constant 0 : index
    %36 = vector.load %arg6[%c0_23, %c0_24] : memref<1x512xf32, #tpu.memory_space<vmem>>, vector<1x512xf32>
    %37 = vector.broadcast %36 : vector<1x512xf32> to vector<8x512xf32>
    %38 = arith.addf %35, %37 : vector<8x512xf32>
    %c0_25 = arith.constant 0 : index
    %c0_26 = arith.constant 0 : index
    %39 = vector.load %arg5[%c0_25, %c0_26] : memref<128x512xbf16, #tpu.memory_space<vmem>>, vector<128x512xbf16>
    %cst_27 = arith.constant dense<0.000000e+00> : vector<8x512xf32>
    %40 = tpu.matmul %10, %39, %cst_27 {dimension_numbers = #tpu.dot_dimension_numbers<[1], [0], [0], [1], [0, 0, 1, 1], [], []>} : vector<8x128xbf16>, vector<128x512xbf16>, vector<8x512xf32> -> vector<8x512xf32>
    %41 = arith.addf %38, %40 : vector<8x512xf32>
    %42 = vector.extract_strided_slice %41 {offsets = [0, 0], sizes = [8, 384], strides = [1, 1]} : vector<8x512xf32> to vector<8x384xf32>
    %43 = arith.negf %42 : vector<8x384xf32>
    %44 = math.exp %43 : vector<8x384xf32>
    %cst_28 = arith.constant 1.000000e+00 : f32
    %45 = vector.broadcast %cst_28 : f32 to vector<8x384xf32>
    %46 = arith.addf %45, %44 : vector<8x384xf32>
    %47 = arith.divf %45, %46 : vector<8x384xf32>
    %48 = vector.extract_strided_slice %41 {offsets = [0, 384], sizes = [8, 128], strides = [1, 1]} : vector<8x512xf32> to vector<8x128xf32>
    %49 = math.tanh %48 : vector<8x128xf32>
    %50 = vector.extract_strided_slice %47 {offsets = [0, 0], sizes = [8, 128], strides = [1, 1]} : vector<8x384xf32> to vector<8x128xf32>
    %51 = vector.extract_strided_slice %47 {offsets = [0, 128], sizes = [8, 128], strides = [1, 1]} : vector<8x384xf32> to vector<8x128xf32>
    %52 = vector.extract_strided_slice %47 {offsets = [0, 256], sizes = [8, 128], strides = [1, 1]} : vector<8x384xf32> to vector<8x128xf32>
    %53 = arith.mulf %51, %12 : vector<8x128xf32>
    %54 = arith.mulf %50, %49 : vector<8x128xf32>
    %55 = arith.addf %53, %54 : vector<8x128xf32>
    %56 = math.tanh %55 : vector<8x128xf32>
    %57 = arith.mulf %52, %56 : vector<8x128xf32>
    %58 = arith.truncf %57 : vector<8x128xf32> to vector<8x128xbf16>
    %c0_29 = arith.constant 0 : index
    %c0_30 = arith.constant 0 : index
    %59 = vector.load %arg11[%c0_29, %c0_30] : memref<48x128xf32, #tpu.memory_space<vmem>>, vector<8x128xf32>
    tpu.vector_store %arg11[%c0_29, %c0_30], %57 {strides = array<i32>} : memref<48x128xf32, #tpu.memory_space<vmem>>, vector<8x128xf32>,
    %c8 = arith.constant 8 : index
    %c0_31 = arith.constant 0 : index
    %60 = vector.load %arg10[%c8, %c0_31] : memref<64x512xf32, #tpu.memory_space<vmem>>, vector<8x512xf32>
    %c0_32 = arith.constant 0 : index
    %c0_33 = arith.constant 0 : index
    %61 = vector.load %arg2[%c0_32, %c0_33] : memref<128x512xbf16, #tpu.memory_space<vmem>>, vector<128x512xbf16>
    %cst_34 = arith.constant dense<0.000000e+00> : vector<8x512xf32>
    %62 = tpu.matmul %33, %61, %cst_34 {dimension_numbers = #tpu.dot_dimension_numbers<[1], [0], [0], [1], [0, 0, 1, 1], [], []>} : vector<8x128xbf16>, vector<128x512xbf16>, vector<8x512xf32> -> vector<8x512xf32>
    %63 = arith.addf %60, %62 : vector<8x512xf32>
    %64 = vector.extract_strided_slice %63 {offsets = [0, 0], sizes = [8, 384], strides = [1, 1]} : vector<8x512xf32> to vector<8x384xf32>
    %65 = arith.negf %64 : vector<8x384xf32>
    %66 = math.exp %65 : vector<8x384xf32>
    %cst_35 = arith.constant 1.000000e+00 : f32
    %67 = vector.broadcast %cst_35 : f32 to vector<8x384xf32>
    %68 = arith.addf %67, %66 : vector<8x384xf32>
    %69 = arith.divf %67, %68 : vector<8x384xf32>
    %70 = vector.extract_strided_slice %63 {offsets = [0, 384], sizes = [8, 128], strides = [1, 1]} : vector<8x512xf32> to vector<8x128xf32>
    %71 = math.tanh %70 : vector<8x128xf32>
    %72 = vector.extract_strided_slice %69 {offsets = [0, 0], sizes = [8, 128], strides = [1, 1]} : vector<8x384xf32> to vector<8x128xf32>
    %73 = vector.extract_strided_slice %69 {offsets = [0, 128], sizes = [8, 128], strides = [1, 1]} : vector<8x384xf32> to vector<8x128xf32>
    %74 = vector.extract_strided_slice %69 {offsets = [0, 256], sizes = [8, 128], strides = [1, 1]} : vector<8x384xf32> to vector<8x128xf32>
    %75 = arith.mulf %73, %30 : vector<8x128xf32>
    %76 = arith.mulf %72, %71 : vector<8x128xf32>
    %77 = arith.addf %75, %76 : vector<8x128xf32>
    %78 = math.tanh %77 : vector<8x128xf32>
    %79 = arith.mulf %74, %78 : vector<8x128xf32>
    %80 = arith.truncf %79 : vector<8x128xf32> to vector<8x128xbf16>
    %c0_36 = arith.constant 0 : index
    %c0_37 = arith.constant 0 : index
    %81 = vector.load %arg4[%c0_36, %c0_37] : memref<128x512xbf16, #tpu.memory_space<vmem>>, vector<128x512xbf16>
    %cst_38 = arith.constant dense<0.000000e+00> : vector<8x512xf32>
    %82 = tpu.matmul %80, %81, %cst_38 {dimension_numbers = #tpu.dot_dimension_numbers<[1], [0], [0], [1], [0, 0, 1, 1], [], []>} : vector<8x128xbf16>, vector<128x512xbf16>, vector<8x512xf32> -> vector<8x512xf32>
    %c0_39 = arith.constant 0 : index
    %c0_40 = arith.constant 0 : index
    %83 = vector.load %arg6[%c0_39, %c0_40] : memref<1x512xf32, #tpu.memory_space<vmem>>, vector<1x512xf32>
    %84 = vector.broadcast %83 : vector<1x512xf32> to vector<8x512xf32>
    %85 = arith.addf %82, %84 : vector<8x512xf32>
    %c0_41 = arith.constant 0 : index
    %c0_42 = arith.constant 0 : index
    %86 = vector.load %arg5[%c0_41, %c0_42] : memref<128x512xbf16, #tpu.memory_space<vmem>>, vector<128x512xbf16>
    %cst_43 = arith.constant dense<0.000000e+00> : vector<8x512xf32>
    %87 = tpu.matmul %58, %86, %cst_43 {dimension_numbers = #tpu.dot_dimension_numbers<[1], [0], [0], [1], [0, 0, 1, 1], [], []>} : vector<8x128xbf16>, vector<128x512xbf16>, vector<8x512xf32> -> vector<8x512xf32>
    %88 = arith.addf %85, %87 : vector<8x512xf32>
    %89 = vector.extract_strided_slice %88 {offsets = [0, 0], sizes = [8, 384], strides = [1, 1]} : vector<8x512xf32> to vector<8x384xf32>
    %90 = arith.negf %89 : vector<8x384xf32>
    %91 = math.exp %90 : vector<8x384xf32>
    %cst_44 = arith.constant 1.000000e+00 : f32
    %92 = vector.broadcast %cst_44 : f32 to vector<8x384xf32>
    %93 = arith.addf %92, %91 : vector<8x384xf32>
    %94 = arith.divf %92, %93 : vector<8x384xf32>
    %95 = vector.extract_strided_slice %88 {offsets = [0, 384], sizes = [8, 128], strides = [1, 1]} : vector<8x512xf32> to vector<8x128xf32>
    %96 = math.tanh %95 : vector<8x128xf32>
    %97 = vector.extract_strided_slice %94 {offsets = [0, 0], sizes = [8, 128], strides = [1, 1]} : vector<8x384xf32> to vector<8x128xf32>
    %98 = vector.extract_strided_slice %94 {offsets = [0, 128], sizes = [8, 128], strides = [1, 1]} : vector<8x384xf32> to vector<8x128xf32>
    %99 = vector.extract_strided_slice %94 {offsets = [0, 256], sizes = [8, 128], strides = [1, 1]} : vector<8x384xf32> to vector<8x128xf32>
    %100 = arith.mulf %98, %55 : vector<8x128xf32>
    %101 = arith.mulf %97, %96 : vector<8x128xf32>
    %102 = arith.addf %100, %101 : vector<8x128xf32>
    %103 = math.tanh %102 : vector<8x128xf32>
    %104 = arith.mulf %99, %103 : vector<8x128xf32>
    %105 = arith.truncf %104 : vector<8x128xf32> to vector<8x128xbf16>
    %c8_45 = arith.constant 8 : index
    %c0_46 = arith.constant 0 : index
    %106 = vector.load %arg11[%c8_45, %c0_46] : memref<48x128xf32, #tpu.memory_space<vmem>>, vector<8x128xf32>
    tpu.vector_store %arg11[%c8_45, %c0_46], %104 {strides = array<i32>} : memref<48x128xf32, #tpu.memory_space<vmem>>, vector<8x128xf32>,
    %c16 = arith.constant 16 : index
    %c0_47 = arith.constant 0 : index
    %107 = vector.load %arg10[%c16, %c0_47] : memref<64x512xf32, #tpu.memory_space<vmem>>, vector<8x512xf32>
    %c0_48 = arith.constant 0 : index
    %c0_49 = arith.constant 0 : index
    %108 = vector.load %arg2[%c0_48, %c0_49] : memref<128x512xbf16, #tpu.memory_space<vmem>>, vector<128x512xbf16>
    %cst_50 = arith.constant dense<0.000000e+00> : vector<8x512xf32>
    %109 = tpu.matmul %80, %108, %cst_50 {dimension_numbers = #tpu.dot_dimension_numbers<[1], [0], [0], [1], [0, 0, 1, 1], [], []>} : vector<8x128xbf16>, vector<128x512xbf16>, vector<8x512xf32> -> vector<8x512xf32>
    %110 = arith.addf %107, %109 : vector<8x512xf32>
    %111 = vector.extract_strided_slice %110 {offsets = [0, 0], sizes = [8, 384], strides = [1, 1]} : vector<8x512xf32> to vector<8x384xf32>
    %112 = arith.negf %111 : vector<8x384xf32>
    %113 = math.exp %112 : vector<8x384xf32>
    %cst_51 = arith.constant 1.000000e+00 : f32
    %114 = vector.broadcast %cst_51 : f32 to vector<8x384xf32>
    %115 = arith.addf %114, %113 : vector<8x384xf32>
    %116 = arith.divf %114, %115 : vector<8x384xf32>
    %117 = vector.extract_strided_slice %110 {offsets = [0, 384], sizes = [8, 128], strides = [1, 1]} : vector<8x512xf32> to vector<8x128xf32>
    %118 = math.tanh %117 : vector<8x128xf32>
    %119 = vector.extract_strided_slice %116 {offsets = [0, 0], sizes = [8, 128], strides = [1, 1]} : vector<8x384xf32> to vector<8x128xf32>
    %120 = vector.extract_strided_slice %116 {offsets = [0, 128], sizes = [8, 128], strides = [1, 1]} : vector<8x384xf32> to vector<8x128xf32>
    %121 = vector.extract_strided_slice %116 {offsets = [0, 256], sizes = [8, 128], strides = [1, 1]} : vector<8x384xf32> to vector<8x128xf32>
    %122 = arith.mulf %120, %77 : vector<8x128xf32>
    %123 = arith.mulf %119, %118 : vector<8x128xf32>
    %124 = arith.addf %122, %123 : vector<8x128xf32>
    %125 = math.tanh %124 : vector<8x128xf32>
    %126 = arith.mulf %121, %125 : vector<8x128xf32>
    %127 = arith.truncf %126 : vector<8x128xf32> to vector<8x128xbf16>
    %c0_52 = arith.constant 0 : index
    %c0_53 = arith.constant 0 : index
    %128 = vector.load %arg4[%c0_52, %c0_53] : memref<128x512xbf16, #tpu.memory_space<vmem>>, vector<128x512xbf16>
    %cst_54 = arith.constant dense<0.000000e+00> : vector<8x512xf32>
    %129 = tpu.matmul %127, %128, %cst_54 {dimension_numbers = #tpu.dot_dimension_numbers<[1], [0], [0], [1], [0, 0, 1, 1], [], []>} : vector<8x128xbf16>, vector<128x512xbf16>, vector<8x512xf32> -> vector<8x512xf32>
    %c0_55 = arith.constant 0 : index
    %c0_56 = arith.constant 0 : index
    %130 = vector.load %arg6[%c0_55, %c0_56] : memref<1x512xf32, #tpu.memory_space<vmem>>, vector<1x512xf32>
    %131 = vector.broadcast %130 : vector<1x512xf32> to vector<8x512xf32>
    %132 = arith.addf %129, %131 : vector<8x512xf32>
    %c0_57 = arith.constant 0 : index
    %c0_58 = arith.constant 0 : index
    %133 = vector.load %arg5[%c0_57, %c0_58] : memref<128x512xbf16, #tpu.memory_space<vmem>>, vector<128x512xbf16>
    %cst_59 = arith.constant dense<0.000000e+00> : vector<8x512xf32>
    %134 = tpu.matmul %105, %133, %cst_59 {dimension_numbers = #tpu.dot_dimension_numbers<[1], [0], [0], [1], [0, 0, 1, 1], [], []>} : vector<8x128xbf16>, vector<128x512xbf16>, vector<8x512xf32> -> vector<8x512xf32>
    %135 = arith.addf %132, %134 : vector<8x512xf32>
    %136 = vector.extract_strided_slice %135 {offsets = [0, 0], sizes = [8, 384], strides = [1, 1]} : vector<8x512xf32> to vector<8x384xf32>
    %137 = arith.negf %136 : vector<8x384xf32>
    %138 = math.exp %137 : vector<8x384xf32>
    %cst_60 = arith.constant 1.000000e+00 : f32
    %139 = vector.broadcast %cst_60 : f32 to vector<8x384xf32>
    %140 = arith.addf %139, %138 : vector<8x384xf32>
    %141 = arith.divf %139, %140 : vector<8x384xf32>
    %142 = vector.extract_strided_slice %135 {offsets = [0, 384], sizes = [8, 128], strides = [1, 1]} : vector<8x512xf32> to vector<8x128xf32>
    %143 = math.tanh %142 : vector<8x128xf32>
    %144 = vector.extract_strided_slice %141 {offsets = [0, 0], sizes = [8, 128], strides = [1, 1]} : vector<8x384xf32> to vector<8x128xf32>
    %145 = vector.extract_strided_slice %141 {offsets = [0, 128], sizes = [8, 128], strides = [1, 1]} : vector<8x384xf32> to vector<8x128xf32>
    %146 = vector.extract_strided_slice %141 {offsets = [0, 256], sizes = [8, 128], strides = [1, 1]} : vector<8x384xf32> to vector<8x128xf32>
    %147 = arith.mulf %145, %102 : vector<8x128xf32>
    %148 = arith.mulf %144, %143 : vector<8x128xf32>
    %149 = arith.addf %147, %148 : vector<8x128xf32>
    %150 = math.tanh %149 : vector<8x128xf32>
    %151 = arith.mulf %146, %150 : vector<8x128xf32>
    %152 = arith.truncf %151 : vector<8x128xf32> to vector<8x128xbf16>
    %153 = vector.extract_strided_slice %151 {offsets = [0, 0], sizes = [7, 128], strides = [1, 1]} : vector<8x128xf32> to vector<7x128xf32>
    %c16_61 = arith.constant 16 : index
    %c0_62 = arith.constant 0 : index
    %154 = vector.load %arg11[%c16_61, %c0_62] : memref<48x128xf32, #tpu.memory_space<vmem>>, vector<7x128xf32>
    tpu.vector_store %arg11[%c16_61, %c0_62], %153 {strides = array<i32>} : memref<48x128xf32, #tpu.memory_space<vmem>>, vector<7x128xf32>,
    %c24 = arith.constant 24 : index
    %c0_63 = arith.constant 0 : index
    %155 = vector.load %arg10[%c24, %c0_63] : memref<64x512xf32, #tpu.memory_space<vmem>>, vector<8x512xf32>
    %c0_64 = arith.constant 0 : index
    %c0_65 = arith.constant 0 : index
    %156 = vector.load %arg2[%c0_64, %c0_65] : memref<128x512xbf16, #tpu.memory_space<vmem>>, vector<128x512xbf16>
    %cst_66 = arith.constant dense<0.000000e+00> : vector<8x512xf32>
    %157 = tpu.matmul %127, %156, %cst_66 {dimension_numbers = #tpu.dot_dimension_numbers<[1], [0], [0], [1], [0, 0, 1, 1], [], []>} : vector<8x128xbf16>, vector<128x512xbf16>, vector<8x512xf32> -> vector<8x512xf32>
    %158 = arith.addf %155, %157 : vector<8x512xf32>
    %159 = vector.extract_strided_slice %158 {offsets = [0, 0], sizes = [8, 384], strides = [1, 1]} : vector<8x512xf32> to vector<8x384xf32>
    %160 = arith.negf %159 : vector<8x384xf32>
    %161 = math.exp %160 : vector<8x384xf32>
    %cst_67 = arith.constant 1.000000e+00 : f32
    %162 = vector.broadcast %cst_67 : f32 to vector<8x384xf32>
    %163 = arith.addf %162, %161 : vector<8x384xf32>
    %164 = arith.divf %162, %163 : vector<8x384xf32>
    %165 = vector.extract_strided_slice %158 {offsets = [0, 384], sizes = [8, 128], strides = [1, 1]} : vector<8x512xf32> to vector<8x128xf32>
    %166 = math.tanh %165 : vector<8x128xf32>
    %167 = vector.extract_strided_slice %164 {offsets = [0, 0], sizes = [8, 128], strides = [1, 1]} : vector<8x384xf32> to vector<8x128xf32>
    %168 = vector.extract_strided_slice %164 {offsets = [0, 128], sizes = [8, 128], strides = [1, 1]} : vector<8x384xf32> to vector<8x128xf32>
    %169 = vector.extract_strided_slice %164 {offsets = [0, 256], sizes = [8, 128], strides = [1, 1]} : vector<8x384xf32> to vector<8x128xf32>
    %170 = arith.mulf %168, %124 : vector<8x128xf32>
    %171 = arith.mulf %167, %166 : vector<8x128xf32>
    %172 = arith.addf %170, %171 : vector<8x128xf32>
    %173 = math.tanh %172 : vector<8x128xf32>
    %174 = arith.mulf %169, %173 : vector<8x128xf32>
    %175 = arith.truncf %174 : vector<8x128xf32> to vector<8x128xbf16>
    %c0_68 = arith.constant 0 : index
    %c0_69 = arith.constant 0 : index
    %176 = vector.load %arg4[%c0_68, %c0_69] : memref<128x512xbf16, #tpu.memory_space<vmem>>, vector<128x512xbf16>
    %cst_70 = arith.constant dense<0.000000e+00> : vector<8x512xf32>
    %177 = tpu.matmul %175, %176, %cst_70 {dimension_numbers = #tpu.dot_dimension_numbers<[1], [0], [0], [1], [0, 0, 1, 1], [], []>} : vector<8x128xbf16>, vector<128x512xbf16>, vector<8x512xf32> -> vector<8x512xf32>
    %c0_71 = arith.constant 0 : index
    %c0_72 = arith.constant 0 : index
    %178 = vector.load %arg6[%c0_71, %c0_72] : memref<1x512xf32, #tpu.memory_space<vmem>>, vector<1x512xf32>
    %179 = vector.broadcast %178 : vector<1x512xf32> to vector<8x512xf32>
    %180 = arith.addf %177, %179 : vector<8x512xf32>
    %c0_73 = arith.constant 0 : index
    %c0_74 = arith.constant 0 : index
    %181 = vector.load %arg5[%c0_73, %c0_74] : memref<128x512xbf16, #tpu.memory_space<vmem>>, vector<128x512xbf16>
    %cst_75 = arith.constant dense<0.000000e+00> : vector<8x512xf32>
    %182 = tpu.matmul %152, %181, %cst_75 {dimension_numbers = #tpu.dot_dimension_numbers<[1], [0], [0], [1], [0, 0, 1, 1], [], []>} : vector<8x128xbf16>, vector<128x512xbf16>, vector<8x512xf32> -> vector<8x512xf32>
    %183 = arith.addf %180, %182 : vector<8x512xf32>
    %184 = vector.extract_strided_slice %183 {offsets = [0, 0], sizes = [8, 384], strides = [1, 1]} : vector<8x512xf32> to vector<8x384xf32>
    %185 = arith.negf %184 : vector<8x384xf32>
    %186 = math.exp %185 : vector<8x384xf32>
    %cst_76 = arith.constant 1.000000e+00 : f32
    %187 = vector.broadcast %cst_76 : f32 to vector<8x384xf32>
    %188 = arith.addf %187, %186 : vector<8x384xf32>
    %189 = arith.divf %187, %188 : vector<8x384xf32>
    %190 = vector.extract_strided_slice %183 {offsets = [0, 384], sizes = [8, 128], strides = [1, 1]} : vector<8x512xf32> to vector<8x128xf32>
    %191 = math.tanh %190 : vector<8x128xf32>
    %192 = vector.extract_strided_slice %189 {offsets = [0, 0], sizes = [8, 128], strides = [1, 1]} : vector<8x384xf32> to vector<8x128xf32>
    %193 = vector.extract_strided_slice %189 {offsets = [0, 128], sizes = [8, 128], strides = [1, 1]} : vector<8x384xf32> to vector<8x128xf32>
    %194 = vector.extract_strided_slice %189 {offsets = [0, 256], sizes = [8, 128], strides = [1, 1]} : vector<8x384xf32> to vector<8x128xf32>
    %195 = arith.mulf %193, %149 : vector<8x128xf32>
    %196 = arith.mulf %192, %191 : vector<8x128xf32>
    %197 = arith.addf %195, %196 : vector<8x128xf32>
    %198 = math.tanh %197 : vector<8x128xf32>
    %199 = arith.mulf %194, %198 : vector<8x128xf32>
    %200 = arith.truncf %199 : vector<8x128xf32> to vector<8x128xbf16>
    %201 = vector.extract_strided_slice %199 {offsets = [0, 0], sizes = [6, 128], strides = [1, 1]} : vector<8x128xf32> to vector<6x128xf32>
    %c23 = arith.constant 23 : index
    %c0_77 = arith.constant 0 : index
    %202 = vector.load %arg11[%c23, %c0_77] : memref<48x128xf32, #tpu.memory_space<vmem>>, vector<6x128xf32>
    tpu.vector_store %arg11[%c23, %c0_77], %201 {strides = array<i32>} : memref<48x128xf32, #tpu.memory_space<vmem>>, vector<6x128xf32>,
    %c32 = arith.constant 32 : index
    %c0_78 = arith.constant 0 : index
    %203 = vector.load %arg10[%c32, %c0_78] : memref<64x512xf32, #tpu.memory_space<vmem>>, vector<8x512xf32>
    %c0_79 = arith.constant 0 : index
    %c0_80 = arith.constant 0 : index
    %204 = vector.load %arg2[%c0_79, %c0_80] : memref<128x512xbf16, #tpu.memory_space<vmem>>, vector<128x512xbf16>
    %cst_81 = arith.constant dense<0.000000e+00> : vector<8x512xf32>
    %205 = tpu.matmul %175, %204, %cst_81 {dimension_numbers = #tpu.dot_dimension_numbers<[1], [0], [0], [1], [0, 0, 1, 1], [], []>} : vector<8x128xbf16>, vector<128x512xbf16>, vector<8x512xf32> -> vector<8x512xf32>
    %206 = arith.addf %203, %205 : vector<8x512xf32>
    %207 = vector.extract_strided_slice %206 {offsets = [0, 0], sizes = [8, 384], strides = [1, 1]} : vector<8x512xf32> to vector<8x384xf32>
    %208 = arith.negf %207 : vector<8x384xf32>
    %209 = math.exp %208 : vector<8x384xf32>
    %cst_82 = arith.constant 1.000000e+00 : f32
    %210 = vector.broadcast %cst_82 : f32 to vector<8x384xf32>
    %211 = arith.addf %210, %209 : vector<8x384xf32>
    %212 = arith.divf %210, %211 : vector<8x384xf32>
    %213 = vector.extract_strided_slice %206 {offsets = [0, 384], sizes = [8, 128], strides = [1, 1]} : vector<8x512xf32> to vector<8x128xf32>
    %214 = math.tanh %213 : vector<8x128xf32>
    %215 = vector.extract_strided_slice %212 {offsets = [0, 0], sizes = [8, 128], strides = [1, 1]} : vector<8x384xf32> to vector<8x128xf32>
    %216 = vector.extract_strided_slice %212 {offsets = [0, 128], sizes = [8, 128], strides = [1, 1]} : vector<8x384xf32> to vector<8x128xf32>
    %217 = vector.extract_strided_slice %212 {offsets = [0, 256], sizes = [8, 128], strides = [1, 1]} : vector<8x384xf32> to vector<8x128xf32>
    %218 = arith.mulf %216, %172 : vector<8x128xf32>
    %219 = arith.mulf %215, %214 : vector<8x128xf32>
    %220 = arith.addf %218, %219 : vector<8x128xf32>
    %221 = math.tanh %220 : vector<8x128xf32>
    %222 = arith.mulf %217, %221 : vector<8x128xf32>
    %223 = arith.truncf %222 : vector<8x128xf32> to vector<8x128xbf16>
    %c0_83 = arith.constant 0 : index
    %c0_84 = arith.constant 0 : index
    %224 = vector.load %arg4[%c0_83, %c0_84] : memref<128x512xbf16, #tpu.memory_space<vmem>>, vector<128x512xbf16>
    %cst_85 = arith.constant dense<0.000000e+00> : vector<8x512xf32>
    %225 = tpu.matmul %223, %224, %cst_85 {dimension_numbers = #tpu.dot_dimension_numbers<[1], [0], [0], [1], [0, 0, 1, 1], [], []>} : vector<8x128xbf16>, vector<128x512xbf16>, vector<8x512xf32> -> vector<8x512xf32>
    %c0_86 = arith.constant 0 : index
    %c0_87 = arith.constant 0 : index
    %226 = vector.load %arg6[%c0_86, %c0_87] : memref<1x512xf32, #tpu.memory_space<vmem>>, vector<1x512xf32>
    %227 = vector.broadcast %226 : vector<1x512xf32> to vector<8x512xf32>
    %228 = arith.addf %225, %227 : vector<8x512xf32>
    %c0_88 = arith.constant 0 : index
    %c0_89 = arith.constant 0 : index
    %229 = vector.load %arg5[%c0_88, %c0_89] : memref<128x512xbf16, #tpu.memory_space<vmem>>, vector<128x512xbf16>
    %cst_90 = arith.constant dense<0.000000e+00> : vector<8x512xf32>
    %230 = tpu.matmul %200, %229, %cst_90 {dimension_numbers = #tpu.dot_dimension_numbers<[1], [0], [0], [1], [0, 0, 1, 1], [], []>} : vector<8x128xbf16>, vector<128x512xbf16>, vector<8x512xf32> -> vector<8x512xf32>
    %231 = arith.addf %228, %230 : vector<8x512xf32>
    %232 = vector.extract_strided_slice %231 {offsets = [0, 0], sizes = [8, 384], strides = [1, 1]} : vector<8x512xf32> to vector<8x384xf32>
    %233 = arith.negf %232 : vector<8x384xf32>
    %234 = math.exp %233 : vector<8x384xf32>
    %cst_91 = arith.constant 1.000000e+00 : f32
    %235 = vector.broadcast %cst_91 : f32 to vector<8x384xf32>
    %236 = arith.addf %235, %234 : vector<8x384xf32>
    %237 = arith.divf %235, %236 : vector<8x384xf32>
    %238 = vector.extract_strided_slice %231 {offsets = [0, 384], sizes = [8, 128], strides = [1, 1]} : vector<8x512xf32> to vector<8x128xf32>
    %239 = math.tanh %238 : vector<8x128xf32>
    %240 = vector.extract_strided_slice %237 {offsets = [0, 0], sizes = [8, 128], strides = [1, 1]} : vector<8x384xf32> to vector<8x128xf32>
    %241 = vector.extract_strided_slice %237 {offsets = [0, 128], sizes = [8, 128], strides = [1, 1]} : vector<8x384xf32> to vector<8x128xf32>
    %242 = vector.extract_strided_slice %237 {offsets = [0, 256], sizes = [8, 128], strides = [1, 1]} : vector<8x384xf32> to vector<8x128xf32>
    %243 = arith.mulf %241, %197 : vector<8x128xf32>
    %244 = arith.mulf %240, %239 : vector<8x128xf32>
    %245 = arith.addf %243, %244 : vector<8x128xf32>
    %246 = math.tanh %245 : vector<8x128xf32>
    %247 = arith.mulf %242, %246 : vector<8x128xf32>
    %248 = arith.truncf %247 : vector<8x128xf32> to vector<8x128xbf16>
    %249 = vector.extract_strided_slice %247 {offsets = [0, 0], sizes = [5, 128], strides = [1, 1]} : vector<8x128xf32> to vector<5x128xf32>
    %c29 = arith.constant 29 : index
    %c0_92 = arith.constant 0 : index
    %250 = vector.load %arg11[%c29, %c0_92] : memref<48x128xf32, #tpu.memory_space<vmem>>, vector<5x128xf32>
    tpu.vector_store %arg11[%c29, %c0_92], %249 {strides = array<i32>} : memref<48x128xf32, #tpu.memory_space<vmem>>, vector<5x128xf32>,
    %c40 = arith.constant 40 : index
    %c0_93 = arith.constant 0 : index
    %251 = vector.load %arg10[%c40, %c0_93] : memref<64x512xf32, #tpu.memory_space<vmem>>, vector<8x512xf32>
    %c0_94 = arith.constant 0 : index
    %c0_95 = arith.constant 0 : index
    %252 = vector.load %arg2[%c0_94, %c0_95] : memref<128x512xbf16, #tpu.memory_space<vmem>>, vector<128x512xbf16>
    %cst_96 = arith.constant dense<0.000000e+00> : vector<8x512xf32>
    %253 = tpu.matmul %223, %252, %cst_96 {dimension_numbers = #tpu.dot_dimension_numbers<[1], [0], [0], [1], [0, 0, 1, 1], [], []>} : vector<8x128xbf16>, vector<128x512xbf16>, vector<8x512xf32> -> vector<8x512xf32>
    %254 = arith.addf %251, %253 : vector<8x512xf32>
    %255 = vector.extract_strided_slice %254 {offsets = [0, 0], sizes = [8, 384], strides = [1, 1]} : vector<8x512xf32> to vector<8x384xf32>
    %256 = arith.negf %255 : vector<8x384xf32>
    %257 = math.exp %256 : vector<8x384xf32>
    %cst_97 = arith.constant 1.000000e+00 : f32
    %258 = vector.broadcast %cst_97 : f32 to vector<8x384xf32>
    %259 = arith.addf %258, %257 : vector<8x384xf32>
    %260 = arith.divf %258, %259 : vector<8x384xf32>
    %261 = vector.extract_strided_slice %254 {offsets = [0, 384], sizes = [8, 128], strides = [1, 1]} : vector<8x512xf32> to vector<8x128xf32>
    %262 = math.tanh %261 : vector<8x128xf32>
    %263 = vector.extract_strided_slice %260 {offsets = [0, 0], sizes = [8, 128], strides = [1, 1]} : vector<8x384xf32> to vector<8x128xf32>
    %264 = vector.extract_strided_slice %260 {offsets = [0, 128], sizes = [8, 128], strides = [1, 1]} : vector<8x384xf32> to vector<8x128xf32>
    %265 = vector.extract_strided_slice %260 {offsets = [0, 256], sizes = [8, 128], strides = [1, 1]} : vector<8x384xf32> to vector<8x128xf32>
    %266 = arith.mulf %264, %220 : vector<8x128xf32>
    %267 = arith.mulf %263, %262 : vector<8x128xf32>
    %268 = arith.addf %266, %267 : vector<8x128xf32>
    %269 = math.tanh %268 : vector<8x128xf32>
    %270 = arith.mulf %265, %269 : vector<8x128xf32>
    %271 = arith.truncf %270 : vector<8x128xf32> to vector<8x128xbf16>
    %c0_98 = arith.constant 0 : index
    %c0_99 = arith.constant 0 : index
    %272 = vector.load %arg4[%c0_98, %c0_99] : memref<128x512xbf16, #tpu.memory_space<vmem>>, vector<128x512xbf16>
    %cst_100 = arith.constant dense<0.000000e+00> : vector<8x512xf32>
    %273 = tpu.matmul %271, %272, %cst_100 {dimension_numbers = #tpu.dot_dimension_numbers<[1], [0], [0], [1], [0, 0, 1, 1], [], []>} : vector<8x128xbf16>, vector<128x512xbf16>, vector<8x512xf32> -> vector<8x512xf32>
    %c0_101 = arith.constant 0 : index
    %c0_102 = arith.constant 0 : index
    %274 = vector.load %arg6[%c0_101, %c0_102] : memref<1x512xf32, #tpu.memory_space<vmem>>, vector<1x512xf32>
    %275 = vector.broadcast %274 : vector<1x512xf32> to vector<8x512xf32>
    %276 = arith.addf %273, %275 : vector<8x512xf32>
    %c0_103 = arith.constant 0 : index
    %c0_104 = arith.constant 0 : index
    %277 = vector.load %arg5[%c0_103, %c0_104] : memref<128x512xbf16, #tpu.memory_space<vmem>>, vector<128x512xbf16>
    %cst_105 = arith.constant dense<0.000000e+00> : vector<8x512xf32>
    %278 = tpu.matmul %248, %277, %cst_105 {dimension_numbers = #tpu.dot_dimension_numbers<[1], [0], [0], [1], [0, 0, 1, 1], [], []>} : vector<8x128xbf16>, vector<128x512xbf16>, vector<8x512xf32> -> vector<8x512xf32>
    %279 = arith.addf %276, %278 : vector<8x512xf32>
    %280 = vector.extract_strided_slice %279 {offsets = [0, 0], sizes = [8, 384], strides = [1, 1]} : vector<8x512xf32> to vector<8x384xf32>
    %281 = arith.negf %280 : vector<8x384xf32>
    %282 = math.exp %281 : vector<8x384xf32>
    %cst_106 = arith.constant 1.000000e+00 : f32
    %283 = vector.broadcast %cst_106 : f32 to vector<8x384xf32>
    %284 = arith.addf %283, %282 : vector<8x384xf32>
    %285 = arith.divf %283, %284 : vector<8x384xf32>
    %286 = vector.extract_strided_slice %279 {offsets = [0, 384], sizes = [8, 128], strides = [1, 1]} : vector<8x512xf32> to vector<8x128xf32>
    %287 = math.tanh %286 : vector<8x128xf32>
    %288 = vector.extract_strided_slice %285 {offsets = [0, 0], sizes = [8, 128], strides = [1, 1]} : vector<8x384xf32> to vector<8x128xf32>
    %289 = vector.extract_strided_slice %285 {offsets = [0, 128], sizes = [8, 128], strides = [1, 1]} : vector<8x384xf32> to vector<8x128xf32>
    %290 = vector.extract_strided_slice %285 {offsets = [0, 256], sizes = [8, 128], strides = [1, 1]} : vector<8x384xf32> to vector<8x128xf32>
    %291 = arith.mulf %289, %245 : vector<8x128xf32>
    %292 = arith.mulf %288, %287 : vector<8x128xf32>
    %293 = arith.addf %291, %292 : vector<8x128xf32>
    %294 = math.tanh %293 : vector<8x128xf32>
    %295 = arith.mulf %290, %294 : vector<8x128xf32>
    %296 = arith.truncf %295 : vector<8x128xf32> to vector<8x128xbf16>
    %297 = vector.extract_strided_slice %295 {offsets = [0, 0], sizes = [4, 128], strides = [1, 1]} : vector<8x128xf32> to vector<4x128xf32>
    %c34 = arith.constant 34 : index
    %c0_107 = arith.constant 0 : index
    %298 = vector.load %arg11[%c34, %c0_107] : memref<48x128xf32, #tpu.memory_space<vmem>>, vector<4x128xf32>
    tpu.vector_store %arg11[%c34, %c0_107], %297 {strides = array<i32>} : memref<48x128xf32, #tpu.memory_space<vmem>>, vector<4x128xf32>,
    %c48 = arith.constant 48 : index
    %c0_108 = arith.constant 0 : index
    %299 = vector.load %arg10[%c48, %c0_108] : memref<64x512xf32, #tpu.memory_space<vmem>>, vector<8x512xf32>
    %c0_109 = arith.constant 0 : index
    %c0_110 = arith.constant 0 : index
    %300 = vector.load %arg2[%c0_109, %c0_110] : memref<128x512xbf16, #tpu.memory_space<vmem>>, vector<128x512xbf16>
    %cst_111 = arith.constant dense<0.000000e+00> : vector<8x512xf32>
    %301 = tpu.matmul %271, %300, %cst_111 {dimension_numbers = #tpu.dot_dimension_numbers<[1], [0], [0], [1], [0, 0, 1, 1], [], []>} : vector<8x128xbf16>, vector<128x512xbf16>, vector<8x512xf32> -> vector<8x512xf32>
    %302 = arith.addf %299, %301 : vector<8x512xf32>
    %303 = vector.extract_strided_slice %302 {offsets = [0, 0], sizes = [8, 384], strides = [1, 1]} : vector<8x512xf32> to vector<8x384xf32>
    %304 = arith.negf %303 : vector<8x384xf32>
    %305 = math.exp %304 : vector<8x384xf32>
    %cst_112 = arith.constant 1.000000e+00 : f32
    %306 = vector.broadcast %cst_112 : f32 to vector<8x384xf32>
    %307 = arith.addf %306, %305 : vector<8x384xf32>
    %308 = arith.divf %306, %307 : vector<8x384xf32>
    %309 = vector.extract_strided_slice %302 {offsets = [0, 384], sizes = [8, 128], strides = [1, 1]} : vector<8x512xf32> to vector<8x128xf32>
    %310 = math.tanh %309 : vector<8x128xf32>
    %311 = vector.extract_strided_slice %308 {offsets = [0, 0], sizes = [8, 128], strides = [1, 1]} : vector<8x384xf32> to vector<8x128xf32>
    %312 = vector.extract_strided_slice %308 {offsets = [0, 128], sizes = [8, 128], strides = [1, 1]} : vector<8x384xf32> to vector<8x128xf32>
    %313 = vector.extract_strided_slice %308 {offsets = [0, 256], sizes = [8, 128], strides = [1, 1]} : vector<8x384xf32> to vector<8x128xf32>
    %314 = arith.mulf %312, %268 : vector<8x128xf32>
    %315 = arith.mulf %311, %310 : vector<8x128xf32>
    %316 = arith.addf %314, %315 : vector<8x128xf32>
    %317 = math.tanh %316 : vector<8x128xf32>
    %318 = arith.mulf %313, %317 : vector<8x128xf32>
    %319 = arith.truncf %318 : vector<8x128xf32> to vector<8x128xbf16>
    %c0_113 = arith.constant 0 : index
    %c0_114 = arith.constant 0 : index
    %320 = vector.load %arg4[%c0_113, %c0_114] : memref<128x512xbf16, #tpu.memory_space<vmem>>, vector<128x512xbf16>
    %cst_115 = arith.constant dense<0.000000e+00> : vector<8x512xf32>
    %321 = tpu.matmul %319, %320, %cst_115 {dimension_numbers = #tpu.dot_dimension_numbers<[1], [0], [0], [1], [0, 0, 1, 1], [], []>} : vector<8x128xbf16>, vector<128x512xbf16>, vector<8x512xf32> -> vector<8x512xf32>
    %c0_116 = arith.constant 0 : index
    %c0_117 = arith.constant 0 : index
    %322 = vector.load %arg6[%c0_116, %c0_117] : memref<1x512xf32, #tpu.memory_space<vmem>>, vector<1x512xf32>
    %323 = vector.broadcast %322 : vector<1x512xf32> to vector<8x512xf32>
    %324 = arith.addf %321, %323 : vector<8x512xf32>
    %c0_118 = arith.constant 0 : index
    %c0_119 = arith.constant 0 : index
    %325 = vector.load %arg5[%c0_118, %c0_119] : memref<128x512xbf16, #tpu.memory_space<vmem>>, vector<128x512xbf16>
    %cst_120 = arith.constant dense<0.000000e+00> : vector<8x512xf32>
    %326 = tpu.matmul %296, %325, %cst_120 {dimension_numbers = #tpu.dot_dimension_numbers<[1], [0], [0], [1], [0, 0, 1, 1], [], []>} : vector<8x128xbf16>, vector<128x512xbf16>, vector<8x512xf32> -> vector<8x512xf32>
    %327 = arith.addf %324, %326 : vector<8x512xf32>
    %328 = vector.extract_strided_slice %327 {offsets = [0, 0], sizes = [8, 384], strides = [1, 1]} : vector<8x512xf32> to vector<8x384xf32>
    %329 = arith.negf %328 : vector<8x384xf32>
    %330 = math.exp %329 : vector<8x384xf32>
    %cst_121 = arith.constant 1.000000e+00 : f32
    %331 = vector.broadcast %cst_121 : f32 to vector<8x384xf32>
    %332 = arith.addf %331, %330 : vector<8x384xf32>
    %333 = arith.divf %331, %332 : vector<8x384xf32>
    %334 = vector.extract_strided_slice %327 {offsets = [0, 384], sizes = [8, 128], strides = [1, 1]} : vector<8x512xf32> to vector<8x128xf32>
    %335 = math.tanh %334 : vector<8x128xf32>
    %336 = vector.extract_strided_slice %333 {offsets = [0, 0], sizes = [8, 128], strides = [1, 1]} : vector<8x384xf32> to vector<8x128xf32>
    %337 = vector.extract_strided_slice %333 {offsets = [0, 128], sizes = [8, 128], strides = [1, 1]} : vector<8x384xf32> to vector<8x128xf32>
    %338 = vector.extract_strided_slice %333 {offsets = [0, 256], sizes = [8, 128], strides = [1, 1]} : vector<8x384xf32> to vector<8x128xf32>
    %339 = arith.mulf %337, %293 : vector<8x128xf32>
    %340 = arith.mulf %336, %335 : vector<8x128xf32>
    %341 = arith.addf %339, %340 : vector<8x128xf32>
    %342 = math.tanh %341 : vector<8x128xf32>
    %343 = arith.mulf %338, %342 : vector<8x128xf32>
    %344 = arith.truncf %343 : vector<8x128xf32> to vector<8x128xbf16>
    %345 = vector.extract_strided_slice %343 {offsets = [0, 0], sizes = [3, 128], strides = [1, 1]} : vector<8x128xf32> to vector<3x128xf32>
    %c38 = arith.constant 38 : index
    %c0_122 = arith.constant 0 : index
    %346 = vector.load %arg11[%c38, %c0_122] : memref<48x128xf32, #tpu.memory_space<vmem>>, vector<3x128xf32>
    tpu.vector_store %arg11[%c38, %c0_122], %345 {strides = array<i32>} : memref<48x128xf32, #tpu.memory_space<vmem>>, vector<3x128xf32>,
    %c56 = arith.constant 56 : index
    %c0_123 = arith.constant 0 : index
    %347 = vector.load %arg10[%c56, %c0_123] : memref<64x512xf32, #tpu.memory_space<vmem>>, vector<8x512xf32>
    %c0_124 = arith.constant 0 : index
    %c0_125 = arith.constant 0 : index
    %348 = vector.load %arg2[%c0_124, %c0_125] : memref<128x512xbf16, #tpu.memory_space<vmem>>, vector<128x512xbf16>
    %cst_126 = arith.constant dense<0.000000e+00> : vector<8x512xf32>
    %349 = tpu.matmul %319, %348, %cst_126 {dimension_numbers = #tpu.dot_dimension_numbers<[1], [0], [0], [1], [0, 0, 1, 1], [], []>} : vector<8x128xbf16>, vector<128x512xbf16>, vector<8x512xf32> -> vector<8x512xf32>
    %350 = arith.addf %347, %349 : vector<8x512xf32>
    %351 = vector.extract_strided_slice %350 {offsets = [0, 0], sizes = [8, 384], strides = [1, 1]} : vector<8x512xf32> to vector<8x384xf32>
    %352 = arith.negf %351 : vector<8x384xf32>
    %353 = math.exp %352 : vector<8x384xf32>
    %cst_127 = arith.constant 1.000000e+00 : f32
    %354 = vector.broadcast %cst_127 : f32 to vector<8x384xf32>
    %355 = arith.addf %354, %353 : vector<8x384xf32>
    %356 = arith.divf %354, %355 : vector<8x384xf32>
    %357 = vector.extract_strided_slice %350 {offsets = [0, 384], sizes = [8, 128], strides = [1, 1]} : vector<8x512xf32> to vector<8x128xf32>
    %358 = math.tanh %357 : vector<8x128xf32>
    %359 = vector.extract_strided_slice %356 {offsets = [0, 0], sizes = [8, 128], strides = [1, 1]} : vector<8x384xf32> to vector<8x128xf32>
    %360 = vector.extract_strided_slice %356 {offsets = [0, 128], sizes = [8, 128], strides = [1, 1]} : vector<8x384xf32> to vector<8x128xf32>
    %361 = vector.extract_strided_slice %356 {offsets = [0, 256], sizes = [8, 128], strides = [1, 1]} : vector<8x384xf32> to vector<8x128xf32>
    %362 = arith.mulf %360, %316 : vector<8x128xf32>
    %363 = arith.mulf %359, %358 : vector<8x128xf32>
    %364 = arith.addf %362, %363 : vector<8x128xf32>
    %365 = math.tanh %364 : vector<8x128xf32>
    %366 = arith.mulf %361, %365 : vector<8x128xf32>
    %367 = arith.truncf %366 : vector<8x128xf32> to vector<8x128xbf16>
    %c0_128 = arith.constant 0 : index
    %c0_129 = arith.constant 0 : index
    %368 = vector.load %arg4[%c0_128, %c0_129] : memref<128x512xbf16, #tpu.memory_space<vmem>>, vector<128x512xbf16>
    %cst_130 = arith.constant dense<0.000000e+00> : vector<8x512xf32>
    %369 = tpu.matmul %367, %368, %cst_130 {dimension_numbers = #tpu.dot_dimension_numbers<[1], [0], [0], [1], [0, 0, 1, 1], [], []>} : vector<8x128xbf16>, vector<128x512xbf16>, vector<8x512xf32> -> vector<8x512xf32>
    %c0_131 = arith.constant 0 : index
    %c0_132 = arith.constant 0 : index
    %370 = vector.load %arg6[%c0_131, %c0_132] : memref<1x512xf32, #tpu.memory_space<vmem>>, vector<1x512xf32>
    %371 = vector.broadcast %370 : vector<1x512xf32> to vector<8x512xf32>
    %372 = arith.addf %369, %371 : vector<8x512xf32>
    %c0_133 = arith.constant 0 : index
    %c0_134 = arith.constant 0 : index
    %373 = vector.load %arg5[%c0_133, %c0_134] : memref<128x512xbf16, #tpu.memory_space<vmem>>, vector<128x512xbf16>
    %cst_135 = arith.constant dense<0.000000e+00> : vector<8x512xf32>
    %374 = tpu.matmul %344, %373, %cst_135 {dimension_numbers = #tpu.dot_dimension_numbers<[1], [0], [0], [1], [0, 0, 1, 1], [], []>} : vector<8x128xbf16>, vector<128x512xbf16>, vector<8x512xf32> -> vector<8x512xf32>
    %375 = arith.addf %372, %374 : vector<8x512xf32>
    %376 = vector.extract_strided_slice %375 {offsets = [0, 0], sizes = [8, 384], strides = [1, 1]} : vector<8x512xf32> to vector<8x384xf32>
    %377 = arith.negf %376 : vector<8x384xf32>
    %378 = math.exp %377 : vector<8x384xf32>
    %cst_136 = arith.constant 1.000000e+00 : f32
    %379 = vector.broadcast %cst_136 : f32 to vector<8x384xf32>
    %380 = arith.addf %379, %378 : vector<8x384xf32>
    %381 = arith.divf %379, %380 : vector<8x384xf32>
    %382 = vector.extract_strided_slice %375 {offsets = [0, 384], sizes = [8, 128], strides = [1, 1]} : vector<8x512xf32> to vector<8x128xf32>
    %383 = math.tanh %382 : vector<8x128xf32>
    %384 = vector.extract_strided_slice %381 {offsets = [0, 0], sizes = [8, 128], strides = [1, 1]} : vector<8x384xf32> to vector<8x128xf32>
    %385 = vector.extract_strided_slice %381 {offsets = [0, 128], sizes = [8, 128], strides = [1, 1]} : vector<8x384xf32> to vector<8x128xf32>
    %386 = vector.extract_strided_slice %381 {offsets = [0, 256], sizes = [8, 128], strides = [1, 1]} : vector<8x384xf32> to vector<8x128xf32>
    %387 = arith.mulf %385, %341 : vector<8x128xf32>
    %388 = arith.mulf %384, %383 : vector<8x128xf32>
    %389 = arith.addf %387, %388 : vector<8x128xf32>
    %390 = math.tanh %389 : vector<8x128xf32>
    %391 = arith.mulf %386, %390 : vector<8x128xf32>
    %392 = vector.extract_strided_slice %391 {offsets = [0, 0], sizes = [2, 128], strides = [1, 1]} : vector<8x128xf32> to vector<2x128xf32>
    %c41 = arith.constant 41 : index
    %c0_137 = arith.constant 0 : index
    %393 = vector.load %arg11[%c41, %c0_137] : memref<48x128xf32, #tpu.memory_space<vmem>>, vector<2x128xf32>
    tpu.vector_store %arg11[%c41, %c0_137], %392 {strides = array<i32>} : memref<48x128xf32, #tpu.memory_space<vmem>>, vector<2x128xf32>,
    %c0_138 = arith.constant 0 : index
    %c0_139 = arith.constant 0 : index
    %394 = vector.load %arg11[%c0_138, %c0_139] : memref<48x128xf32, #tpu.memory_space<vmem>>, vector<48x128xf32>
    %395 = arith.truncf %394 : vector<48x128xf32> to vector<48x128xbf16>
    %c0_140 = arith.constant 0 : index
    %c0_141 = arith.constant 0 : index
    %396 = vector.load %arg7[%c0_140, %c0_141] : memref<128x256xbf16, #tpu.memory_space<vmem>>, vector<128x256xbf16>
    %cst_142 = arith.constant dense<0.000000e+00> : vector<48x256xf32>
    %397 = tpu.matmul %395, %396, %cst_142 {dimension_numbers = #tpu.dot_dimension_numbers<[1], [0], [0], [1], [0, 0, 1, 1], [], []>} : vector<48x128xbf16>, vector<128x256xbf16>, vector<48x256xf32> -> vector<48x256xf32>
    %c0_143 = arith.constant 0 : index
    %c0_144 = arith.constant 0 : index
    %398 = vector.load %arg8[%c0_143, %c0_144] : memref<1x256xf32, #tpu.memory_space<vmem>>, vector<1x256xf32>
    %399 = vector.broadcast %398 : vector<1x256xf32> to vector<48x256xf32>
    %400 = arith.addf %397, %399 : vector<48x256xf32>
    %c0_145 = arith.constant 0 : index
    %c0_146 = arith.constant 0 : index
    %401 = vector.load %arg9[%c0_145, %c0_146] : memref<48x256xf32, #tpu.memory_space<vmem>>, vector<48x256xf32>
    tpu.vector_store %arg9[%c0_145, %c0_146], %400 {strides = array<i32>} : memref<48x256xf32, #tpu.memory_space<vmem>>, vector<48x256xf32>,
    return
  }
}

</mosaic_0001>

<bundles_post_ra>
// kernel: tpu_custom_call.1
= control target key start
LH: loop header
LB: loop body
LE: loop exit
PB: predicated region body
PF: predicated region fallthrough
CT: control target
= control target key end

     0   :  { %14 = vsyncpa [#allocation5], 0  ;;  %s11849_s0 = inlined_call_operand.hbm [shape: bf16[64,128], index: 0, kind: input, shape index: {}]   ;;  %s11850_s1 = inlined_call_operand.hbm [shape: bf16[128,512], index: 1, kind: input, shape index: {}]   ;;  %s11851_s2 = inlined_call_operand.hbm [shape: bf16[128,512], index: 2, kind: input, shape index: {}]   ;;  %s11852_s3 = inlined_call_operand.vmem [shape: f32[1,512], index: 3, kind: input, shape index: {}]   ;;  %s11853_s4 = inlined_call_operand.hbm [shape: bf16[128,512], index: 4, kind: input, shape index: {}]   ;;  %s11854_s5 = inlined_call_operand.hbm [shape: bf16[128,512], index: 5, kind: input, shape index: {}]   ;;  %s11855_s6 = inlined_call_operand.vmem [shape: f32[1,512], index: 6, kind: input, shape index: {}]   ;;  %s11856_s7 = inlined_call_operand.hbm [shape: bf16[128,256], index: 7, kind: input, shape index: {}]   ;;  %s11857_s8 = inlined_call_operand.vmem [shape: f32[1,256], index: 8, kind: input, shape index: {}]   ;;  %s11858_s9 = inlined_call_operand.hbm [shape: f32[48,256], index: 9, kind: output, shape index: {}]  }
   0x1   :  { %15 = vsyncpa [#allocation8], 0 }
   0x2   :  { %16 = vsyncpa [#allocation11], 0 }
   0x3   :  { %17 = vsyncpa [#allocation14], 0 }
   0x4   :  { %18 = vsyncpa [#allocation6], 0  ;;  %s9994_s30 = smov [#allocation7]  }
   0x5   :  { %s36_s10 = sshll.u32 %s9994_s30, 4  ;;  %s37_s10 = int_to_ptr.vmem [resolvable:$true] %s36_s10 }
   0x6   :  { %s9852_s11 = scalar_lea.vmem %s37_s10, 4096  ;;  %p9857_p1 = scmp.lt.s32.totalorder %s37_s10, %s37_s10 }
   0x7   :  { %p9853_p0 = scmp.ne.s32.totalorder %s37_s10, %s9852_s11  ;;  %p9858_p2 = scmp.lt.s32.totalorder %s9852_s11, %s9852_s11 }
   0x9   :  { %p9859_p3 = por %p9858_p2, %p9857_p1 }
   0xb   :  { %p9860_p4 = pnand %p9859_p3, %p9853_p0 }
   0xd   :  { %9863 = shalt.err (!%p9860_p4)
}
   0xe   :  { %s9995_s12 = smov 256   ;;  %s9996_s13 = smov 16  }
   0xf   :  { %42 = dma.hbm_to_vmem [thread:$0]  %s11850_s1, 4096, %s37_s10, [#allocation8], %s9995_s12, %s9995_s12, %s9996_s13  }
  0x10   :  { %s9997_s16 = smov [#allocation10]   ;;  %s9998_s18 = smov [#allocation4]  }
  0x11   :  { %s62_s17 = sshll.u32 %s9997_s16, 4  ;;  %s24_s19 = sshll.u32 %s9998_s18, 4  ;;  %s63_s17 = int_to_ptr.vmem [resolvable:$true] %s62_s17  ;;  %s25_s19 = int_to_ptr.vmem [resolvable:$true] %s24_s19 }
  0x12   :  { %s9872_s20 = scalar_lea.vmem %s63_s17, 4096  ;;  %p9877_p6 = scmp.lt.s32.totalorder %s63_s17, %s63_s17 }
  0x13   :  { %p9873_p5 = scmp.ne.s32.totalorder %s63_s17, %s9872_s20  ;;  %p9878_p7 = scmp.lt.s32.totalorder %s9872_s20, %s9872_s20 }
  0x15   :  { %p9879_p8 = por %p9878_p7, %p9877_p6 }
  0x17   :  { %p9880_p9 = pnand %p9879_p8, %p9873_p5 }
  0x19   :  { %9883 = shalt.err (!%p9880_p9)
}
  0x1a   :  { %68 = dma.hbm_to_vmem [thread:$0]  %s11853_s4, 4096, %s63_s17, [#allocation11], %s9995_s12, %s9995_s12, %s9996_s13  }
  0x1b   :  { %s9892_s1 = scalar_lea.vmem %s25_s19, 512  ;;  %p9897_p11 = scmp.lt.s32.totalorder %s25_s19, %s25_s19 }
  0x1c   :  { %p9893_p10 = scmp.ne.s32.totalorder %s25_s19, %s9892_s1  ;;  %p9898_p12 = scmp.lt.s32.totalorder %s9892_s1, %s9892_s1 }
  0x1e   :  { %p9899_p13 = por %p9898_p12, %p9897_p11 }
  0x20   :  { %p9900_p0 = pnand %p9899_p13, %p9893_p10 }
  0x22   :  { %9903 = shalt.err (!%p9900_p0)
}
  0x23   :  { %s9999_s23 = smov 64   ;;  %s10000_s24 = smov 4  }
  0x24   :  { %30 = dma.hbm_to_vmem [thread:$0]  %s11849_s0, 512, %s25_s19, [#allocation5], %s9999_s23, %s9999_s23, %s10000_s24  }
  0x25   :  { %s10001_s27 = smov [#allocation9]   ;;  %s10002_s29 = smov [#allocation12]  }
  0x26   :  { %s48_s28 = sshll.u32 %s10001_s27, 4  ;;  %s74_s30 = sshll.u32 %s10002_s29, 4  ;;  %s49_s28 = int_to_ptr.vmem [resolvable:$true] %s48_s28  ;;  %s75_s30 = int_to_ptr.vmem [resolvable:$true] %s74_s30 }
  0x27   :  { %s9912_s4 = scalar_lea.vmem %s49_s28, 4096  ;;  %p9917_p2 = scmp.lt.s32.totalorder %s49_s28, %s49_s28 }
  0x28   :  { %p9913_p1 = scmp.ne.s32.totalorder %s49_s28, %s9912_s4  ;;  %p9918_p3 = scmp.lt.s32.totalorder %s9912_s4, %s9912_s4 }
  0x2a   :  { %p9919_p4 = por %p9918_p3, %p9917_p2 }
  0x2c   :  { %p9920_p5 = pnand %p9919_p4, %p9913_p1 }
  0x2e   :  { %9923 = shalt.err (!%p9920_p5)
}
  0x2f   :  { %54 = dma.hbm_to_vmem [thread:$0]  %s11851_s2, 4096, %s49_s28, [#allocation8], %s9995_s12, %s9995_s12, %s9996_s13  }
  0x30   :  { %s9932_s0 = scalar_lea.vmem %s75_s30, 4096  ;;  %p9937_p7 = scmp.lt.s32.totalorder %s75_s30, %s75_s30 }
  0x31   :  { %p9933_p6 = scmp.ne.s32.totalorder %s75_s30, %s9932_s0  ;;  %p9938_p8 = scmp.lt.s32.totalorder %s9932_s0, %s9932_s0 }
  0x33   :  { %p9939_p9 = por %p9938_p8, %p9937_p7 }
  0x35   :  { %p9940_p10 = pnand %p9939_p9, %p9933_p6 }
  0x37   :  { %9943 = shalt.err (!%p9940_p10)
}
  0x38   :  { %80 = dma.hbm_to_vmem [thread:$0]  %s11854_s5, 4096, %s75_s30, [#allocation11], %s9995_s12, %s9995_s12, %s9996_s13  }
  0x39   :  { %s10003_s16 = smov [#allocation13]  }
  0x3a   :  { %s88_s17 = sshll.u32 %s10003_s16, 4  ;;  %s89_s17 = int_to_ptr.vmem [resolvable:$true] %s88_s17 }
  0x3b   :  { %s9952_s18 = scalar_lea.vmem %s89_s17, 2048  ;;  %p9957_p12 = scmp.lt.s32.totalorder %s89_s17, %s89_s17 }
  0x3c   :  { %p9953_p11 = scmp.ne.s32.totalorder %s89_s17, %s9952_s18  ;;  %p9958_p13 = scmp.lt.s32.totalorder %s9952_s18, %s9952_s18 }
  0x3e   :  { %p9959_p0 = por %p9958_p13, %p9957_p12 }
  0x40   :  { %p9960_p1 = pnand %p9959_p0, %p9953_p11 }
  0x42   :  { %9963 = shalt.err (!%p9960_p1)
}
  0x43   :  { %s10004_s2 = smov 128   ;;  %s10005_s19 = smov 8  }
  0x44   :  { %94 = dma.hbm_to_vmem [thread:$0]  %s11856_s7, 2048, %s89_s17, [#allocation14], %s10004_s2, %s10004_s2, %s10005_s19  }
  0x45   :  { %9984 = dma.done.wait [#allocation5], 512  }
  0x46   :  { %9985 = vsyncadd [#allocation5], 4294966784 }
  0x47   :  { %9986 = dma.done.wait [#allocation8], 8192  }
  0x48   :  { %9987 = vsyncadd [#allocation8], 4294959104 }
  0x49   :  { %9988 = dma.done.wait [#allocation11], 8192  }
  0x4a   :  { %9989 = vsyncadd [#allocation11], 4294959104 }
  0x4b   :  { %9990 = dma.done.wait [#allocation14], 2048  }
  0x4c   :  { %9991 = vsyncadd [#allocation14], 4294965248  ;;  %v11859_v0 = vmov 0   ;;  %v8896_v1 = vld [vmem:[#allocation7 + $0xe4] ss:$16 sps:$4 sm:$0xff]   ;;  %v8951_v39 = vld [vmem:[#allocation4 + $0x8] sm:$0xff]  }
  0x4d   :  { %394 = vmatprep.mubr.bf16.mxu1 %v11859_v0  ;;  %774 = vmatprep.mubr.bf16.mxu0 %v11859_v0  ;;  %v8898_v2 = vld [vmem:[#allocation7 + $0xe0] ss:$16 sps:$4 sm:$0xff]   ;;  %v8899_v3 = vld [vmem:[#allocation9 + $0xe4] ss:$16 sps:$4 sm:$0xff]   ;;  %v8947_v32 = vld [vmem:[#allocation7 + $0xec] ss:$16 sps:$4 sm:$0xff]  }
  0x4e   :  { %362 = vmatprep.subr.bf16.mxu1 %v8896_v1  ;;  %v8901_v4 = vld [vmem:[#allocation9 + $0xe0] ss:$16 sps:$4 sm:$0xff]   ;;  %v8902_v5 = vld [vmem:[#allocation7 + $0xc4] ss:$16 sps:$4 sm:$0xff]   ;;  %742 = vmatprep.subr.bf16.mxu0 %v8899_v3  ;;  %v8945_v35 = vld [vmem:[#allocation7 + $0xe8] ss:$16 sps:$4 sm:$0xff]  }
  0x4f   :  { %363 = vmatpush1.bf16.msra.mxu1 %v8898_v2  ;;  %v8904_v6 = vld [vmem:[#allocation7 + $0xc0] ss:$16 sps:$4 sm:$0xff]   ;;  %v8905_v7 = vld [vmem:[#allocation9 + $0xc4] ss:$16 sps:$4 sm:$0xff]   ;;  %743 = vmatpush1.bf16.msra.mxu0 %v8901_v4  ;;  %v8950_v36 = vld [vmem:[#allocation7 + $0xcc] ss:$16 sps:$4 sm:$0xff]  }
  0x50   :  { %364 = vmatprep.subr.bf16.mxu1 %v8902_v5  ;;  %v8907_v8 = vld [vmem:[#allocation9 + $0xc0] ss:$16 sps:$4 sm:$0xff]   ;;  %744 = vmatprep.subr.bf16.mxu0 %v8905_v7  ;;  %v8908_v9 = vld [vmem:[#allocation7 + $0xa4] ss:$16 sps:$4 sm:$0xff]   ;;  %v8948_v37 = vld [vmem:[#allocation7 + $0xc8] ss:$16 sps:$4 sm:$0xff]  }
  0x51   :  { %v8910_v10 = vld [vmem:[#allocation7 + $0xa0] ss:$16 sps:$4 sm:$0xff]   ;;  %v8911_v11 = vld [vmem:[#allocation9 + $0xa4] ss:$16 sps:$4 sm:$0xff]   ;;  %v8954_v38 = vld [vmem:[#allocation7 + $0xac] ss:$16 sps:$4 sm:$0xff]  }
  0x52   :  { %v8914_v12 = vld [vmem:[#allocation7 + $0x84] ss:$16 sps:$4 sm:$0xff]   ;;  %v8913_v13 = vld [vmem:[#allocation9 + $0xa0] ss:$16 sps:$4 sm:$0xff]   ;;  %v8952_v40 = vld [vmem:[#allocation7 + $0xa8] ss:$16 sps:$4 sm:$0xff]  }
  0x53   :  { %365 = vmatpush1.bf16.msra.mxu1 %v8904_v6  ;;  %745 = vmatpush1.bf16.msra.mxu0 %v8907_v8  ;;  %v8917_v14 = vld [vmem:[#allocation9 + $0x84] ss:$16 sps:$4 sm:$0xff]   ;;  %v8916_v15 = vld [vmem:[#allocation7 + $0x80] ss:$16 sps:$4 sm:$0xff]   ;;  %v8957_v41 = vld [vmem:[#allocation7 + $0x8c] ss:$16 sps:$4 sm:$0xff]  }
  0x54   :  { %366 = vmatprep.subr.bf16.mxu1 %v8908_v9  ;;  %746 = vmatprep.subr.bf16.mxu0 %v8911_v11  ;;  %v8920_v16 = vld [vmem:[#allocation7 + $0x64] ss:$16 sps:$4 sm:$0xff]   ;;  %v8919_v17 = vld [vmem:[#allocation9 + $0x80] ss:$16 sps:$4 sm:$0xff]   ;;  %v8955_v42 = vld [vmem:[#allocation7 + $0x88] ss:$16 sps:$4 sm:$0xff]  }
  0x55   :  { %v8923_v18 = vld [vmem:[#allocation9 + $0x64] ss:$16 sps:$4 sm:$0xff]   ;;  %v8922_v19 = vld [vmem:[#allocation7 + $0x60] ss:$16 sps:$4 sm:$0xff]   ;;  %v8961_v43 = vld [vmem:[#allocation7 + $0x6c] ss:$16 sps:$4 sm:$0xff]  }
  0x56   :  { %v8926_v20 = vld [vmem:[#allocation7 + $0x44] ss:$16 sps:$4 sm:$0xff]   ;;  %v8925_v21 = vld [vmem:[#allocation9 + $0x60] ss:$16 sps:$4 sm:$0xff]   ;;  %v8959_v45 = vld [vmem:[#allocation7 + $0x68] ss:$16 sps:$4 sm:$0xff]  }
  0x57   :  { %367 = vmatpush1.bf16.msra.mxu1 %v8910_v10  ;;  %747 = vmatpush1.bf16.msra.mxu0 %v8913_v13  ;;  %v8929_v22 = vld [vmem:[#allocation9 + $0x44] ss:$16 sps:$4 sm:$0xff]   ;;  %v8928_v23 = vld [vmem:[#allocation7 + $0x40] ss:$16 sps:$4 sm:$0xff]   ;;  %v8964_v46 = vld [vmem:[#allocation7 + $0x4c] ss:$16 sps:$4 sm:$0xff]  }
  0x58   :  { %368 = vmatprep.subr.bf16.mxu1 %v8914_v12  ;;  %748 = vmatprep.subr.bf16.mxu0 %v8917_v14  ;;  %v8932_v24 = vld [vmem:[#allocation7 + $0x24] ss:$16 sps:$4 sm:$0xff]   ;;  %v8931_v25 = vld [vmem:[#allocation9 + $0x40] ss:$16 sps:$4 sm:$0xff]   ;;  %v8962_v47 = vld [vmem:[#allocation7 + $0x48] ss:$16 sps:$4 sm:$0xff]  }
  0x59   :  { %v8935_v26 = vld [vmem:[#allocation9 + $0x24] ss:$16 sps:$4 sm:$0xff]   ;;  %v8934_v27 = vld [vmem:[#allocation7 + $0x20] ss:$16 sps:$4 sm:$0xff]   ;;  %v8968_v48 = vld [vmem:[#allocation7 + $0x2c] ss:$16 sps:$4 sm:$0xff]  }
  0x5a   :  { %v8938_v28 = vld [vmem:[#allocation7 + $0x4] ss:$16 sps:$4 sm:$0xff]   ;;  %v8937_v29 = vld [vmem:[#allocation9 + $0x20] ss:$16 sps:$4 sm:$0xff]   ;;  %v8965_v49 = vld [vmem:[#allocation4 + $0x18] sm:$0xff]  }
  0x5b   :  { %369 = vmatpush1.bf16.msra.mxu1 %v8916_v15  ;;  %749 = vmatpush1.bf16.msra.mxu0 %v8919_v17  ;;  %v8941_v30 = vld [vmem:[#allocation9 + $0x4] ss:$16 sps:$4 sm:$0xff]   ;;  %v8940_v31 = vld [vmem:[#allocation7] ss:$16 sps:$4 sm:$0xff]   ;;  %v8966_v50 = vld [vmem:[#allocation7 + $0x28] ss:$16 sps:$4 sm:$0xff]  }
  0x5c   :  { %370 = vmatprep.subr.bf16.mxu1 %v8920_v16  ;;  %750 = vmatprep.subr.bf16.mxu0 %v8923_v18  ;;  %v8943_v33 = vld [vmem:[#allocation9] ss:$16 sps:$4 sm:$0xff]   ;;  %v8971_v51 = vld [vmem:[#allocation7 + $0xc] ss:$16 sps:$4 sm:$0xff]   ;;  %v8969_v52 = vld [vmem:[#allocation7 + $0x8] ss:$16 sps:$4 sm:$0xff]  }
  0x5d   :  { %v8944_v34 = vld [vmem:[#allocation4] sm:$0xff]   ;;  %v8958_v44 = vld [vmem:[#allocation4 + $0x10] sm:$0xff]   ;;  %v8974_v53 = vld [vmem:[#allocation9 + $0xec] ss:$16 sps:$4 sm:$0xff]  }
  0x5e   :  { %v8972_v54 = vld [vmem:[#allocation9 + $0xe8] ss:$16 sps:$4 sm:$0xff]   ;;  %v8977_v55 = vld [vmem:[#allocation9 + $0xcc] ss:$16 sps:$4 sm:$0xff]   ;;  %v10103_v6 = vld [vmem:[#allocation10 + $0xe4] ss:$16 sps:$4 sm:$0xff]  }
  0x5f   :  { %371 = vmatpush1.bf16.msra.mxu1 %v8922_v19  ;;  %751 = vmatpush1.bf16.msra.mxu0 %v8925_v21  ;;  %v8975_v56 = vld [vmem:[#allocation9 + $0xc8] ss:$16 sps:$4 sm:$0xff]   ;;  %v8980_v57 = vld [vmem:[#allocation9 + $0xac] ss:$16 sps:$4 sm:$0xff]   ;;  %v10107_v8 = vld [vmem:[#allocation10 + $0xe0] ss:$16 sps:$4 sm:$0xff]  }
  0x60   :  { %372 = vmatprep.subr.bf16.mxu1 %v8926_v20  ;;  %752 = vmatprep.subr.bf16.mxu0 %v8929_v22  ;;  %v8978_v58 = vld [vmem:[#allocation9 + $0xa8] ss:$16 sps:$4 sm:$0xff]   ;;  %v8983_v59 = vld [vmem:[#allocation9 + $0x8c] ss:$16 sps:$4 sm:$0xff]   ;;  %v10115_v10 = vld [vmem:[#allocation10 + $0xc4] ss:$16 sps:$4 sm:$0xff]  }
  0x61   :  { %v8981_v60 = vld [vmem:[#allocation9 + $0x88] ss:$16 sps:$4 sm:$0xff]   ;;  %v8986_v61 = vld [vmem:[#allocation9 + $0x6c] ss:$16 sps:$4 sm:$0xff]   ;;  %v10119_v12 = vld [vmem:[#allocation10 + $0xc0] ss:$16 sps:$4 sm:$0xff]  }
  0x62   :  { %v8984_v62 = vld [vmem:[#allocation9 + $0x68] ss:$16 sps:$4 sm:$0xff]   ;;  %v8989_v63 = vld [vmem:[#allocation9 + $0x4c] ss:$16 sps:$4 sm:$0xff]   ;;  %v10127_v14 = vld [vmem:[#allocation10 + $0xa4] ss:$16 sps:$4 sm:$0xff]  }
  0x63   :  { %373 = vmatpush1.bf16.msra.mxu1 %v8928_v23  ;;  %753 = vmatpush1.bf16.msra.mxu0 %v8931_v25  ;;  %v8987_v1 = vld [vmem:[#allocation9 + $0x48] ss:$16 sps:$4 sm:$0xff]   ;;  %v8992_v2 = vld [vmem:[#allocation9 + $0x2c] ss:$16 sps:$4 sm:$0xff]   ;;  %v10131_v16 = vld [vmem:[#allocation10 + $0xa0] ss:$16 sps:$4 sm:$0xff]  }
  0x64   :  { %374 = vmatprep.subr.bf16.mxu1 %v8932_v24  ;;  %754 = vmatprep.subr.bf16.mxu0 %v8935_v26  ;;  %v8990_v3 = vld [vmem:[#allocation9 + $0x28] ss:$16 sps:$4 sm:$0xff]   ;;  %v8995_v4 = vld [vmem:[#allocation9 + $0xc] ss:$16 sps:$4 sm:$0xff]   ;;  %v10139_v18 = vld [vmem:[#allocation10 + $0x84] ss:$16 sps:$4 sm:$0xff]  }
  0x65   :  { %v8993_v5 = vld [vmem:[#allocation9 + $0x8] ss:$16 sps:$4 sm:$0xff]   ;;  %v10105_v7 = vld [vmem:[#allocation10 + $0xec] ss:$16 sps:$4 sm:$0xff]   ;;  %v10143_v20 = vld [vmem:[#allocation10 + $0x80] ss:$16 sps:$4 sm:$0xff]  }
  0x66   :  { %v10109_v9 = vld [vmem:[#allocation10 + $0xe8] ss:$16 sps:$4 sm:$0xff]   ;;  %v10117_v11 = vld [vmem:[#allocation10 + $0xcc] ss:$16 sps:$4 sm:$0xff]   ;;  %v10151_v22 = vld [vmem:[#allocation10 + $0x64] ss:$16 sps:$4 sm:$0xff]  }
  0x67   :  { %375 = vmatpush1.bf16.msra.mxu1 %v8934_v27  ;;  %755 = vmatpush1.bf16.msra.mxu0 %v8937_v29  ;;  %v10121_v13 = vld [vmem:[#allocation10 + $0xc8] ss:$16 sps:$4 sm:$0xff]   ;;  %v10129_v15 = vld [vmem:[#allocation10 + $0xac] ss:$16 sps:$4 sm:$0xff]   ;;  %v10155_v24 = vld [vmem:[#allocation10 + $0x60] ss:$16 sps:$4 sm:$0xff]  }
  0x68   :  { %376 = vmatprep.subr.bf16.mxu1 %v8938_v28  ;;  %756 = vmatprep.subr.bf16.mxu0 %v8941_v30  ;;  %v10133_v17 = vld [vmem:[#allocation10 + $0xa8] ss:$16 sps:$4 sm:$0xff]   ;;  %v10141_v19 = vld [vmem:[#allocation10 + $0x8c] ss:$16 sps:$4 sm:$0xff]   ;;  %v10161_v26 = vld [vmem:[#allocation10 + $0x44] ss:$16 sps:$4 sm:$0xff]  }
  0x69   :  { %v10145_v21 = vld [vmem:[#allocation10 + $0x88] ss:$16 sps:$4 sm:$0xff]   ;;  %v10153_v23 = vld [vmem:[#allocation10 + $0x6c] ss:$16 sps:$4 sm:$0xff]   ;;  %v10167_v28 = vld [vmem:[#allocation10 + $0x40] ss:$16 sps:$4 sm:$0xff]  }
  0x6a   :  { %v10157_v25 = vld [vmem:[#allocation10 + $0x68] ss:$16 sps:$4 sm:$0xff]   ;;  %v10163_v27 = vld [vmem:[#allocation10 + $0x4c] ss:$16 sps:$4 sm:$0xff]   ;;  %v10173_v30 = vld [vmem:[#allocation10 + $0x24] ss:$16 sps:$4 sm:$0xff]  }
  0x6b   :  { %377 = vmatpush1.bf16.msra.mxu1 %v8940_v31  ;;  %757 = vmatpush1.bf16.msra.mxu0 %v8943_v33  ;;  %v10169_v29 = vld [vmem:[#allocation10 + $0x48] ss:$16 sps:$4 sm:$0xff]   ;;  %v10175_v31 = vld [vmem:[#allocation10 + $0x2c] ss:$16 sps:$4 sm:$0xff]  }
  0x6c   :  { %435 = vmatprep.subr.bf16.mxu1 %v8947_v32  ;;  %1067 = vmatprep.subr.bf16.mxu0 %v10103_v6  ;;  %v10179_v32 = vld [vmem:[#allocation10 + $0x20] ss:$16 sps:$4 sm:$0xff]   ;;  %v10181_v33 = vld [vmem:[#allocation10 + $0x28] ss:$16 sps:$4 sm:$0xff]  }
  0x6e   :  { %395 = vmatmul.mubr.bf16.vlgmr.msra.gmra.mxu1 %v8944_v34  ;;  %775 = vmatmul.mubr.bf16.vlgmr.msra.gmra.mxu0 %v11859_v0 }
  0x6f   :  { %436 = vmatpush1.bf16.msra.mxu1 %v8945_v35  ;;  %404 = vmatprep.mubr.bf16.mxu1 %v11859_v0  ;;  %v10187_v35 = vld [vmem:[#allocation10 + $0xc] ss:$16 sps:$4 sm:$0xff]  }
  0x70   :  { %437 = vmatprep.subr.bf16.mxu1 %v8950_v36  ;;  %1099 = vmatprep.mubr.bf16.mxu0 %v11859_v0  ;;  %v10191_v36 = vld [vmem:[#allocation10] ss:$16 sps:$4 sm:$0xff]  }
  0x71   :  { %1068 = vmatpush1.bf16.msra.mxu0 %v10107_v8 }
  0x72   :  { %1069 = vmatprep.subr.bf16.mxu0 %v10115_v10 }
  0x73   :  { %438 = vmatpush1.bf16.msra.mxu1 %v8948_v37  ;;  %v10193_v37 = vld [vmem:[#allocation10 + $0x8] ss:$16 sps:$4 sm:$0xff]  }
  0x74   :  { %439 = vmatprep.subr.bf16.mxu1 %v8954_v38  ;;  %v10197_v38 = vld [vmem:[#allocation12 + $0xe4] ss:$16 sps:$4 sm:$0xff]  }
  0x75   :  { %1070 = vmatpush1.bf16.msra.mxu0 %v10119_v12 }
  0x76   :  { %405 = vmatmul.mubr.bf16.gmra.mxu1 %v8951_v39  ;;  %1071 = vmatprep.subr.bf16.mxu0 %v10127_v14 }
  0x77   :  { %440 = vmatpush1.bf16.msra.mxu1 %v8952_v40  ;;  %414 = vmatprep.mubr.bf16.mxu1 %v11859_v0  ;;  %v158_v40 = vlaneseq }
  0x78   :  { %441 = vmatprep.subr.bf16.mxu1 %v8957_v41 }
  0x79   :  { %1072 = vmatpush1.bf16.msra.mxu0 %v10131_v16  ;;  %v159_v41 = vshrl.u32 %v158_v40, 7 }
  0x7a   :  { %1073 = vmatprep.subr.bf16.mxu0 %v10139_v18 }
  0x7b   :  { %442 = vmatpush1.bf16.msra.mxu1 %v8955_v42  ;;  %v10205_v42 = vsub.s32 0, %v159_v41 }
  0x7c   :  { %443 = vmatprep.subr.bf16.mxu1 %v8961_v43  ;;  %v156_v43 = vld [vmem:[%s11852_s3] sm:$0xf] }
  0x7d   :  { %1074 = vmatpush1.bf16.msra.mxu0 %v10143_v20  ;;  %11989 = vst [vmem:[#allocation21_spill] sm:$0xff] %v10205_v42 }
  0x7e   :  { %415 = vmatmul.mubr.bf16.gmra.mxu1 %v8958_v44  ;;  %1075 = vmatprep.subr.bf16.mxu0 %v10151_v22 }
  0x7f   :  { %444 = vmatpush1.bf16.msra.mxu1 %v8959_v45  ;;  %424 = vmatprep.mubr.bf16.mxu1 %v11859_v0 }
  0x80   :  { %445 = vmatprep.subr.bf16.mxu1 %v8964_v46 }
  0x81   :  { %1076 = vmatpush1.bf16.msra.mxu0 %v10155_v24 }
  0x82   :  { %1077 = vmatprep.subr.bf16.mxu0 %v10161_v26 }
  0x83   :  { %446 = vmatpush1.bf16.msra.mxu1 %v8962_v47  ;;  %v161_v47 = vrot.slane %v156_v43, %v10205_v42 }
  0x84   :  { %447 = vmatprep.subr.bf16.mxu1 %v8968_v48 }
  0x85   :  { %1078 = vmatpush1.bf16.msra.mxu0 %v10167_v28 }
  0x86   :  { %425 = vmatmul.mubr.bf16.gmra.mxu1 %v8965_v49  ;;  %1079 = vmatprep.subr.bf16.mxu0 %v10173_v30 }
  0x87   :  { %448 = vmatpush1.bf16.msra.mxu1 %v8966_v50  ;;  %467 = vmatprep.mubr.bf16.mxu1 %v11859_v0  ;;  %v10211_v50 = vsub.s32 1, %v159_v41 }
  0x88   :  { %449 = vmatprep.subr.bf16.mxu1 %v8971_v51 }
  0x89   :  { %1080 = vmatpush1.bf16.msra.mxu0 %v10179_v32  ;;  %11990 = vst [vmem:[#allocation22_spill] sm:$0xff] %v10211_v50 }
  0x8b   :  { %450 = vmatpush1.bf16.msra.mxu1 %v8969_v52 }
  0x8c   :  { %783 = vmatprep.subr.bf16.mxu1 %v8974_v53 }
  0x8e   :  { %468 = vmatmul.mubr.bf16.vlgmr.msra.gmra.mxu1 %v8944_v34  ;;  %v10185_v34 = vld [vmem:[#allocation10 + $0x4] ss:$16 sps:$4 sm:$0xff]  }
  0x8f   :  { %784 = vmatpush1.bf16.msra.mxu1 %v8972_v54  ;;  %477 = vmatprep.mubr.bf16.mxu1 %v11859_v0 }
  0x90   :  { %785 = vmatprep.subr.bf16.mxu1 %v8977_v55  ;;  %1081 = vmatprep.subr.bf16.mxu0 %v10185_v34 }
  0x91   :  { %1082 = vmatpush1.bf16.msra.mxu0 %v10191_v36 }
  0x92   :  { %1341 = vmatprep.subr.bf16.mxu0 %v10197_v38 }
  0x93   :  { %786 = vmatpush1.bf16.msra.mxu1 %v8975_v56  ;;  %v10218_v56 = vrot.slane %v156_v43, %v10211_v50 }
  0x94   :  { %787 = vmatprep.subr.bf16.mxu1 %v8980_v57 }
  0x95   :  { %11992 = vst [vmem:[#allocation24_spill] sm:$0xff] %v10218_v56 }
  0x96   :  { %478 = vmatmul.mubr.bf16.gmra.mxu1 %v8951_v39  ;;  %v10199_v39 = vld [vmem:[#allocation12 + $0xec] ss:$16 sps:$4 sm:$0xff]  }
  0x97   :  { %788 = vmatpush1.bf16.msra.mxu1 %v8978_v58  ;;  %487 = vmatprep.mubr.bf16.mxu1 %v11859_v0 }
  0x98   :  { %789 = vmatprep.subr.bf16.mxu1 %v8983_v59 }
  0x9b   :  { %790 = vmatpush1.bf16.msra.mxu1 %v8981_v60 }
  0x9c   :  { %791 = vmatprep.subr.bf16.mxu1 %v8986_v61 }
  0x9e   :  { %488 = vmatmul.mubr.bf16.gmra.mxu1 %v8958_v44 }
  0x9f   :  { %792 = vmatpush1.bf16.msra.mxu1 %v8984_v62  ;;  %497 = vmatprep.mubr.bf16.mxu1 %v11859_v0 }
  0xa0   :  { %793 = vmatprep.subr.bf16.mxu1 %v8989_v63 }
  0xa3   :  { %794 = vmatpush1.bf16.msra.mxu1 %v8987_v1 }
  0xa4   :  { %795 = vmatprep.subr.bf16.mxu1 %v8992_v2 }
  0xa6   :  { %498 = vmatmul.mubr.bf16.gmra.mxu1 %v8965_v49 }
  0xa7   :  { %796 = vmatpush1.bf16.msra.mxu1 %v8990_v3  ;;  %815 = vmatprep.mubr.bf16.mxu1 %v11859_v0 }
  0xa8   :  { %797 = vmatprep.subr.bf16.mxu1 %v8995_v4 }
  0xab   :  { %798 = vmatpush1.bf16.msra.mxu1 %v8993_v5 }
  0xac   :  { %1108 = vmatprep.subr.bf16.mxu1 %v10105_v7 }
  0xae   :  { %816 = vmatmul.mubr.bf16.vlgmr.msra.gmra.mxu1 %v11859_v0 }
  0xaf   :  { %1140 = vmatprep.mubr.bf16.mxu1 %v11859_v0  ;;  %1109 = vmatpush1.bf16.msra.mxu1 %v10109_v9  ;;  %v10247_v0 = vsub.s32 2, %v159_v41 }
  0xb0   :  { %1110 = vmatprep.subr.bf16.mxu1 %v10117_v11 }
  0xb3   :  { %1111 = vmatpush1.bf16.msra.mxu1 %v10121_v13 }
  0xb4   :  { %1112 = vmatprep.subr.bf16.mxu1 %v10129_v15 }
  0xb7   :  { %1113 = vmatpush1.bf16.msra.mxu1 %v10133_v17 }
  0xb8   :  { %1114 = vmatprep.subr.bf16.mxu1 %v10141_v19 }
  0xbb   :  { %1115 = vmatpush1.bf16.msra.mxu1 %v10145_v21 }
  0xbc   :  { %1116 = vmatprep.subr.bf16.mxu1 %v10153_v23 }
  0xbf   :  { %1117 = vmatpush1.bf16.msra.mxu1 %v10157_v25 }
  0xc0   :  { %1118 = vmatprep.subr.bf16.mxu1 %v10163_v27 }
  0xc3   :  { %1119 = vmatpush1.bf16.msra.mxu1 %v10169_v29 }
  0xc4   :  { %1120 = vmatprep.subr.bf16.mxu1 %v10175_v31 }
  0xc7   :  { %1121 = vmatpush1.bf16.msra.mxu1 %v10181_v33 }
  0xc8   :  { %1122 = vmatprep.subr.bf16.mxu1 %v10187_v35 }
  0xcb   :  { %1123 = vmatpush1.bf16.msra.mxu1 %v10193_v37 }
  0xcc   :  { %1382 = vmatprep.subr.bf16.mxu1 %v10199_v39 }
 0x12e   :  { %v396_v44 = vpop.f32.mrf.mxu1  ;;  %v776_v46 = vpop.f32.mrf.mxu0 }
 0x130   :  { %v398_v45 = vpop.f32.mrf.mxu1  ;;  %v778_v49 = vpop.f32.mrf.mxu0 }
 0x132   :  { %v400_v48 = vpop.f32.mrf.mxu1  ;;  %v780_v53 = vpop.f32.mrf.mxu0 }
 0x133   :  { %v10213_v51 = vadd.f32 %v400_v48, %v161_v47 }
 0x134   :  { %v10215_v52 = vpop.f32.mrf.mxu1  ;;  %v781_v55 = vpop.f32.mrf.mxu0 }
 0x135   :  { %11991 = vst [vmem:[#allocation23_spill] sm:$0xff] %v10213_v51 }
 0x136   :  { %v406_v54 = vpop.f32.mrf.mxu1 }
 0x137   :  { %v10220_v57 = vadd.f32 %v406_v54, %v161_v47 }
 0x138   :  { %v408_v58 = vpop.f32.mrf.mxu1 }
 0x139   :  { %11993 = vst [vmem:[#allocation25_spill] sm:$0xff] %v10220_v57  ;;  %v10223_v59 = vadd.f32 %v408_v58, %v10218_v56 }
 0x13a   :  { %v410_v60 = vpop.f32.mrf.mxu1 }
 0x13b   :  { %11994 = vst [vmem:[#allocation26_spill] sm:$0xff] %v10223_v59  ;;  %v10225_v61 = vadd.f32 %v410_v60, %v161_v47 }
 0x13c   :  { %v10227_v62 = vpop.f32.mrf.mxu1 }
 0x13d   :  { %11995 = vst [vmem:[#allocation27_spill] sm:$0xff] %v10225_v61  ;;  %11996 = vst [vmem:[#allocation28_spill] sm:$0xff] %v10227_v62 }
 0x13e   :  { %v416_v63 = vpop.f32.mrf.mxu1 }
 0x13f   :  { %v10229_v1 = vadd.f32 %v416_v63, %v161_v47 }
 0x140   :  { %v418_v2 = vpop.f32.mrf.mxu1 }
 0x141   :  { %11997 = vst [vmem:[#allocation29_spill] sm:$0xff] %v10229_v1  ;;  %v10232_v3 = vadd.f32 %v418_v2, %v10218_v56 }
 0x142   :  { %v420_v4 = vpop.f32.mrf.mxu1 }
 0x143   :  { %11998 = vst [vmem:[#allocation30_spill] sm:$0xff] %v10232_v3  ;;  %v10234_v5 = vadd.f32 %v420_v4, %v161_v47  ;;  %v10249_v3 = vsub.s32 3, %v159_v41 }
 0x144   :  { %v10236_v40 = vpop.f32.mrf.mxu1 }
 0x145   :  { %11999 = vst [vmem:[#allocation31_spill] sm:$0xff] %v10234_v5  ;;  %12000 = vst [vmem:[#allocation32_spill] sm:$0xff] %v10236_v40  ;;  %v397_v5 = vadd.f32 %v396_v44, %v161_v47  ;;  %v169_v40 = vrot.slane %v156_v43, %v10247_v0 }
 0x146   :  { %v426_v48 = vpop.f32.mrf.mxu1 }
 0x147   :  { %v10238_v53 = vadd.f32 %v426_v48, %v161_v47  ;;  %v399_v48 = vadd.f32 %v398_v45, %v10218_v56 }
 0x148   :  { %v428_v54 = vpop.f32.mrf.mxu1 }
 0x149   :  { %12001 = vst [vmem:[#allocation33_spill] sm:$0xff] %v10238_v53  ;;  %v10241_v55 = vadd.f32 %v428_v54, %v10218_v56  ;;  %v173_v54 = vrot.slane %v156_v43, %v10249_v3 }
 0x14a   :  { %v430_v58 = vpop.f32.mrf.mxu1 }
 0x14b   :  { %12002 = vst [vmem:[#allocation34_spill] sm:$0xff] %v10241_v55  ;;  %v10243_v60 = vadd.f32 %v430_v58, %v161_v47 }
 0x14c   :  { %v10245_v63 = vpop.f32.mrf.mxu1 }
 0x14d   :  { %12003 = vst [vmem:[#allocation35_spill] sm:$0xff] %v10243_v60  ;;  %12004 = vst [vmem:[#allocation36_spill] sm:$0xff] %v10245_v63  ;;  %v824_v60 = vadd.f32 %v776_v46, %v397_v5  ;;  %v825_v63 = vadd.f32 %v778_v49, %v399_v48 }
 0x14e   :  { %v469_v2 = vpop.f32.mrf.mxu1 }
 0x14f   :  { %v8081_v59 = vmul.f32 -1.442695, %v824_v60  ;;  %v8082_v47 = vmul.f32 -1.442695, %v825_v63 }
 0x150   :  { %v471_v4 = vpop.f32.mrf.mxu1 }
 0x151   :  { %9572 = vpow2.f32 %v8081_v59 }
 0x152   :  { %v473_v53 = vpop.f32.mrf.mxu1  ;;  %9574 = vpow2.f32 %v8082_v47 }
 0x153   :  { %v10254_v55 = vadd.f32 %v473_v53, %v169_v40 }
 0x154   :  { %v475_v58 = vpop.f32.mrf.mxu1 }
 0x155   :  { %v10256_v1 = vadd.f32 %v475_v58, %v173_v54 }
 0x156   :  { %v479_v61 = vpop.f32.mrf.mxu1 }
 0x157   :  { %v10258_v62 = vadd.f32 %v479_v61, %v169_v40 }
 0x158   :  { %v481_v41 = vpop.f32.mrf.mxu1 }
 0x159   :  { %12005 = vst [vmem:[#allocation37_spill] sm:$0xff] %v10258_v62  ;;  %v10260_v44 = vadd.f32 %v481_v41, %v173_v54 }
 0x15a   :  { %v483_v57 = vpop.f32.mrf.mxu1 }
 0x15b   :  { %12006 = vst [vmem:[#allocation38_spill] sm:$0xff] %v10260_v44  ;;  %v10262_v45 = vadd.f32 %v483_v57, %v169_v40 }
 0x15c   :  { %v485_v51 = vpop.f32.mrf.mxu1 }
 0x15d   :  { %12007 = vst [vmem:[#allocation39_spill] sm:$0xff] %v10262_v45  ;;  %v10264_v43 = vadd.f32 %v485_v51, %v173_v54 }
 0x15e   :  { %v489_v46 = vpop.f32.mrf.mxu1  ;;  %v9573_v51 = vpop.eup %9572 }
 0x15f   :  { %12008 = vst [vmem:[#allocation40_spill] sm:$0xff] %v10264_v43  ;;  %v10266_v5 = vadd.f32 %v489_v46, %v169_v40  ;;  %v9575_v43 = vpop.eup %9574 }
 0x160   :  { %v491_v49 = vpop.f32.mrf.mxu1 }
 0x161   :  { %12009 = vst [vmem:[#allocation41_spill] sm:$0xff] %v10266_v5  ;;  %v10268_v53 = vadd.f32 %v491_v49, %v173_v54  ;;  %v837_v49 = vadd.f32 1.0, %v9573_v51 }
 0x162   :  { %v493_v61 = vpop.f32.mrf.mxu1 }
 0x163   :  { %12010 = vst [vmem:[#allocation42_spill] sm:$0xff] %v10268_v53  ;;  %v10270_v48 = vadd.f32 %v493_v61, %v169_v40  ;;  %v470_v53 = vadd.f32 %v469_v2, %v169_v40  ;;  %v838_v61 = vadd.f32 1.0, %v9575_v43  ;;  %9576 = vrcp.f32 %v837_v49  ;;  %v10305_v49 = vld [vmem:[#allocation12 + $0xa4] ss:$16 sps:$4 sm:$0xff]  }
 0x164   :  { %v495_v60 = vpop.f32.mrf.mxu1 }
 0x165   :  { %12011 = vst [vmem:[#allocation43_spill] sm:$0xff] %v10270_v48  ;;  %v10272_v58 = vadd.f32 %v495_v60, %v173_v54  ;;  %v472_v60 = vadd.f32 %v471_v4, %v173_v54  ;;  %9578 = vrcp.f32 %v838_v61  ;;  %v10307_v61 = vld [vmem:[#allocation12 + $0xac] ss:$16 sps:$4 sm:$0xff]  }
 0x166   :  { %v499_v63 = vpop.f32.mrf.mxu1 }
 0x167   :  { %12012 = vst [vmem:[#allocation44_spill] sm:$0xff] %v10272_v58  ;;  %v10274_v57 = vadd.f32 %v499_v63, %v169_v40 }
 0x168   :  { %v501_v41 = vpop.f32.mrf.mxu1 }
 0x169   :  { %12013 = vst [vmem:[#allocation45_spill] sm:$0xff] %v10274_v57  ;;  %v10276_v59 = vadd.f32 %v501_v41, %v173_v54 }
 0x16a   :  { %v503_v47 = vpop.f32.mrf.mxu1 }
 0x16b   :  { %12014 = vst [vmem:[#allocation46_spill] sm:$0xff] %v10276_v59  ;;  %v10278_v46 = vadd.f32 %v503_v47, %v169_v40 }
 0x16c   :  { %v505_v5 = vpop.f32.mrf.mxu1 }
 0x16d   :  { %12015 = vst [vmem:[#allocation47_spill] sm:$0xff] %v10278_v46  ;;  %v10280_v45 = vadd.f32 %v505_v5, %v173_v54 }
 0x16e   :  { %v817_v48 = vpop.f32.mrf.mxu1 }
 0x16f   :  { %12016 = vst [vmem:[#allocation48_spill] sm:$0xff] %v10280_v45  ;;  %v826_v58 = vadd.f32 %v817_v48, %v470_v53  ;;  %v10285_v53 = vld [vmem:[#allocation12 + $0xe0] ss:$16 sps:$4 sm:$0xff]   ;;  %v10287_v48 = vld [vmem:[#allocation12 + $0xe8] ss:$16 sps:$4 sm:$0xff]  }
 0x170   :  { %v819_v44 = vpop.f32.mrf.mxu1  ;;  %v9577_v47 = vpop.eup %9576  ;;  %v10343_v45 = vld [vmem:[#allocation12 + $0x44] ss:$16 sps:$4 sm:$0xff]  }
 0x171   :  { %v8083_v63 = vmul.f32 -1.442695, %v826_v58  ;;  %v827_v57 = vadd.f32 %v819_v44, %v472_v60  ;;  %v12017_v60 = vmov 0   ;;  %12026 = vst [vmem:[#allocation57_spill] sm:$0xff] %v10343_v45 }
 0x172   :  { %v821_v41 = vpop.f32.mrf.mxu1  ;;  %v9579_v46 = vpop.eup %9578 }
 0x173   :  { %9580 = vpow2.f32 %v8083_v63  ;;  %v847_v2 = vmul.f32 0.0, %v9579_v46  ;;  %v10301_v46 = vld [vmem:[#allocation12 + $0xc8] ss:$16 sps:$4 sm:$0xff]   ;;  %v10313_v63 = vld [vmem:[#allocation12 + $0xa0] ss:$16 sps:$4 sm:$0xff]  }
 0x174   :  { %9582 = vtanh.f32 %v827_v57  ;;  %v822_v59 = vpop.f32.mrf.mxu1  ;;  %v10291_v57 = vld [vmem:[#allocation12 + $0xc4] ss:$16 sps:$4 sm:$0xff]   ;;  %v10315_v41 = vld [vmem:[#allocation12 + $0xa8] ss:$16 sps:$4 sm:$0xff]  }
 0x175   :  { %v10293_v59 = vld [vmem:[#allocation12 + $0xcc] ss:$16 sps:$4 sm:$0xff]  }
 0x180   :  { %v9581_v62 = vpop.eup %9580 }
 0x181   :  { %v9583_v51 = vpop.eup %9582  ;;  %v839_v40 = vadd.f32 1.0, %v9581_v62  ;;  %v10299_v62 = vld [vmem:[#allocation12 + $0xc0] ss:$16 sps:$4 sm:$0xff]  }
 0x182   :  { %v848_v5 = vmul.f32 %v9583_v51, %v9577_v47  ;;  %v10319_v47 = vld [vmem:[#allocation12 + $0x84] ss:$16 sps:$4 sm:$0xff]   ;;  %v10321_v51 = vld [vmem:[#allocation12 + $0x8c] ss:$16 sps:$4 sm:$0xff]  }
 0x183   :  { %9584 = vrcp.f32 %v839_v40  ;;  %12018 = vst [vmem:[#allocation49_spill] sm:$0xff] %v10319_v47  ;;  %12019 = vst [vmem:[#allocation50_spill] sm:$0xff] %v10321_v51  ;;  %v10325_v40 = vld [vmem:[#allocation12 + $0x80] ss:$16 sps:$4 sm:$0xff]  }
 0x184   :  { %v10282_v43 = vadd.f32 %v848_v5, %v847_v2  ;;  %12020 = vst [vmem:[#allocation51_spill] sm:$0xff] %v10325_v40  ;;  %v10327_v2 = vld [vmem:[#allocation12 + $0x88] ss:$16 sps:$4 sm:$0xff]   ;;  %v10331_v5 = vld [vmem:[#allocation12 + $0x64] ss:$16 sps:$4 sm:$0xff]  }
 0x185   :  { %12021 = vst [vmem:[#allocation52_spill] sm:$0xff] %v10327_v2  ;;  %12022 = vst [vmem:[#allocation53_spill] sm:$0xff] %v10331_v5 }
 0x186   :  { %9586 = vtanh.f32 %v10282_v43 }
 0x190   :  { %v9585_v4 = vpop.eup %9584 }
 0x193   :  { %v9587_v54 = vpop.eup %9586 }
 0x194   :  { %v851_v44 = vmul.f32 %v9587_v54, %v9585_v4  ;;  %v10333_v4 = vld [vmem:[#allocation12 + $0x6c] ss:$16 sps:$4 sm:$0xff]   ;;  %v10337_v54 = vld [vmem:[#allocation12 + $0x60] ss:$16 sps:$4 sm:$0xff]  }
 0x195   :  { %12023 = vst [vmem:[#allocation54_spill] sm:$0xff] %v10333_v4  ;;  %12024 = vst [vmem:[#allocation55_spill] sm:$0xff] %v10337_v54 }
 0x196   :  { %v10289_v58 = vpack.c.bf16 %v851_v44, %v851_v44  ;;  %v10339_v44 = vld [vmem:[#allocation12 + $0x68] ss:$16 sps:$4 sm:$0xff]  }
 0x197   :  { %12025 = vst [vmem:[#allocation56_spill] sm:$0xff] %v10339_v44 }
 0x198   :  { %1100 = vmatmul.mubr.bf16.vlgmr.msra.gmra.mxu0 %v10289_v58  ;;  %1141 = vmatmul.mubr.bf16.vlgmr.msra.gmra.mxu1 %v10289_v58 }
 0x199   :  { %1342 = vmatpush1.bf16.msra.mxu0 %v10285_v53  ;;  %1383 = vmatpush1.bf16.msra.mxu1 %v10287_v48 }
 0x19a   :  { %1343 = vmatprep.subr.bf16.mxu0 %v10291_v57  ;;  %1384 = vmatprep.subr.bf16.mxu1 %v10293_v59 }
 0x19b   :  { %1373 = vmatprep.mubr.bf16.mxu0 %v12017_v60  ;;  %1414 = vmatprep.mubr.bf16.mxu1 %v12017_v60 }
 0x19d   :  { %1344 = vmatpush1.bf16.msra.mxu0 %v10299_v62  ;;  %1385 = vmatpush1.bf16.msra.mxu1 %v10301_v46 }
 0x19e   :  { %1345 = vmatprep.subr.bf16.mxu0 %v10305_v49  ;;  %1386 = vmatprep.subr.bf16.mxu1 %v10307_v61 }
 0x1a1   :  { %1346 = vmatpush1.bf16.msra.mxu0 %v10313_v63  ;;  %1387 = vmatpush1.bf16.msra.mxu1 %v10315_v41 }
 0x1a2   :  { %1347 = vmatprep.subr.bf16.mxu0 %v10319_v47  ;;  %1388 = vmatprep.subr.bf16.mxu1 %v10321_v51  ;;  %v10345_v47 = vld [vmem:[#allocation12 + $0x4c] ss:$16 sps:$4 sm:$0xff]   ;;  %v10349_v51 = vld [vmem:[#allocation12 + $0x40] ss:$16 sps:$4 sm:$0xff]  }
 0x1a3   :  { %12027 = vst [vmem:[#allocation58_spill] sm:$0xff] %v10345_v47  ;;  %12028 = vst [vmem:[#allocation59_spill] sm:$0xff] %v10349_v51 }
 0x1a5   :  { %1348 = vmatpush1.bf16.msra.mxu0 %v10325_v40  ;;  %1389 = vmatpush1.bf16.msra.mxu1 %v10327_v2  ;;  %v10351_v40 = vld [vmem:[#allocation12 + $0x48] ss:$16 sps:$4 sm:$0xff]   ;;  %v10355_v2 = vld [vmem:[#allocation12 + $0x24] ss:$16 sps:$4 sm:$0xff]  }
 0x1a6   :  { %1349 = vmatprep.subr.bf16.mxu0 %v10331_v5  ;;  %1390 = vmatprep.subr.bf16.mxu1 %v10333_v4  ;;  %12029 = vst [vmem:[#allocation60_spill] sm:$0xff] %v10351_v40  ;;  %12030 = vst [vmem:[#allocation61_spill] sm:$0xff] %v10355_v2  ;;  %v10357_v5 = vld [vmem:[#allocation12 + $0x2c] ss:$16 sps:$4 sm:$0xff]   ;;  %v10361_v4 = vld [vmem:[#allocation12 + $0x20] ss:$16 sps:$4 sm:$0xff]  }
 0x1a7   :  { %12031 = vst [vmem:[#allocation62_spill] sm:$0xff] %v10357_v5  ;;  %12032 = vst [vmem:[#allocation63_spill] sm:$0xff] %v10361_v4 }
 0x1a9   :  { %1350 = vmatpush1.bf16.msra.mxu0 %v10337_v54  ;;  %1391 = vmatpush1.bf16.msra.mxu1 %v10339_v44  ;;  %v10363_v54 = vld [vmem:[#allocation12 + $0x28] ss:$16 sps:$4 sm:$0xff]   ;;  %v10367_v44 = vld [vmem:[#allocation12 + $0x4] ss:$16 sps:$4 sm:$0xff]  }
 0x1aa   :  { %1351 = vmatprep.subr.bf16.mxu0 %v10343_v45  ;;  %1392 = vmatprep.subr.bf16.mxu1 %v10345_v47  ;;  %12033 = vst [vmem:[#allocation64_spill] sm:$0xff] %v10363_v54  ;;  %12034 = vst [vmem:[#allocation65_spill] sm:$0xff] %v10367_v44  ;;  %v10369_v45 = vld [vmem:[#allocation12 + $0xc] ss:$16 sps:$4 sm:$0xff]   ;;  %v10373_v47 = vld [vmem:[#allocation12] ss:$16 sps:$4 sm:$0xff]  }
 0x1ab   :  { %12035 = vst [vmem:[#allocation66_spill] sm:$0xff] %v10369_v45  ;;  %12036 = vst [vmem:[#allocation67_spill] sm:$0xff] %v10373_v47 }
 0x1ad   :  { %1352 = vmatpush1.bf16.msra.mxu0 %v10349_v51  ;;  %1393 = vmatpush1.bf16.msra.mxu1 %v10351_v40  ;;  %v10375_v51 = vld [vmem:[#allocation12 + $0x8] ss:$16 sps:$4 sm:$0xff]   ;;  %v10379_v40 = vld [vmem:[#allocation9 + $0xe4] ss:$16 sps:$4 sm:$0xff]  }
 0x1ae   :  { %1353 = vmatprep.subr.bf16.mxu0 %v10355_v2  ;;  %1394 = vmatprep.subr.bf16.mxu1 %v10357_v5  ;;  %12037 = vst [vmem:[#allocation68_spill] sm:$0xff] %v10375_v51  ;;  %12038 = vst [vmem:[#allocation69_spill] sm:$0xff] %v10379_v40  ;;  %v10383_v5 = vld [vmem:[#allocation9 + $0xe0] ss:$16 sps:$4 sm:$0xff]   ;;  %v9834_v2 = vld [vmem:[#allocation9 + $0x8c] ss:$16 sps:$4 sm:$0xff]  }
 0x1af   :  { %12039 = vst [vmem:[#allocation70_spill] sm:$0xff] %v10383_v5 }
 0x1b1   :  { %1354 = vmatpush1.bf16.msra.mxu0 %v10361_v4  ;;  %1395 = vmatpush1.bf16.msra.mxu1 %v10363_v54  ;;  %v9828_v4 = vld [vmem:[#allocation9 + $0xec] ss:$16 sps:$4 sm:$0xff]   ;;  %v10386_v54 = vld [vmem:[#allocation9 + $0xc4] ss:$16 sps:$4 sm:$0xff]  }
 0x1b2   :  { %1355 = vmatprep.subr.bf16.mxu0 %v10367_v44  ;;  %1396 = vmatprep.subr.bf16.mxu1 %v10369_v45  ;;  %12040 = vst [vmem:[#allocation71_spill] sm:$0xff] %v10386_v54  ;;  %v9829_v45 = vld [vmem:[#allocation9 + $0xe8] ss:$16 sps:$4 sm:$0xff]   ;;  %v10391_v44 = vld [vmem:[#allocation9 + $0xc0] ss:$16 sps:$4 sm:$0xff]  }
 0x1b3   :  { %12041 = vst [vmem:[#allocation72_spill] sm:$0xff] %v10391_v44 }
 0x1b5   :  { %1356 = vmatpush1.bf16.msra.mxu0 %v10373_v47  ;;  %1397 = vmatpush1.bf16.msra.mxu1 %v10375_v51  ;;  %v9830_v51 = vld [vmem:[#allocation9 + $0xcc] ss:$16 sps:$4 sm:$0xff]   ;;  %v10394_v47 = vld [vmem:[#allocation9 + $0xa4] ss:$16 sps:$4 sm:$0xff]  }
 0x1b6   :  { %1649 = vmatprep.subr.bf16.mxu0 %v10379_v40  ;;  %1690 = vmatprep.subr.bf16.mxu1 %v9828_v4  ;;  %12042 = vst [vmem:[#allocation73_spill] sm:$0xff] %v10394_v47  ;;  %v9831_v4 = vld [vmem:[#allocation9 + $0xc8] ss:$16 sps:$4 sm:$0xff]   ;;  %v10399_v40 = vld [vmem:[#allocation9 + $0xa0] ss:$16 sps:$4 sm:$0xff]  }
 0x1b7   :  { %12043 = vst [vmem:[#allocation74_spill] sm:$0xff] %v10399_v40 }
 0x1b8   :  { %1374 = vmatmul.mubr.bf16.vlgmr.msra.gmra.mxu0 %v12017_v60  ;;  %1415 = vmatmul.mubr.bf16.vlgmr.msra.gmra.mxu1 %v12017_v60 }
 0x1b9   :  { %1650 = vmatpush1.bf16.msra.mxu0 %v10383_v5  ;;  %1691 = vmatpush1.bf16.msra.mxu1 %v9829_v45  ;;  %v9832_v45 = vld [vmem:[#allocation9 + $0xac] ss:$16 sps:$4 sm:$0xff]   ;;  %v10402_v5 = vld [vmem:[#allocation9 + $0x84] ss:$16 sps:$4 sm:$0xff]  }
 0x1ba   :  { %1651 = vmatprep.subr.bf16.mxu0 %v10386_v54  ;;  %1692 = vmatprep.subr.bf16.mxu1 %v9830_v51  ;;  %12044 = vst [vmem:[#allocation75_spill] sm:$0xff] %v10402_v5  ;;  %v9833_v51 = vld [vmem:[#allocation9 + $0xa8] ss:$16 sps:$4 sm:$0xff]   ;;  %v10405_v54 = vld [vmem:[#allocation9 + $0x80] ss:$16 sps:$4 sm:$0xff]  }
 0x1bb   :  { %1681 = vmatprep.mubr.bf16.mxu0 %v12017_v60  ;;  %1722 = vmatprep.mubr.bf16.mxu1 %v12017_v60  ;;  %12045 = vst [vmem:[#allocation76_spill] sm:$0xff] %v10405_v54 }
 0x1bd   :  { %1652 = vmatpush1.bf16.msra.mxu0 %v10391_v44  ;;  %1693 = vmatpush1.bf16.msra.mxu1 %v9831_v4  ;;  %v10408_v44 = vld [vmem:[#allocation9 + $0x64] ss:$16 sps:$4 sm:$0xff]   ;;  %v9835_v4 = vld [vmem:[#allocation9 + $0x88] ss:$16 sps:$4 sm:$0xff]  }
 0x1be   :  { %1653 = vmatprep.subr.bf16.mxu0 %v10394_v47  ;;  %1694 = vmatprep.subr.bf16.mxu1 %v9832_v45  ;;  %12046 = vst [vmem:[#allocation77_spill] sm:$0xff] %v10408_v44  ;;  %v10411_v47 = vld [vmem:[#allocation9 + $0x60] ss:$16 sps:$4 sm:$0xff]   ;;  %v9836_v45 = vld [vmem:[#allocation9 + $0x6c] ss:$16 sps:$4 sm:$0xff]  }
 0x1bf   :  { %12047 = vst [vmem:[#allocation78_spill] sm:$0xff] %v10411_v47 }
 0x1c1   :  { %1654 = vmatpush1.bf16.msra.mxu0 %v10399_v40  ;;  %1695 = vmatpush1.bf16.msra.mxu1 %v9833_v51  ;;  %v10414_v40 = vld [vmem:[#allocation9 + $0x44] ss:$16 sps:$4 sm:$0xff]   ;;  %v9837_v51 = vld [vmem:[#allocation9 + $0x68] ss:$16 sps:$4 sm:$0xff]  }
 0x1c2   :  { %1655 = vmatprep.subr.bf16.mxu0 %v10402_v5  ;;  %1696 = vmatprep.subr.bf16.mxu1 %v9834_v2  ;;  %12048 = vst [vmem:[#allocation79_spill] sm:$0xff] %v10414_v40  ;;  %v10417_v5 = vld [vmem:[#allocation9 + $0x40] ss:$16 sps:$4 sm:$0xff]   ;;  %v9838_v2 = vld [vmem:[#allocation9 + $0x4c] ss:$16 sps:$4 sm:$0xff]  }
 0x1c5   :  { %1656 = vmatpush1.bf16.msra.mxu0 %v10405_v54  ;;  %1697 = vmatpush1.bf16.msra.mxu1 %v9835_v4  ;;  %v10420_v54 = vld [vmem:[#allocation9 + $0x24] ss:$16 sps:$4 sm:$0xff]   ;;  %v9839_v4 = vld [vmem:[#allocation9 + $0x48] ss:$16 sps:$4 sm:$0xff]  }
 0x1c6   :  { %1657 = vmatprep.subr.bf16.mxu0 %v10408_v44  ;;  %1698 = vmatprep.subr.bf16.mxu1 %v9836_v45  ;;  %v10423_v44 = vld [vmem:[#allocation9 + $0x20] ss:$16 sps:$4 sm:$0xff]   ;;  %v9840_v45 = vld [vmem:[#allocation9 + $0x2c] ss:$16 sps:$4 sm:$0xff]  }
 0x1c9   :  { %1658 = vmatpush1.bf16.msra.mxu0 %v10411_v47  ;;  %1699 = vmatpush1.bf16.msra.mxu1 %v9837_v51  ;;  %v10426_v47 = vld [vmem:[#allocation9 + $0x4] ss:$16 sps:$4 sm:$0xff]   ;;  %v9841_v51 = vld [vmem:[#allocation9 + $0x28] ss:$16 sps:$4 sm:$0xff]  }
 0x1ca   :  { %1659 = vmatprep.subr.bf16.mxu0 %v10414_v40  ;;  %1700 = vmatprep.subr.bf16.mxu1 %v9838_v2  ;;  %v10429_v40 = vld [vmem:[#allocation9] ss:$16 sps:$4 sm:$0xff]   ;;  %v9842_v2 = vld [vmem:[#allocation9 + $0xc] ss:$16 sps:$4 sm:$0xff]  }
 0x1cd   :  { %1660 = vmatpush1.bf16.msra.mxu0 %v10417_v5  ;;  %1701 = vmatpush1.bf16.msra.mxu1 %v9839_v4  ;;  %v9843_v4 = vld [vmem:[#allocation9 + $0x8] ss:$16 sps:$4 sm:$0xff]  }
 0x1ce   :  { %1661 = vmatprep.subr.bf16.mxu0 %v10420_v54  ;;  %1702 = vmatprep.subr.bf16.mxu1 %v9840_v45 }
 0x1d1   :  { %1662 = vmatpush1.bf16.msra.mxu0 %v10423_v44  ;;  %1703 = vmatpush1.bf16.msra.mxu1 %v9841_v51 }
 0x1d2   :  { %1663 = vmatprep.subr.bf16.mxu0 %v10426_v47  ;;  %1704 = vmatprep.subr.bf16.mxu1 %v9842_v2 }
 0x1d5   :  { %1664 = vmatpush1.bf16.msra.mxu0 %v10429_v40  ;;  %1705 = vmatpush1.bf16.msra.mxu1 %v9843_v4 }
 0x1d6   :  { %1974 = vmatprep.subr.bf16.mxu0 %v10103_v6  ;;  %2015 = vmatprep.subr.bf16.mxu1 %v10105_v7 }
 0x1d8   :  { %1682 = vmatmul.mubr.bf16.vlgmr.msra.gmra.mxu0 %v10289_v58  ;;  %1723 = vmatmul.mubr.bf16.vlgmr.msra.gmra.mxu1 %v10289_v58 }
 0x1d9   :  { %1975 = vmatpush1.bf16.msra.mxu0 %v10107_v8  ;;  %2016 = vmatpush1.bf16.msra.mxu1 %v10109_v9 }
 0x1da   :  { %1976 = vmatprep.subr.bf16.mxu0 %v10115_v10  ;;  %2017 = vmatprep.subr.bf16.mxu1 %v10117_v11 }
 0x1db   :  { %2006 = vmatprep.mubr.bf16.mxu0 %v12017_v60  ;;  %2047 = vmatprep.mubr.bf16.mxu1 %v12017_v60 }
 0x1dd   :  { %1977 = vmatpush1.bf16.msra.mxu0 %v10119_v12  ;;  %2018 = vmatpush1.bf16.msra.mxu1 %v10121_v13 }
 0x1de   :  { %1978 = vmatprep.subr.bf16.mxu0 %v10127_v14  ;;  %2019 = vmatprep.subr.bf16.mxu1 %v10129_v15  ;;  %v885_v14 = vld [vmem:[%s11855_s6] sm:$0xf]  ;;  %v10007_v15 = vmov 0.0  }
 0x1df   :  { %542 = vst [vmem:[#allocation3 + $0x10] sm:$0xff] %v10007_v15  ;;  %543 = vst [vmem:[#allocation3 + $0x18] sm:$0xff] %v10007_v15 }
 0x1e0   :  { %544 = vst [vmem:[#allocation3 + $0x20] sm:$0xff] %v10007_v15  ;;  %545 = vst [vmem:[#allocation3 + $0x28] sm:$0xff] %v10007_v15 }
 0x1e1   :  { %1979 = vmatpush1.bf16.msra.mxu0 %v10131_v16  ;;  %2020 = vmatpush1.bf16.msra.mxu1 %v10133_v17  ;;  %v890_v16 = vrot.slane %v885_v14, %v10205_v42  ;;  %v894_v17 = vrot.slane %v885_v14, %v10211_v50 }
 0x1e2   :  { %1980 = vmatprep.subr.bf16.mxu0 %v10139_v18  ;;  %2021 = vmatprep.subr.bf16.mxu1 %v10141_v19 }
 0x1e5   :  { %1981 = vmatpush1.bf16.msra.mxu0 %v10143_v20  ;;  %2022 = vmatpush1.bf16.msra.mxu1 %v10145_v21 }
 0x1e6   :  { %1982 = vmatprep.subr.bf16.mxu0 %v10151_v22  ;;  %2023 = vmatprep.subr.bf16.mxu1 %v10153_v23 }
 0x1e9   :  { %1983 = vmatpush1.bf16.msra.mxu0 %v10155_v24  ;;  %2024 = vmatpush1.bf16.msra.mxu1 %v10157_v25 }
 0x1ea   :  { %1984 = vmatprep.subr.bf16.mxu0 %v10161_v26  ;;  %2025 = vmatprep.subr.bf16.mxu1 %v10163_v27 }
 0x1ed   :  { %1985 = vmatpush1.bf16.msra.mxu0 %v10167_v28  ;;  %2026 = vmatpush1.bf16.msra.mxu1 %v10169_v29 }
 0x1ee   :  { %1986 = vmatprep.subr.bf16.mxu0 %v10173_v30  ;;  %2027 = vmatprep.subr.bf16.mxu1 %v10175_v31  ;;  %v898_v30 = vrot.slane %v885_v14, %v10247_v0 }
 0x1f1   :  { %1987 = vmatpush1.bf16.msra.mxu0 %v10179_v32  ;;  %2028 = vmatpush1.bf16.msra.mxu1 %v10181_v33 }
 0x1f2   :  { %1988 = vmatprep.subr.bf16.mxu0 %v10185_v34  ;;  %2029 = vmatprep.subr.bf16.mxu1 %v10187_v35  ;;  %v902_v34 = vrot.slane %v885_v14, %v10249_v3 }
 0x1f5   :  { %1989 = vmatpush1.bf16.msra.mxu0 %v10191_v36  ;;  %2030 = vmatpush1.bf16.msra.mxu1 %v10193_v37 }
 0x1f6   :  { %2248 = vmatprep.subr.bf16.mxu0 %v10197_v38  ;;  %2289 = vmatprep.subr.bf16.mxu1 %v10199_v39 }
 0x258   :  { %v1101_v6 = vpop.f32.mrf.mxu0  ;;  %v1142_v7 = vpop.f32.mrf.mxu1 }
 0x259   :  { %v1102_v18 = vadd.f32 %v1101_v6, %v890_v16  ;;  %v1143_v33 = vadd.f32 %v1142_v7, %v898_v30  ;;  %v403_v7 = vadd.f32 %v10215_v52, %v10218_v56 }
 0x25a   :  { %v1103_v8 = vpop.f32.mrf.mxu0  ;;  %v1144_v9 = vpop.f32.mrf.mxu1 }
 0x25b   :  { %v1104_v21 = vadd.f32 %v1103_v8, %v894_v17  ;;  %v1145_v36 = vadd.f32 %v1144_v9, %v902_v34  ;;  %v12049_v8 = vld [vmem:[#allocation23_spill] sm:$0xff] }
 0x25c   :  { %v1105_v10 = vpop.f32.mrf.mxu0  ;;  %v1146_v11 = vpop.f32.mrf.mxu1 }
 0x25e   :  { %v1106_v12 = vpop.f32.mrf.mxu0  ;;  %v1147_v13 = vpop.f32.mrf.mxu1 }
 0x278   :  { %v1375_v19 = vpop.f32.mrf.mxu0  ;;  %v1416_v20 = vpop.f32.mrf.mxu1 }
 0x279   :  { %v1423_v22 = vadd.f32 %v1375_v19, %v1102_v18  ;;  %v1425_v35 = vadd.f32 %v1416_v20, %v1143_v33 }
 0x27a   :  { %v1377_v23 = vpop.f32.mrf.mxu0  ;;  %v1418_v24 = vpop.f32.mrf.mxu1 }
 0x27b   :  { %v8148_v25 = vmul.f32 -1.442695, %v1423_v22  ;;  %v1424_v26 = vadd.f32 %v1377_v23, %v1104_v21  ;;  %v8150_v37 = vmul.f32 -1.442695, %v1425_v35  ;;  %v1426_v39 = vadd.f32 %v1418_v24, %v1145_v36 }
 0x27c   :  { %v1379_v27 = vpop.f32.mrf.mxu0  ;;  %v1420_v28 = vpop.f32.mrf.mxu1 }
 0x27d   :  { %9588 = vpow2.f32 %v8148_v25  ;;  %v8149_v29 = vmul.f32 -1.442695, %v1424_v26 }
 0x27e   :  { %v1380_v31 = vpop.f32.mrf.mxu0  ;;  %v1421_v32 = vpop.f32.mrf.mxu1 }
 0x27f   :  { %9590 = vpow2.f32 %v8149_v29 }
 0x280   :  { %9592 = vpow2.f32 %v8150_v37 }
 0x28a   :  { %v9589_v38 = vpop.eup %9588 }
 0x28b   :  { %v1436_v58 = vadd.f32 1.0, %v9589_v38 }
 0x28c   :  { %v9591_v45 = vpop.eup %9590 }
 0x28d   :  { %9594 = vrcp.f32 %v1436_v58  ;;  %v1437_v51 = vadd.f32 1.0, %v9591_v45  ;;  %v9593_v6 = vpop.eup %9592 }
 0x28e   :  { %9596 = vtanh.f32 %v1426_v39  ;;  %v1438_v17 = vadd.f32 1.0, %v9593_v6  ;;  %v12061_v6 = vld [vmem:[#allocation60_spill] sm:$0xff] }
 0x28f   :  { %9598 = vrcp.f32 %v1437_v51 }
 0x298   :  { %v1683_v2 = vpop.f32.mrf.mxu0  ;;  %v1724_v4 = vpop.f32.mrf.mxu1 }
 0x299   :  { %v1731_v10 = vadd.f32 %v1683_v2, %v12049_v8  ;;  %v1733_v52 = vadd.f32 %v1724_v4, %v10254_v55  ;;  %v12063_v8 = vld [vmem:[#allocation62_spill] sm:$0xff] }
 0x29a   :  { %v9595_v11 = vpop.eup %9594  ;;  %v1685_v9 = vpop.f32.mrf.mxu0 }
 0x29b   :  { %v1726_v12 = vpop.f32.mrf.mxu1  ;;  %v9597_v13 = vpop.eup %9596  ;;  %v8183_v14 = vmul.f32 -1.442695, %v1731_v10  ;;  %v1732_v15 = vadd.f32 %v1685_v9, %v403_v7  ;;  %v8185_v26 = vmul.f32 -1.442695, %v1733_v52  ;;  %v12062_v7 = vld [vmem:[#allocation61_spill] sm:$0xff]  ;;  %v12064_v10 = vld [vmem:[#allocation63_spill] sm:$0xff] }
 0x29c   :  { %v9599_v16 = vpop.eup %9598  ;;  %v1687_v18 = vpop.f32.mrf.mxu0  ;;  %v1447_v21 = vmul.f32 %v9597_v13, %v9595_v11  ;;  %v1734_v27 = vadd.f32 %v1726_v12, %v10256_v1  ;;  %v12065_v11 = vld [vmem:[#allocation64_spill] sm:$0xff]  ;;  %v12066_v9 = vld [vmem:[#allocation65_spill] sm:$0xff]  ;;  %v12067_v12 = vld [vmem:[#allocation66_spill] sm:$0xff] }
 0x29d   :  { %v1728_v19 = vpop.f32.mrf.mxu1  ;;  %v1446_v20 = vmul.f32 0.0, %v9599_v16  ;;  %9600 = vpow2.f32 %v8183_v14  ;;  %v8184_v22 = vmul.f32 -1.442695, %v1732_v15  ;;  %v10524_v13 = vld [vmem:[#allocation9 + $0xec] ss:$16 sps:$4 sm:$0xff]   ;;  %v12068_v14 = vld [vmem:[#allocation67_spill] sm:$0xff] }
 0x29e   :  { %v1688_v23 = vpop.f32.mrf.mxu0  ;;  %v12069_v15 = vld [vmem:[#allocation68_spill] sm:$0xff]  ;;  %v12070_v18 = vld [vmem:[#allocation69_spill] sm:$0xff] }
 0x29f   :  { %v1729_v24 = vpop.f32.mrf.mxu1  ;;  %v10481_v25 = vadd.f32 %v1447_v21, %v1446_v20  ;;  %9602 = vpow2.f32 %v8184_v22  ;;  %v10528_v16 = vld [vmem:[#allocation9 + $0xe8] ss:$16 sps:$4 sm:$0xff]   ;;  %v10532_v19 = vld [vmem:[#allocation9 + $0xcc] ss:$16 sps:$4 sm:$0xff]   ;;  %v12072_v22 = vld [vmem:[#allocation71_spill] sm:$0xff] }
 0x2a0   :  { %9604 = vrcp.f32 %v1438_v17  ;;  %v12071_v20 = vld [vmem:[#allocation70_spill] sm:$0xff]  ;;  %v12073_v24 = vld [vmem:[#allocation72_spill] sm:$0xff] }
 0x2a1   :  { %9606 = vtanh.f32 %v10481_v25  ;;  %v10536_v21 = vld [vmem:[#allocation9 + $0xc8] ss:$16 sps:$4 sm:$0xff]   ;;  %v10540_v23 = vld [vmem:[#allocation9 + $0xac] ss:$16 sps:$4 sm:$0xff]  }
 0x2a2   :  { %9608 = vpow2.f32 %v8185_v26  ;;  %v10546_v52 = vld [vmem:[#allocation9 + $0xa8] ss:$16 sps:$4 sm:$0xff]   ;;  %v12074_v26 = vld [vmem:[#allocation73_spill] sm:$0xff] }
 0x2a3   :  { %9610 = vtanh.f32 %v1734_v27  ;;  %v10550_v27 = vld [vmem:[#allocation9 + $0x8c] ss:$16 sps:$4 sm:$0xff]  }
 0x2aa   :  { %v9601_v28 = vpop.eup %9600 }
 0x2ab   :  { %v1744_v29 = vadd.f32 1.0, %v9601_v28  ;;  %v12075_v28 = vld [vmem:[#allocation74_spill] sm:$0xff] }
 0x2ac   :  { %v9603_v30 = vpop.eup %9602 }
 0x2ad   :  { %v9605_v31 = vpop.eup %9604  ;;  %9612 = vrcp.f32 %v1744_v29  ;;  %v1745_v32 = vadd.f32 1.0, %v9603_v30  ;;  %v10554_v29 = vld [vmem:[#allocation9 + $0x88] ss:$16 sps:$4 sm:$0xff]   ;;  %v12076_v30 = vld [vmem:[#allocation75_spill] sm:$0xff] }
 0x2ae   :  { %v9607_v33 = vpop.eup %9606 }
 0x2af   :  { %9614 = vrcp.f32 %v1745_v32  ;;  %v1450_v34 = vmul.f32 %v9607_v33, %v9605_v31  ;;  %v9609_v35 = vpop.eup %9608  ;;  %v10558_v31 = vld [vmem:[#allocation9 + $0x6c] ss:$16 sps:$4 sm:$0xff]   ;;  %v10562_v33 = vld [vmem:[#allocation9 + $0x68] ss:$16 sps:$4 sm:$0xff]  }
 0x2b0   :  { %v9611_v36 = vpop.eup %9610  ;;  %v1746_v39 = vadd.f32 1.0, %v9609_v35  ;;  %v12077_v32 = vld [vmem:[#allocation76_spill] sm:$0xff] }
 0x2b1   :  { %1452 = vst [vmem:[#allocation3] sm:$0xff] %v1450_v34  ;;  %v1451_v17 = vpack.c.bf16 %v1450_v34, %v1450_v34  ;;  %v12078_v34 = vld [vmem:[#allocation77_spill] sm:$0xff]  ;;  %v10566_v35 = vld [vmem:[#allocation9 + $0x4c] ss:$16 sps:$4 sm:$0xff]  }
 0x2b2   :  { %9616 = vrcp.f32 %v1746_v39  ;;  %v10578_v39 = vld [vmem:[#allocation9 + $0x28] ss:$16 sps:$4 sm:$0xff]  }
 0x2ba   :  { %v9613_v37 = vpop.eup %9612 }
 0x2bb   :  { %v1755_v38 = vmul.f32 %v9613_v37, %v9611_v36  ;;  %v12079_v36 = vld [vmem:[#allocation78_spill] sm:$0xff] }
 0x2bc   :  { %v9615_v55 = vpop.eup %9614  ;;  %v10570_v37 = vld [vmem:[#allocation9 + $0x48] ss:$16 sps:$4 sm:$0xff]  }
 0x2bd   :  { %v1754_v1 = vmul.f32 %v9615_v55, %v10282_v43  ;;  %v12050_v43 = vld [vmem:[#allocation49_spill] sm:$0xff]  ;;  %v10574_v55 = vld [vmem:[#allocation9 + $0x2c] ss:$16 sps:$4 sm:$0xff]  }
 0x2bf   :  { %v10487_v58 = vadd.f32 %v1755_v38, %v1754_v1  ;;  %v9617_v45 = vpop.eup %9616  ;;  %v12080_v38 = vld [vmem:[#allocation79_spill] sm:$0xff]  ;;  %v10582_v1 = vld [vmem:[#allocation9 + $0xc] ss:$16 sps:$4 sm:$0xff]  }
 0x2c1   :  { %9618 = vtanh.f32 %v10487_v58 }
 0x2ce   :  { %v9619_v51 = vpop.eup %9618 }
 0x2cf   :  { %v1758_v2 = vmul.f32 %v9619_v51, %v9617_v45  ;;  %v10586_v45 = vld [vmem:[#allocation9 + $0x8] ss:$16 sps:$4 sm:$0xff]   ;;  %v10610_v51 = vld [vmem:[#allocation10 + $0xcc] ss:$16 sps:$4 sm:$0xff]  }
 0x2d1   :  { %v10490_v4 = vpack.c.bf16 %v1758_v2, %v1758_v2  ;;  %v10612_v2 = vld [vmem:[#allocation10 + $0xc0] ss:$16 sps:$4 sm:$0xff]  }
 0x2d3   :  { %2007 = vmatmul.mubr.bf16.vlgmr.msra.gmra.mxu0 %v10490_v4  ;;  %2048 = vmatmul.mubr.bf16.vlgmr.msra.gmra.mxu1 %v10490_v4 }
 0x2d4   :  { %2249 = vmatpush1.bf16.msra.mxu0 %v10285_v53  ;;  %2290 = vmatpush1.bf16.msra.mxu1 %v10287_v48  ;;  %v12051_v53 = vld [vmem:[#allocation50_spill] sm:$0xff]  ;;  %v12052_v48 = vld [vmem:[#allocation51_spill] sm:$0xff] }
 0x2d5   :  { %2250 = vmatprep.subr.bf16.mxu0 %v10291_v57  ;;  %2291 = vmatprep.subr.bf16.mxu1 %v10293_v59  ;;  %v12053_v57 = vld [vmem:[#allocation52_spill] sm:$0xff]  ;;  %v12054_v59 = vld [vmem:[#allocation53_spill] sm:$0xff] }
 0x2d6   :  { %2280 = vmatprep.mubr.bf16.mxu0 %v12017_v60  ;;  %2321 = vmatprep.mubr.bf16.mxu1 %v12017_v60 }
 0x2d8   :  { %2251 = vmatpush1.bf16.msra.mxu0 %v10299_v62  ;;  %2292 = vmatpush1.bf16.msra.mxu1 %v10301_v46  ;;  %v12055_v62 = vld [vmem:[#allocation54_spill] sm:$0xff]  ;;  %v12056_v46 = vld [vmem:[#allocation55_spill] sm:$0xff] }
 0x2d9   :  { %2252 = vmatprep.subr.bf16.mxu0 %v10305_v49  ;;  %2293 = vmatprep.subr.bf16.mxu1 %v10307_v61  ;;  %v12057_v49 = vld [vmem:[#allocation56_spill] sm:$0xff]  ;;  %v12058_v61 = vld [vmem:[#allocation57_spill] sm:$0xff] }
 0x2dc   :  { %2253 = vmatpush1.bf16.msra.mxu0 %v10313_v63  ;;  %2294 = vmatpush1.bf16.msra.mxu1 %v10315_v41  ;;  %v12059_v63 = vld [vmem:[#allocation58_spill] sm:$0xff]  ;;  %v12060_v41 = vld [vmem:[#allocation59_spill] sm:$0xff] }
 0x2dd   :  { %2254 = vmatprep.subr.bf16.mxu0 %v12050_v43  ;;  %2295 = vmatprep.subr.bf16.mxu1 %v12051_v53  ;;  %v10620_v43 = vld [vmem:[#allocation10 + $0xa4] ss:$16 sps:$4 sm:$0xff]   ;;  %v10622_v53 = vld [vmem:[#allocation10 + $0xac] ss:$16 sps:$4 sm:$0xff]  }
 0x2e0   :  { %2255 = vmatpush1.bf16.msra.mxu0 %v12052_v48  ;;  %2296 = vmatpush1.bf16.msra.mxu1 %v12053_v57  ;;  %v10624_v48 = vld [vmem:[#allocation10 + $0xa0] ss:$16 sps:$4 sm:$0xff]   ;;  %v10626_v57 = vld [vmem:[#allocation10 + $0xa8] ss:$16 sps:$4 sm:$0xff]  }
 0x2e1   :  { %2256 = vmatprep.subr.bf16.mxu0 %v12054_v59  ;;  %2297 = vmatprep.subr.bf16.mxu1 %v12055_v62  ;;  %v10632_v59 = vld [vmem:[#allocation10 + $0x84] ss:$16 sps:$4 sm:$0xff]   ;;  %v10634_v62 = vld [vmem:[#allocation10 + $0x8c] ss:$16 sps:$4 sm:$0xff]  }
 0x2e4   :  { %2257 = vmatpush1.bf16.msra.mxu0 %v12056_v46  ;;  %2298 = vmatpush1.bf16.msra.mxu1 %v12057_v49  ;;  %v10636_v46 = vld [vmem:[#allocation10 + $0x80] ss:$16 sps:$4 sm:$0xff]   ;;  %v10638_v49 = vld [vmem:[#allocation10 + $0x88] ss:$16 sps:$4 sm:$0xff]  }
 0x2e5   :  { %2258 = vmatprep.subr.bf16.mxu0 %v12058_v61  ;;  %2299 = vmatprep.subr.bf16.mxu1 %v12059_v63  ;;  %v10642_v61 = vld [vmem:[#allocation10 + $0x64] ss:$16 sps:$4 sm:$0xff]   ;;  %v10646_v63 = vld [vmem:[#allocation10 + $0x60] ss:$16 sps:$4 sm:$0xff]  }
 0x2e8   :  { %2259 = vmatpush1.bf16.msra.mxu0 %v12060_v41  ;;  %2300 = vmatpush1.bf16.msra.mxu1 %v12061_v6  ;;  %v10648_v41 = vld [vmem:[#allocation10 + $0x68] ss:$16 sps:$4 sm:$0xff]   ;;  %v10650_v6 = vld [vmem:[#allocation10 + $0x6c] ss:$16 sps:$4 sm:$0xff]  }
 0x2e9   :  { %2260 = vmatprep.subr.bf16.mxu0 %v12062_v7  ;;  %2301 = vmatprep.subr.bf16.mxu1 %v12063_v8  ;;  %12081 = vst [vmem:[#allocation23_spill] sm:$0xff] %v10648_v41  ;;  %v10653_v7 = vld [vmem:[#allocation10 + $0x44] ss:$16 sps:$4 sm:$0xff]   ;;  %v10655_v8 = vld [vmem:[#allocation10 + $0x4c] ss:$16 sps:$4 sm:$0xff]  }
 0x2ea   :  { %12082 = vst [vmem:[#allocation49_spill] sm:$0xff] %v10653_v7  ;;  %12083 = vst [vmem:[#allocation50_spill] sm:$0xff] %v10655_v8 }
 0x2ec   :  { %2261 = vmatpush1.bf16.msra.mxu0 %v12064_v10  ;;  %2302 = vmatpush1.bf16.msra.mxu1 %v12065_v11  ;;  %v10660_v10 = vld [vmem:[#allocation10 + $0x40] ss:$16 sps:$4 sm:$0xff]   ;;  %v10662_v11 = vld [vmem:[#allocation10 + $0x48] ss:$16 sps:$4 sm:$0xff]  }
 0x2ed   :  { %2262 = vmatprep.subr.bf16.mxu0 %v12066_v9  ;;  %2303 = vmatprep.subr.bf16.mxu1 %v12067_v12  ;;  %12084 = vst [vmem:[#allocation51_spill] sm:$0xff] %v10660_v10  ;;  %12085 = vst [vmem:[#allocation52_spill] sm:$0xff] %v10662_v11  ;;  %v10666_v9 = vld [vmem:[#allocation10 + $0x24] ss:$16 sps:$4 sm:$0xff]   ;;  %v10668_v12 = vld [vmem:[#allocation10 + $0x2c] ss:$16 sps:$4 sm:$0xff]  }
 0x2ee   :  { %12086 = vst [vmem:[#allocation53_spill] sm:$0xff] %v10666_v9  ;;  %12087 = vst [vmem:[#allocation54_spill] sm:$0xff] %v10668_v12 }
 0x2f0   :  { %2263 = vmatpush1.bf16.msra.mxu0 %v12068_v14  ;;  %2304 = vmatpush1.bf16.msra.mxu1 %v12069_v15  ;;  %v10672_v14 = vld [vmem:[#allocation10 + $0x20] ss:$16 sps:$4 sm:$0xff]   ;;  %v10674_v15 = vld [vmem:[#allocation10 + $0x28] ss:$16 sps:$4 sm:$0xff]  }
 0x2f1   :  { %2556 = vmatprep.subr.bf16.mxu0 %v12070_v18  ;;  %2597 = vmatprep.subr.bf16.mxu1 %v10524_v13  ;;  %12088 = vst [vmem:[#allocation55_spill] sm:$0xff] %v10672_v14  ;;  %12089 = vst [vmem:[#allocation56_spill] sm:$0xff] %v10674_v15  ;;  %v10680_v18 = vld [vmem:[#allocation10 + $0xc] ss:$16 sps:$4 sm:$0xff]  }
 0x2f2   :  { %12091 = vst [vmem:[#allocation58_spill] sm:$0xff] %v10680_v18 }
 0x2f3   :  { %2281 = vmatmul.mubr.bf16.vlgmr.msra.gmra.mxu0 %v1451_v17  ;;  %2322 = vmatmul.mubr.bf16.vlgmr.msra.gmra.mxu1 %v1451_v17  ;;  %v10678_v17 = vld [vmem:[#allocation10 + $0x4] ss:$16 sps:$4 sm:$0xff]  }
 0x2f4   :  { %2557 = vmatpush1.bf16.msra.mxu0 %v12071_v20  ;;  %2598 = vmatpush1.bf16.msra.mxu1 %v10528_v16  ;;  %12090 = vst [vmem:[#allocation57_spill] sm:$0xff] %v10678_v17  ;;  %v10684_v20 = vld [vmem:[#allocation10] ss:$16 sps:$4 sm:$0xff]  }
 0x2f5   :  { %2558 = vmatprep.subr.bf16.mxu0 %v12072_v22  ;;  %2599 = vmatprep.subr.bf16.mxu1 %v10532_v19  ;;  %12092 = vst [vmem:[#allocation59_spill] sm:$0xff] %v10684_v20  ;;  %v10686_v22 = vld [vmem:[#allocation10 + $0x8] ss:$16 sps:$4 sm:$0xff]  }
 0x2f6   :  { %2588 = vmatprep.mubr.bf16.mxu0 %v12017_v60  ;;  %2629 = vmatprep.mubr.bf16.mxu1 %v12017_v60  ;;  %12093 = vst [vmem:[#allocation60_spill] sm:$0xff] %v10686_v22 }
 0x2f8   :  { %2559 = vmatpush1.bf16.msra.mxu0 %v12073_v24  ;;  %2600 = vmatpush1.bf16.msra.mxu1 %v10536_v21  ;;  %v10690_v24 = vld [vmem:[#allocation12 + $0xe4] ss:$16 sps:$4 sm:$0xff]  }
 0x2f9   :  { %2560 = vmatprep.subr.bf16.mxu0 %v12074_v26  ;;  %2601 = vmatprep.subr.bf16.mxu1 %v10540_v23  ;;  %12094 = vst [vmem:[#allocation61_spill] sm:$0xff] %v10690_v24  ;;  %v10692_v26 = vld [vmem:[#allocation12 + $0xec] ss:$16 sps:$4 sm:$0xff]  }
 0x2fa   :  { %12095 = vst [vmem:[#allocation62_spill] sm:$0xff] %v10692_v26 }
 0x2fc   :  { %2561 = vmatpush1.bf16.msra.mxu0 %v12075_v28  ;;  %2602 = vmatpush1.bf16.msra.mxu1 %v10546_v52 }
 0x2fd   :  { %2562 = vmatprep.subr.bf16.mxu0 %v12076_v30  ;;  %2603 = vmatprep.subr.bf16.mxu1 %v10550_v27 }
 0x300   :  { %2563 = vmatpush1.bf16.msra.mxu0 %v12077_v32  ;;  %2604 = vmatpush1.bf16.msra.mxu1 %v10554_v29 }
 0x301   :  { %2564 = vmatprep.subr.bf16.mxu0 %v12078_v34  ;;  %2605 = vmatprep.subr.bf16.mxu1 %v10558_v31 }
 0x304   :  { %2565 = vmatpush1.bf16.msra.mxu0 %v12079_v36  ;;  %2606 = vmatpush1.bf16.msra.mxu1 %v10562_v33 }
 0x305   :  { %2566 = vmatprep.subr.bf16.mxu0 %v12080_v38  ;;  %2607 = vmatprep.subr.bf16.mxu1 %v10566_v35 }
 0x308   :  { %2567 = vmatpush1.bf16.msra.mxu0 %v10417_v5  ;;  %2608 = vmatpush1.bf16.msra.mxu1 %v10570_v37  ;;  %v10596_v5 = vld [vmem:[#allocation10 + $0xe4] ss:$16 sps:$4 sm:$0xff]  }
 0x309   :  { %2568 = vmatprep.subr.bf16.mxu0 %v10420_v54  ;;  %2609 = vmatprep.subr.bf16.mxu1 %v10574_v55  ;;  %v10598_v54 = vld [vmem:[#allocation10 + $0xec] ss:$16 sps:$4 sm:$0xff]  }
 0x30c   :  { %2569 = vmatpush1.bf16.msra.mxu0 %v10423_v44  ;;  %2610 = vmatpush1.bf16.msra.mxu1 %v10578_v39  ;;  %v10600_v44 = vld [vmem:[#allocation10 + $0xe0] ss:$16 sps:$4 sm:$0xff]  }
 0x30d   :  { %2570 = vmatprep.subr.bf16.mxu0 %v10426_v47  ;;  %2611 = vmatprep.subr.bf16.mxu1 %v10582_v1  ;;  %v10602_v47 = vld [vmem:[#allocation10 + $0xe8] ss:$16 sps:$4 sm:$0xff]  }
 0x310   :  { %2571 = vmatpush1.bf16.msra.mxu0 %v10429_v40  ;;  %2612 = vmatpush1.bf16.msra.mxu1 %v10586_v45  ;;  %v10608_v40 = vld [vmem:[#allocation10 + $0xc4] ss:$16 sps:$4 sm:$0xff]  }
 0x311   :  { %2881 = vmatprep.subr.bf16.mxu0 %v10596_v5  ;;  %2922 = vmatprep.subr.bf16.mxu1 %v10598_v54 }
 0x313   :  { %2589 = vmatmul.mubr.bf16.vlgmr.msra.gmra.mxu0 %v10490_v4  ;;  %2630 = vmatmul.mubr.bf16.vlgmr.msra.gmra.mxu1 %v10490_v4  ;;  %v10614_v4 = vld [vmem:[#allocation10 + $0xc8] ss:$16 sps:$4 sm:$0xff]  }
 0x314   :  { %2913 = vmatprep.mubr.bf16.mxu0 %v12017_v60  ;;  %2954 = vmatprep.mubr.bf16.mxu1 %v12017_v60 }
 0x315   :  { %2882 = vmatpush1.bf16.msra.mxu0 %v10600_v44  ;;  %2923 = vmatpush1.bf16.msra.mxu1 %v10602_v47 }
 0x316   :  { %2883 = vmatprep.subr.bf16.mxu0 %v10608_v40  ;;  %2924 = vmatprep.subr.bf16.mxu1 %v10610_v51 }
 0x319   :  { %2884 = vmatpush1.bf16.msra.mxu0 %v10612_v2  ;;  %2925 = vmatpush1.bf16.msra.mxu1 %v10614_v4 }
 0x31a   :  { %2885 = vmatprep.subr.bf16.mxu0 %v10620_v43  ;;  %2926 = vmatprep.subr.bf16.mxu1 %v10622_v53 }
 0x31d   :  { %2886 = vmatpush1.bf16.msra.mxu0 %v10624_v48  ;;  %2927 = vmatpush1.bf16.msra.mxu1 %v10626_v57 }
 0x31e   :  { %2887 = vmatprep.subr.bf16.mxu0 %v10632_v59  ;;  %2928 = vmatprep.subr.bf16.mxu1 %v10634_v62 }
 0x321   :  { %2888 = vmatpush1.bf16.msra.mxu0 %v10636_v46  ;;  %2929 = vmatpush1.bf16.msra.mxu1 %v10638_v49 }
 0x322   :  { %2889 = vmatprep.subr.bf16.mxu0 %v10642_v61  ;;  %2930 = vmatprep.subr.bf16.mxu1 %v10650_v6 }
 0x325   :  { %2890 = vmatpush1.bf16.msra.mxu0 %v10646_v63  ;;  %2931 = vmatpush1.bf16.msra.mxu1 %v10648_v41 }
 0x326   :  { %2891 = vmatprep.subr.bf16.mxu0 %v10653_v7  ;;  %2932 = vmatprep.subr.bf16.mxu1 %v10655_v8 }
 0x329   :  { %2892 = vmatpush1.bf16.msra.mxu0 %v10660_v10  ;;  %2933 = vmatpush1.bf16.msra.mxu1 %v10662_v11 }
 0x32a   :  { %2893 = vmatprep.subr.bf16.mxu0 %v10666_v9  ;;  %2934 = vmatprep.subr.bf16.mxu1 %v10668_v12 }
 0x32d   :  { %2894 = vmatpush1.bf16.msra.mxu0 %v10672_v14  ;;  %2935 = vmatpush1.bf16.msra.mxu1 %v10674_v15 }
 0x32e   :  { %2895 = vmatprep.subr.bf16.mxu0 %v10678_v17  ;;  %2936 = vmatprep.subr.bf16.mxu1 %v10680_v18  ;;  %v1792_v17 = vld [vmem:[%s11855_s6] sm:$0xf] }
 0x32f   :  { %v1805_v8 = vrot.slane %v1792_v17, %v10247_v0 }
 0x331   :  { %2896 = vmatpush1.bf16.msra.mxu0 %v10684_v20  ;;  %2937 = vmatpush1.bf16.msra.mxu1 %v10686_v22  ;;  %v1797_v20 = vrot.slane %v1792_v17, %v10205_v42  ;;  %v1801_v22 = vrot.slane %v1792_v17, %v10211_v50 }
 0x332   :  { %3155 = vmatprep.subr.bf16.mxu0 %v10690_v24  ;;  %3196 = vmatprep.subr.bf16.mxu1 %v10692_v26 }
 0x393   :  { %v2008_v28 = vpop.f32.mrf.mxu0  ;;  %v2049_v30 = vpop.f32.mrf.mxu1 }
 0x394   :  { %v2009_v15 = vadd.f32 %v2008_v28, %v1797_v20  ;;  %v2050_v42 = vadd.f32 %v2049_v30, %v1805_v8  ;;  %v1809_v20 = vrot.slane %v1792_v17, %v10249_v3 }
 0x395   :  { %v2010_v32 = vpop.f32.mrf.mxu0  ;;  %v2051_v34 = vpop.f32.mrf.mxu1 }
 0x396   :  { %v2011_v26 = vadd.f32 %v2010_v32, %v1801_v22  ;;  %v2052_v50 = vadd.f32 %v2051_v34, %v1809_v20  ;;  %v12097_v34 = vld [vmem:[#allocation26_spill] sm:$0xff] }
 0x397   :  { %v2012_v36 = vpop.f32.mrf.mxu0  ;;  %v2053_v38 = vpop.f32.mrf.mxu1 }
 0x399   :  { %v2013_v56 = vpop.f32.mrf.mxu0  ;;  %v2054_v18 = vpop.f32.mrf.mxu1 }
 0x3b3   :  { %v2282_v24 = vpop.f32.mrf.mxu0  ;;  %v2323_v14 = vpop.f32.mrf.mxu1 }
 0x3b4   :  { %v2330_v12 = vadd.f32 %v2282_v24, %v2009_v15  ;;  %v2332_v28 = vadd.f32 %v2323_v14, %v2050_v42 }
 0x3b5   :  { %v2284_v9 = vpop.f32.mrf.mxu0  ;;  %v2325_v11 = vpop.f32.mrf.mxu1 }
 0x3b6   :  { %v8250_v10 = vmul.f32 -1.442695, %v2330_v12  ;;  %v2331_v36 = vadd.f32 %v2284_v9, %v2011_v26  ;;  %v8252_v22 = vmul.f32 -1.442695, %v2332_v28  ;;  %v2333_v24 = vadd.f32 %v2325_v11, %v2052_v50 }
 0x3b7   :  { %v2286_v38 = vpop.f32.mrf.mxu0  ;;  %v2327_v56 = vpop.f32.mrf.mxu1 }
 0x3b8   :  { %9620 = vpow2.f32 %v8250_v10  ;;  %v8251_v18 = vmul.f32 -1.442695, %v2331_v36 }
 0x3b9   :  { %v2287_v7 = vpop.f32.mrf.mxu0  ;;  %v2328_v41 = vpop.f32.mrf.mxu1 }
 0x3ba   :  { %9622 = vpow2.f32 %v8251_v18  ;;  %v12096_v41 = vld [vmem:[#allocation25_spill] sm:$0xff] }
 0x3bb   :  { %9624 = vpow2.f32 %v8252_v22 }
 0x3c5   :  { %v9621_v15 = vpop.eup %9620 }
 0x3c6   :  { %v2343_v32 = vadd.f32 1.0, %v9621_v15 }
 0x3c7   :  { %v9623_v12 = vpop.eup %9622 }
 0x3c8   :  { %9626 = vrcp.f32 %v2343_v32  ;;  %v2344_v9 = vadd.f32 1.0, %v9623_v12  ;;  %v9625_v7 = vpop.eup %9624  ;;  %v12098_v12 = vld [vmem:[#allocation37_spill] sm:$0xff] }
 0x3c9   :  { %9628 = vtanh.f32 %v2333_v24  ;;  %v2345_v11 = vadd.f32 1.0, %v9625_v7 }
 0x3ca   :  { %9630 = vrcp.f32 %v2344_v9 }
 0x3d3   :  { %v2590_v10 = vpop.f32.mrf.mxu0  ;;  %v2631_v26 = vpop.f32.mrf.mxu1 }
 0x3d4   :  { %v2638_v36 = vadd.f32 %v2590_v10, %v12096_v41  ;;  %v2640_v9 = vadd.f32 %v2631_v26, %v12098_v12  ;;  %v12099_v41 = vld [vmem:[#allocation38_spill] sm:$0xff] }
 0x3d5   :  { %v9627_v8 = vpop.eup %9626  ;;  %v2592_v30 = vpop.f32.mrf.mxu0  ;;  %v10722_v12 = vld [vmem:[#allocation12 + $0xe8] ss:$16 sps:$4 sm:$0xff]  }
 0x3d6   :  { %v2633_v17 = vpop.f32.mrf.mxu1  ;;  %v9629_v42 = vpop.eup %9628  ;;  %v8285_v14 = vmul.f32 -1.442695, %v2638_v36  ;;  %v2639_v38 = vadd.f32 %v2592_v30, %v12097_v34  ;;  %v8287_v10 = vmul.f32 -1.442695, %v2640_v9 }
 0x3d7   :  { %v9631_v50 = vpop.eup %9630  ;;  %v2594_v56 = vpop.f32.mrf.mxu0  ;;  %v2354_v28 = vmul.f32 %v9629_v42, %v9627_v8  ;;  %v2641_v7 = vadd.f32 %v2633_v17, %v12099_v41  ;;  %v10728_v41 = vld [vmem:[#allocation12 + $0xcc] ss:$16 sps:$4 sm:$0xff]  }
 0x3d8   :  { %v2635_v18 = vpop.f32.mrf.mxu1  ;;  %v2353_v20 = vmul.f32 %v9631_v50, %v10481_v25  ;;  %9632 = vpow2.f32 %v8285_v14  ;;  %v8286_v22 = vmul.f32 -1.442695, %v2639_v38 }
 0x3d9   :  { %v2595_v15 = vpop.f32.mrf.mxu0 }
 0x3da   :  { %v2636_v24 = vpop.f32.mrf.mxu1  ;;  %v10708_v32 = vadd.f32 %v2354_v28, %v2353_v20  ;;  %9634 = vpow2.f32 %v8286_v22 }
 0x3db   :  { %9636 = vrcp.f32 %v2345_v11  ;;  %v10720_v24 = vld [vmem:[#allocation12 + $0xe0] ss:$16 sps:$4 sm:$0xff]  }
 0x3dc   :  { %9638 = vtanh.f32 %v10708_v32 }
 0x3dd   :  { %9640 = vpow2.f32 %v8287_v10  ;;  %v10726_v10 = vld [vmem:[#allocation12 + $0xc4] ss:$16 sps:$4 sm:$0xff]  }
 0x3de   :  { %9642 = vtanh.f32 %v2641_v7  ;;  %v10736_v7 = vld [vmem:[#allocation12 + $0xc8] ss:$16 sps:$4 sm:$0xff]  }
 0x3e5   :  { %v9633_v36 = vpop.eup %9632 }
 0x3e6   :  { %v2651_v30 = vadd.f32 1.0, %v9633_v36  ;;  %v10740_v36 = vld [vmem:[#allocation12 + $0xa4] ss:$16 sps:$4 sm:$0xff]  }
 0x3e7   :  { %v9635_v25 = vpop.eup %9634 }
 0x3e8   :  { %v9637_v8 = vpop.eup %9636  ;;  %9644 = vrcp.f32 %v2651_v30  ;;  %v2652_v42 = vadd.f32 1.0, %v9635_v25  ;;  %v10742_v30 = vld [vmem:[#allocation12 + $0xac] ss:$16 sps:$4 sm:$0xff]   ;;  %v10748_v25 = vld [vmem:[#allocation12 + $0xa0] ss:$16 sps:$4 sm:$0xff]  }
 0x3e9   :  { %v9639_v14 = vpop.eup %9638 }
 0x3ea   :  { %9646 = vrcp.f32 %v2652_v42  ;;  %v10713_v34 = vmul.f32 %v9639_v14, %v9637_v8  ;;  %v9641_v38 = vpop.eup %9640  ;;  %v10750_v8 = vld [vmem:[#allocation12 + $0xa8] ss:$16 sps:$4 sm:$0xff]   ;;  %v10754_v42 = vld [vmem:[#allocation12 + $0x84] ss:$16 sps:$4 sm:$0xff]   ;;  %v10756_v14 = vld [vmem:[#allocation12 + $0x8c] ss:$16 sps:$4 sm:$0xff]  }
 0x3eb   :  { %v9643_v50 = vpop.eup %9642  ;;  %v2653_v17 = vadd.f32 1.0, %v9641_v38  ;;  %v10760_v38 = vld [vmem:[#allocation12 + $0x80] ss:$16 sps:$4 sm:$0xff]  }
 0x3ec   :  { %2359 = vst [vmem:[#allocation3 + $0x8] sm:$0xff] %v10713_v34 }
 0x3ed   :  { %9648 = vrcp.f32 %v2653_v17  ;;  %v10774_v17 = vld [vmem:[#allocation12 + $0x68] ss:$16 sps:$4 sm:$0xff]  }
 0x3ee   :  { %12104 = vst [vmem:[#allocation67_spill] sm:$0xff] %v10774_v17 }
 0x3f5   :  { %v9645_v26 = vpop.eup %9644 }
 0x3f6   :  { %v2662_v11 = vmul.f32 %v9645_v26, %v9643_v50  ;;  %v10762_v50 = vld [vmem:[#allocation12 + $0x88] ss:$16 sps:$4 sm:$0xff]   ;;  %v10766_v26 = vld [vmem:[#allocation12 + $0x64] ss:$16 sps:$4 sm:$0xff]  }
 0x3f7   :  { %v9647_v56 = vpop.eup %9646  ;;  %12100 = vst [vmem:[#allocation63_spill] sm:$0xff] %v10762_v50  ;;  %12101 = vst [vmem:[#allocation64_spill] sm:$0xff] %v10766_v26 }
 0x3f8   :  { %v2661_v18 = vmul.f32 %v9647_v56, %v10487_v58  ;;  %v10734_v58 = vld [vmem:[#allocation12 + $0xc0] ss:$16 sps:$4 sm:$0xff]  }
 0x3f9   :  { %v10772_v56 = vld [vmem:[#allocation12 + $0x60] ss:$16 sps:$4 sm:$0xff]  }
 0x3fa   :  { %v10717_v20 = vadd.f32 %v2662_v11, %v2661_v18  ;;  %v9649_v28 = vpop.eup %9648  ;;  %v10768_v11 = vld [vmem:[#allocation12 + $0x6c] ss:$16 sps:$4 sm:$0xff]   ;;  %12103 = vst [vmem:[#allocation66_spill] sm:$0xff] %v10772_v56  ;;  %v10778_v18 = vld [vmem:[#allocation12 + $0x44] ss:$16 sps:$4 sm:$0xff]  }
 0x3fb   :  { %12102 = vst [vmem:[#allocation65_spill] sm:$0xff] %v10768_v11  ;;  %12105 = vst [vmem:[#allocation68_spill] sm:$0xff] %v10778_v18 }
 0x3fc   :  { %9650 = vtanh.f32 %v10717_v20 }
 0x409   :  { %v9651_v22 = vpop.eup %9650 }
 0x40a   :  { %v2665_v15 = vmul.f32 %v9651_v22, %v9649_v28  ;;  %v10780_v28 = vld [vmem:[#allocation12 + $0x4c] ss:$16 sps:$4 sm:$0xff]   ;;  %v10784_v22 = vld [vmem:[#allocation12 + $0x40] ss:$16 sps:$4 sm:$0xff]  }
 0x40b   :  { %12106 = vst [vmem:[#allocation69_spill] sm:$0xff] %v10780_v28  ;;  %12107 = vst [vmem:[#allocation70_spill] sm:$0xff] %v10784_v22 }
 0x40c   :  { %v10724_v9 = vpack.c.bf16 %v2665_v15, %v2665_v15  ;;  %v10786_v15 = vld [vmem:[#allocation12 + $0x48] ss:$16 sps:$4 sm:$0xff]  }
 0x40d   :  { %12108 = vst [vmem:[#allocation71_spill] sm:$0xff] %v10786_v15 }
 0x40e   :  { %2914 = vmatmul.mubr.bf16.vlgmr.msra.gmra.mxu0 %v10724_v9  ;;  %2955 = vmatmul.mubr.bf16.vlgmr.msra.gmra.mxu1 %v10724_v9 }
 0x40f   :  { %3156 = vmatpush1.bf16.msra.mxu0 %v10720_v24  ;;  %3197 = vmatpush1.bf16.msra.mxu1 %v10722_v12 }
 0x410   :  { %3157 = vmatprep.subr.bf16.mxu0 %v10726_v10  ;;  %3198 = vmatprep.subr.bf16.mxu1 %v10728_v41 }
 0x411   :  { %3187 = vmatprep.mubr.bf16.mxu0 %v12017_v60  ;;  %3228 = vmatprep.mubr.bf16.mxu1 %v12017_v60 }
 0x413   :  { %3158 = vmatpush1.bf16.msra.mxu0 %v10734_v58  ;;  %3199 = vmatpush1.bf16.msra.mxu1 %v10736_v7 }
 0x414   :  { %3159 = vmatprep.subr.bf16.mxu0 %v10740_v36  ;;  %3200 = vmatprep.subr.bf16.mxu1 %v10742_v30 }
 0x417   :  { %3160 = vmatpush1.bf16.msra.mxu0 %v10748_v25  ;;  %3201 = vmatpush1.bf16.msra.mxu1 %v10750_v8 }
 0x418   :  { %3161 = vmatprep.subr.bf16.mxu0 %v10754_v42  ;;  %3202 = vmatprep.subr.bf16.mxu1 %v10756_v14 }
 0x41b   :  { %3162 = vmatpush1.bf16.msra.mxu0 %v10760_v38  ;;  %3203 = vmatpush1.bf16.msra.mxu1 %v10762_v50  ;;  %v10790_v50 = vld [vmem:[#allocation12 + $0x24] ss:$16 sps:$4 sm:$0xff]  }
 0x41c   :  { %3163 = vmatprep.subr.bf16.mxu0 %v10766_v26  ;;  %3204 = vmatprep.subr.bf16.mxu1 %v10768_v11  ;;  %v10792_v26 = vld [vmem:[#allocation12 + $0x2c] ss:$16 sps:$4 sm:$0xff]   ;;  %v10796_v11 = vld [vmem:[#allocation12 + $0x20] ss:$16 sps:$4 sm:$0xff]  }
 0x41d   :  { %12109 = vst [vmem:[#allocation72_spill] sm:$0xff] %v10792_v26  ;;  %12110 = vst [vmem:[#allocation73_spill] sm:$0xff] %v10796_v11 }
 0x41f   :  { %3164 = vmatpush1.bf16.msra.mxu0 %v10772_v56  ;;  %3205 = vmatpush1.bf16.msra.mxu1 %v10774_v17  ;;  %v10798_v56 = vld [vmem:[#allocation12 + $0x28] ss:$16 sps:$4 sm:$0xff]   ;;  %v10802_v17 = vld [vmem:[#allocation12 + $0x4] ss:$16 sps:$4 sm:$0xff]  }
 0x420   :  { %3165 = vmatprep.subr.bf16.mxu0 %v10778_v18  ;;  %3206 = vmatprep.subr.bf16.mxu1 %v10780_v28  ;;  %12111 = vst [vmem:[#allocation74_spill] sm:$0xff] %v10798_v56  ;;  %v10804_v18 = vld [vmem:[#allocation12 + $0xc] ss:$16 sps:$4 sm:$0xff]   ;;  %v10808_v28 = vld [vmem:[#allocation12] ss:$16 sps:$4 sm:$0xff]  }
 0x421   :  { %12112 = vst [vmem:[#allocation75_spill] sm:$0xff] %v10808_v28 }
 0x423   :  { %3166 = vmatpush1.bf16.msra.mxu0 %v10784_v22  ;;  %3207 = vmatpush1.bf16.msra.mxu1 %v10786_v15  ;;  %v10810_v22 = vld [vmem:[#allocation12 + $0x8] ss:$16 sps:$4 sm:$0xff]   ;;  %v10814_v15 = vld [vmem:[#allocation9 + $0xe4] ss:$16 sps:$4 sm:$0xff]  }
 0x424   :  { %3167 = vmatprep.subr.bf16.mxu0 %v10790_v50  ;;  %3208 = vmatprep.subr.bf16.mxu1 %v10792_v26  ;;  %12113 = vst [vmem:[#allocation76_spill] sm:$0xff] %v10810_v22  ;;  %v10818_v26 = vld [vmem:[#allocation9 + $0xe0] ss:$16 sps:$4 sm:$0xff]  }
 0x427   :  { %3168 = vmatpush1.bf16.msra.mxu0 %v10796_v11  ;;  %3209 = vmatpush1.bf16.msra.mxu1 %v10798_v56  ;;  %v2358_v11 = vpack.c.bf16 %v10713_v34, %v10713_v34  ;;  %v10824_v56 = vld [vmem:[#allocation9 + $0xc4] ss:$16 sps:$4 sm:$0xff]  }
 0x428   :  { %3169 = vmatprep.subr.bf16.mxu0 %v10802_v17  ;;  %3210 = vmatprep.subr.bf16.mxu1 %v10804_v18  ;;  %v10850_v34 = vld [vmem:[#allocation9 + $0x64] ss:$16 sps:$4 sm:$0xff]  }
 0x42b   :  { %3170 = vmatpush1.bf16.msra.mxu0 %v10808_v28  ;;  %3211 = vmatpush1.bf16.msra.mxu1 %v10810_v22  ;;  %v10828_v28 = vld [vmem:[#allocation9 + $0xc0] ss:$16 sps:$4 sm:$0xff]   ;;  %v10832_v22 = vld [vmem:[#allocation9 + $0xa4] ss:$16 sps:$4 sm:$0xff]  }
 0x42c   :  { %3463 = vmatprep.subr.bf16.mxu0 %v10814_v15  ;;  %3504 = vmatprep.subr.bf16.mxu1 %v10524_v13  ;;  %v10838_v13 = vld [vmem:[#allocation9 + $0xa0] ss:$16 sps:$4 sm:$0xff]  }
 0x42e   :  { %3188 = vmatmul.mubr.bf16.vlgmr.msra.gmra.mxu0 %v2358_v11  ;;  %3229 = vmatmul.mubr.bf16.vlgmr.msra.gmra.mxu1 %v2358_v11  ;;  %v12130_v11 = vld [vmem:[#allocation22_spill] sm:$0xff] }
 0x42f   :  { %3464 = vmatpush1.bf16.msra.mxu0 %v10818_v26  ;;  %3505 = vmatpush1.bf16.msra.mxu1 %v10528_v16  ;;  %v10842_v16 = vld [vmem:[#allocation9 + $0x84] ss:$16 sps:$4 sm:$0xff]  }
 0x430   :  { %3465 = vmatprep.subr.bf16.mxu0 %v10824_v56  ;;  %3506 = vmatprep.subr.bf16.mxu1 %v10532_v19  ;;  %v10846_v19 = vld [vmem:[#allocation9 + $0x80] ss:$16 sps:$4 sm:$0xff]  }
 0x431   :  { %3495 = vmatprep.mubr.bf16.mxu0 %v12017_v60  ;;  %3536 = vmatprep.mubr.bf16.mxu1 %v12017_v60 }
 0x433   :  { %3466 = vmatpush1.bf16.msra.mxu0 %v10828_v28  ;;  %3507 = vmatpush1.bf16.msra.mxu1 %v10536_v21  ;;  %v10854_v21 = vld [vmem:[#allocation9 + $0x60] ss:$16 sps:$4 sm:$0xff]  }
 0x434   :  { %3467 = vmatprep.subr.bf16.mxu0 %v10832_v22  ;;  %3508 = vmatprep.subr.bf16.mxu1 %v10540_v23  ;;  %v10858_v23 = vld [vmem:[#allocation9 + $0x44] ss:$16 sps:$4 sm:$0xff]  }
 0x437   :  { %3468 = vmatpush1.bf16.msra.mxu0 %v10838_v13  ;;  %3509 = vmatpush1.bf16.msra.mxu1 %v10546_v52  ;;  %v10862_v52 = vld [vmem:[#allocation9 + $0x40] ss:$16 sps:$4 sm:$0xff]  }
 0x438   :  { %3469 = vmatprep.subr.bf16.mxu0 %v10842_v16  ;;  %3510 = vmatprep.subr.bf16.mxu1 %v10550_v27  ;;  %v10866_v27 = vld [vmem:[#allocation9 + $0x24] ss:$16 sps:$4 sm:$0xff]  }
 0x43b   :  { %3470 = vmatpush1.bf16.msra.mxu0 %v10846_v19  ;;  %3511 = vmatpush1.bf16.msra.mxu1 %v10554_v29  ;;  %v10870_v29 = vld [vmem:[#allocation9 + $0x20] ss:$16 sps:$4 sm:$0xff]  }
 0x43c   :  { %3471 = vmatprep.subr.bf16.mxu0 %v10850_v34  ;;  %3512 = vmatprep.subr.bf16.mxu1 %v10558_v31  ;;  %v10874_v31 = vld [vmem:[#allocation9 + $0x4] ss:$16 sps:$4 sm:$0xff]  }
 0x43f   :  { %3472 = vmatpush1.bf16.msra.mxu0 %v10854_v21  ;;  %3513 = vmatpush1.bf16.msra.mxu1 %v10562_v33  ;;  %v10878_v33 = vld [vmem:[#allocation9] ss:$16 sps:$4 sm:$0xff]  }
 0x440   :  { %3473 = vmatprep.subr.bf16.mxu0 %v10858_v23  ;;  %3514 = vmatprep.subr.bf16.mxu1 %v10566_v35  ;;  %v12114_v35 = vld [vmem:[#allocation23_spill] sm:$0xff] }
 0x443   :  { %3474 = vmatpush1.bf16.msra.mxu0 %v10862_v52  ;;  %3515 = vmatpush1.bf16.msra.mxu1 %v10570_v37  ;;  %v12115_v37 = vld [vmem:[#allocation49_spill] sm:$0xff] }
 0x444   :  { %3475 = vmatprep.subr.bf16.mxu0 %v10866_v27  ;;  %3516 = vmatprep.subr.bf16.mxu1 %v10574_v55  ;;  %v12116_v55 = vld [vmem:[#allocation50_spill] sm:$0xff] }
 0x447   :  { %3476 = vmatpush1.bf16.msra.mxu0 %v10870_v29  ;;  %3517 = vmatpush1.bf16.msra.mxu1 %v10578_v39  ;;  %v12117_v39 = vld [vmem:[#allocation51_spill] sm:$0xff] }
 0x448   :  { %3477 = vmatprep.subr.bf16.mxu0 %v10874_v31  ;;  %3518 = vmatprep.subr.bf16.mxu1 %v10582_v1  ;;  %v12118_v1 = vld [vmem:[#allocation52_spill] sm:$0xff] }
 0x44b   :  { %3478 = vmatpush1.bf16.msra.mxu0 %v10878_v33  ;;  %3519 = vmatpush1.bf16.msra.mxu1 %v10586_v45  ;;  %v12119_v45 = vld [vmem:[#allocation53_spill] sm:$0xff] }
 0x44c   :  { %3788 = vmatprep.subr.bf16.mxu0 %v10596_v5  ;;  %3829 = vmatprep.subr.bf16.mxu1 %v10598_v54  ;;  %v12120_v5 = vld [vmem:[#allocation54_spill] sm:$0xff]  ;;  %v12121_v54 = vld [vmem:[#allocation55_spill] sm:$0xff] }
 0x44e   :  { %3496 = vmatmul.mubr.bf16.vlgmr.msra.gmra.mxu0 %v10724_v9  ;;  %3537 = vmatmul.mubr.bf16.vlgmr.msra.gmra.mxu1 %v10724_v9 }
 0x44f   :  { %3789 = vmatpush1.bf16.msra.mxu0 %v10600_v44  ;;  %3830 = vmatpush1.bf16.msra.mxu1 %v10602_v47  ;;  %v12122_v44 = vld [vmem:[#allocation56_spill] sm:$0xff]  ;;  %v12123_v47 = vld [vmem:[#allocation57_spill] sm:$0xff] }
 0x450   :  { %3790 = vmatprep.subr.bf16.mxu0 %v10608_v40  ;;  %3831 = vmatprep.subr.bf16.mxu1 %v10610_v51  ;;  %v12124_v40 = vld [vmem:[#allocation58_spill] sm:$0xff]  ;;  %v12125_v51 = vld [vmem:[#allocation59_spill] sm:$0xff] }
 0x451   :  { %3820 = vmatprep.mubr.bf16.mxu0 %v12017_v60  ;;  %3861 = vmatprep.mubr.bf16.mxu1 %v12017_v60 }
 0x453   :  { %3791 = vmatpush1.bf16.msra.mxu0 %v10612_v2  ;;  %3832 = vmatpush1.bf16.msra.mxu1 %v10614_v4  ;;  %v12126_v2 = vld [vmem:[#allocation60_spill] sm:$0xff]  ;;  %v12127_v4 = vld [vmem:[#allocation61_spill] sm:$0xff] }
 0x454   :  { %3792 = vmatprep.subr.bf16.mxu0 %v10620_v43  ;;  %3833 = vmatprep.subr.bf16.mxu1 %v10622_v53  ;;  %v12128_v43 = vld [vmem:[#allocation62_spill] sm:$0xff] }
 0x457   :  { %3793 = vmatpush1.bf16.msra.mxu0 %v10624_v48  ;;  %3834 = vmatpush1.bf16.msra.mxu1 %v10626_v57 }
 0x458   :  { %3794 = vmatprep.subr.bf16.mxu0 %v10632_v59  ;;  %3835 = vmatprep.subr.bf16.mxu1 %v10634_v62 }
 0x45b   :  { %3795 = vmatpush1.bf16.msra.mxu0 %v10636_v46  ;;  %3836 = vmatpush1.bf16.msra.mxu1 %v10638_v49 }
 0x45c   :  { %3796 = vmatprep.subr.bf16.mxu0 %v10642_v61  ;;  %3837 = vmatprep.subr.bf16.mxu1 %v10650_v6  ;;  %v12129_v6 = vld [vmem:[#allocation21_spill] sm:$0xff] }
 0x45f   :  { %3797 = vmatpush1.bf16.msra.mxu0 %v10646_v63  ;;  %3838 = vmatpush1.bf16.msra.mxu1 %v12114_v35  ;;  %v2699_v63 = vld [vmem:[%s11855_s6] sm:$0xf] }
 0x460   :  { %3798 = vmatprep.subr.bf16.mxu0 %v12115_v37  ;;  %3839 = vmatprep.subr.bf16.mxu1 %v12116_v55  ;;  %v2704_v9 = vrot.slane %v2699_v63, %v12129_v6  ;;  %v2708_v35 = vrot.slane %v2699_v63, %v12130_v11 }
 0x463   :  { %3799 = vmatpush1.bf16.msra.mxu0 %v12117_v39  ;;  %3840 = vmatpush1.bf16.msra.mxu1 %v12118_v1 }
 0x464   :  { %3800 = vmatprep.subr.bf16.mxu0 %v12119_v45  ;;  %3841 = vmatprep.subr.bf16.mxu1 %v12120_v5 }
 0x467   :  { %3801 = vmatpush1.bf16.msra.mxu0 %v12121_v54  ;;  %3842 = vmatpush1.bf16.msra.mxu1 %v12122_v44 }
 0x468   :  { %3802 = vmatprep.subr.bf16.mxu0 %v12123_v47  ;;  %3843 = vmatprep.subr.bf16.mxu1 %v12124_v40 }
 0x46b   :  { %3803 = vmatpush1.bf16.msra.mxu0 %v12125_v51  ;;  %3844 = vmatpush1.bf16.msra.mxu1 %v12126_v2 }
 0x46c   :  { %4062 = vmatprep.subr.bf16.mxu0 %v12127_v4  ;;  %4103 = vmatprep.subr.bf16.mxu1 %v12128_v43  ;;  %v2712_v4 = vrot.slane %v2699_v63, %v10247_v0 }
 0x4ce   :  { %v2915_v53 = vpop.f32.mrf.mxu0  ;;  %v2956_v48 = vpop.f32.mrf.mxu1 }
 0x4cf   :  { %v2916_v37 = vadd.f32 %v2915_v53, %v2704_v9  ;;  %v2716_v53 = vrot.slane %v2699_v63, %v10249_v3 }
 0x4d0   :  { %v2917_v57 = vpop.f32.mrf.mxu0  ;;  %v2958_v59 = vpop.f32.mrf.mxu1 }
 0x4d1   :  { %v2918_v1 = vadd.f32 %v2917_v57, %v2708_v35 }
 0x4d2   :  { %v2919_v62 = vpop.f32.mrf.mxu0  ;;  %v2960_v46 = vpop.f32.mrf.mxu1 }
 0x4d3   :  { %v2957_v46 = vadd.f32 %v2956_v48, %v2712_v4 }
 0x4d4   :  { %v2920_v49 = vpop.f32.mrf.mxu0  ;;  %v2961_v61 = vpop.f32.mrf.mxu1 }
 0x4d5   :  { %v2959_v61 = vadd.f32 %v2958_v59, %v2716_v53 }
 0x4ee   :  { %v3189_v55 = vpop.f32.mrf.mxu0  ;;  %v3230_v39 = vpop.f32.mrf.mxu1 }
 0x4ef   :  { %v3237_v45 = vadd.f32 %v3189_v55, %v2916_v37  ;;  %v3239_v49 = vadd.f32 %v3230_v39, %v2957_v46 }
 0x4f0   :  { %v3191_v5 = vpop.f32.mrf.mxu0  ;;  %v3232_v54 = vpop.f32.mrf.mxu1 }
 0x4f1   :  { %v8352_v44 = vmul.f32 -1.442695, %v3237_v45  ;;  %v3238_v47 = vadd.f32 %v3191_v5, %v2918_v1  ;;  %v8354_v57 = vmul.f32 -1.442695, %v3239_v49  ;;  %v3240_v35 = vadd.f32 %v3232_v54, %v2959_v61 }
 0x4f2   :  { %v3193_v40 = vpop.f32.mrf.mxu0  ;;  %v3234_v51 = vpop.f32.mrf.mxu1 }
 0x4f3   :  { %9652 = vpow2.f32 %v8352_v44  ;;  %v8353_v2 = vmul.f32 -1.442695, %v3238_v47  ;;  %v12131_v47 = vld [vmem:[#allocation24_spill] sm:$0xff]  ;;  %v12133_v51 = vld [vmem:[#allocation27_spill] sm:$0xff] }
 0x4f4   :  { %v3194_v43 = vpop.f32.mrf.mxu0  ;;  %v3235_v62 = vpop.f32.mrf.mxu1  ;;  %v12132_v40 = vld [vmem:[#allocation28_spill] sm:$0xff] }
 0x4f5   :  { %9654 = vpow2.f32 %v8353_v2  ;;  %v413_v48 = vadd.f32 %v12132_v40, %v12131_v47 }
 0x4f6   :  { %9656 = vpow2.f32 %v8354_v57 }
 0x500   :  { %v9653_v9 = vpop.eup %9652 }
 0x501   :  { %v3250_v37 = vadd.f32 1.0, %v9653_v9 }
 0x502   :  { %v9655_v55 = vpop.eup %9654 }
 0x503   :  { %9658 = vrcp.f32 %v3250_v37  ;;  %v3251_v1 = vadd.f32 1.0, %v9655_v55  ;;  %v9657_v44 = vpop.eup %9656 }
 0x504   :  { %9660 = vtanh.f32 %v3240_v35  ;;  %v3252_v46 = vadd.f32 1.0, %v9657_v44 }
 0x505   :  { %9662 = vrcp.f32 %v3251_v1  ;;  %v12134_v1 = vld [vmem:[#allocation39_spill] sm:$0xff] }
 0x50e   :  { %v3497_v45 = vpop.f32.mrf.mxu0  ;;  %v3538_v5 = vpop.f32.mrf.mxu1 }
 0x50f   :  { %v3545_v63 = vadd.f32 %v3497_v45, %v12133_v51  ;;  %v3547_v45 = vadd.f32 %v3538_v5, %v12134_v1  ;;  %v12149_v1 = vld [vmem:[#allocation76_spill] sm:$0xff] }
 0x510   :  { %v9659_v39 = vpop.eup %9658  ;;  %v3499_v59 = vpop.f32.mrf.mxu0 }
 0x511   :  { %v3540_v2 = vpop.f32.mrf.mxu1  ;;  %v9661_v4 = vpop.eup %9660  ;;  %v8387_v54 = vmul.f32 -1.442695, %v3545_v63  ;;  %v3546_v43 = vadd.f32 %v3499_v59, %v413_v48  ;;  %v8389_v40 = vmul.f32 -1.442695, %v3547_v45  ;;  %v12135_v48 = vld [vmem:[#allocation40_spill] sm:$0xff] }
 0x512   :  { %v9663_v62 = vpop.eup %9662  ;;  %v3501_v53 = vpop.f32.mrf.mxu0  ;;  %v3261_v57 = vmul.f32 %v9661_v4, %v9659_v39  ;;  %v3548_v44 = vadd.f32 %v3540_v2, %v12135_v48  ;;  %v10980_v45 = vld [vmem:[#allocation9 + $0xe8] ss:$16 sps:$4 sm:$0xff]   ;;  %v11062_v48 = vld [vmem:[#allocation10 + $0xcc] ss:$16 sps:$4 sm:$0xff]  }
 0x513   :  { %v3542_v49 = vpop.f32.mrf.mxu1  ;;  %v3260_v61 = vmul.f32 %v9663_v62, %v10708_v32  ;;  %9664 = vpow2.f32 %v8387_v54  ;;  %v8388_v9 = vmul.f32 -1.442695, %v3546_v43 }
 0x514   :  { %v3502_v35 = vpop.f32.mrf.mxu0 }
 0x515   :  { %v3543_v37 = vpop.f32.mrf.mxu1  ;;  %v10933_v55 = vadd.f32 %v3261_v57, %v3260_v61  ;;  %9666 = vpow2.f32 %v8388_v9 }
 0x516   :  { %9668 = vrcp.f32 %v3252_v46 }
 0x517   :  { %9670 = vtanh.f32 %v10933_v55 }
 0x518   :  { %9672 = vpow2.f32 %v8389_v40 }
 0x519   :  { %9674 = vtanh.f32 %v3548_v44  ;;  %v11064_v44 = vld [vmem:[#allocation10 + $0xc0] ss:$16 sps:$4 sm:$0xff]  }
 0x520   :  { %v9665_v51 = vpop.eup %9664 }
 0x521   :  { %v3558_v63 = vadd.f32 1.0, %v9665_v51  ;;  %v11066_v51 = vld [vmem:[#allocation10 + $0xc8] ss:$16 sps:$4 sm:$0xff]  }
 0x522   :  { %v9667_v32 = vpop.eup %9666 }
 0x523   :  { %v9669_v39 = vpop.eup %9668  ;;  %9676 = vrcp.f32 %v3558_v63  ;;  %v3559_v59 = vadd.f32 1.0, %v9667_v32  ;;  %v11072_v63 = vld [vmem:[#allocation10 + $0xa4] ss:$16 sps:$4 sm:$0xff]   ;;  %v11074_v32 = vld [vmem:[#allocation10 + $0xac] ss:$16 sps:$4 sm:$0xff]  }
 0x524   :  { %v9671_v4 = vpop.eup %9670 }
 0x525   :  { %9678 = vrcp.f32 %v3559_v59  ;;  %v3264_v54 = vmul.f32 %v9671_v4, %v9669_v39  ;;  %v9673_v43 = vpop.eup %9672  ;;  %v11076_v39 = vld [vmem:[#allocation10 + $0xa0] ss:$16 sps:$4 sm:$0xff]   ;;  %v11078_v59 = vld [vmem:[#allocation10 + $0xa8] ss:$16 sps:$4 sm:$0xff]   ;;  %v11084_v4 = vld [vmem:[#allocation10 + $0x84] ss:$16 sps:$4 sm:$0xff]  }
 0x526   :  { %v9675_v62 = vpop.eup %9674  ;;  %v3560_v49 = vadd.f32 1.0, %v9673_v43  ;;  %v11088_v43 = vld [vmem:[#allocation10 + $0x80] ss:$16 sps:$4 sm:$0xff]  }
 0x527   :  { %3266 = vst [vmem:[#allocation3 + $0x10] sm:$0x7f] %v3264_v54  ;;  %v3265_v40 = vpack.c.bf16 %v3264_v54, %v3264_v54  ;;  %v11086_v54 = vld [vmem:[#allocation10 + $0x8c] ss:$16 sps:$4 sm:$0xff]  }
 0x528   :  { %9680 = vrcp.f32 %v3560_v49  ;;  %v11102_v49 = vld [vmem:[#allocation10 + $0x6c] ss:$16 sps:$4 sm:$0xff]  }
 0x530   :  { %v9677_v46 = vpop.eup %9676 }
 0x531   :  { %v3569_v53 = vmul.f32 %v9677_v46, %v9675_v62  ;;  %v11090_v62 = vld [vmem:[#allocation10 + $0x88] ss:$16 sps:$4 sm:$0xff]   ;;  %v11094_v46 = vld [vmem:[#allocation10 + $0x64] ss:$16 sps:$4 sm:$0xff]  }
 0x532   :  { %v9679_v5 = vpop.eup %9678 }
 0x533   :  { %v3568_v2 = vmul.f32 %v9679_v5, %v10717_v20  ;;  %v12136_v20 = vld [vmem:[#allocation63_spill] sm:$0xff]  ;;  %v11100_v5 = vld [vmem:[#allocation10 + $0x68] ss:$16 sps:$4 sm:$0xff]  }
 0x534   :  { %12150 = vst [vmem:[#allocation77_spill] sm:$0xff] %v11100_v5 }
 0x535   :  { %v10939_v61 = vadd.f32 %v3569_v53, %v3568_v2  ;;  %v9681_v57 = vpop.eup %9680  ;;  %v11098_v53 = vld [vmem:[#allocation10 + $0x60] ss:$16 sps:$4 sm:$0xff]   ;;  %v11105_v2 = vld [vmem:[#allocation10 + $0x44] ss:$16 sps:$4 sm:$0xff]  }
 0x536   :  { %12151 = vst [vmem:[#allocation78_spill] sm:$0xff] %v11105_v2 }
 0x537   :  { %9682 = vtanh.f32 %v10939_v61 }
 0x544   :  { %v9683_v9 = vpop.eup %9682 }
 0x545   :  { %v3572_v35 = vmul.f32 %v9683_v9, %v9681_v57  ;;  %v11107_v57 = vld [vmem:[#allocation10 + $0x4c] ss:$16 sps:$4 sm:$0xff]   ;;  %v11112_v9 = vld [vmem:[#allocation10 + $0x40] ss:$16 sps:$4 sm:$0xff]  }
 0x546   :  { %12152 = vst [vmem:[#allocation79_spill] sm:$0xff] %v11107_v57  ;;  %12153 = vst [vmem:[#allocation25_spill] sm:$0xff] %v11112_v9 }
 0x547   :  { %v10942_v37 = vpack.c.bf16 %v3572_v35, %v3572_v35  ;;  %v11114_v35 = vld [vmem:[#allocation10 + $0x48] ss:$16 sps:$4 sm:$0xff]  }
 0x548   :  { %12154 = vst [vmem:[#allocation26_spill] sm:$0xff] %v11114_v35 }
 0x549   :  { %3821 = vmatmul.mubr.bf16.vlgmr.msra.gmra.mxu0 %v10942_v37  ;;  %3862 = vmatmul.mubr.bf16.vlgmr.msra.gmra.mxu1 %v10942_v37 }
 0x54a   :  { %4063 = vmatpush1.bf16.msra.mxu0 %v10720_v24  ;;  %4104 = vmatpush1.bf16.msra.mxu1 %v10722_v12  ;;  %v12137_v24 = vld [vmem:[#allocation64_spill] sm:$0xff]  ;;  %v12138_v12 = vld [vmem:[#allocation65_spill] sm:$0xff] }
 0x54b   :  { %4064 = vmatprep.subr.bf16.mxu0 %v10726_v10  ;;  %4105 = vmatprep.subr.bf16.mxu1 %v10728_v41  ;;  %v12139_v10 = vld [vmem:[#allocation66_spill] sm:$0xff]  ;;  %v12140_v41 = vld [vmem:[#allocation67_spill] sm:$0xff] }
 0x54c   :  { %4094 = vmatprep.mubr.bf16.mxu0 %v12017_v60  ;;  %4135 = vmatprep.mubr.bf16.mxu1 %v12017_v60 }
 0x54e   :  { %4065 = vmatpush1.bf16.msra.mxu0 %v10734_v58  ;;  %4106 = vmatpush1.bf16.msra.mxu1 %v10736_v7  ;;  %v12141_v58 = vld [vmem:[#allocation68_spill] sm:$0xff]  ;;  %v12142_v7 = vld [vmem:[#allocation69_spill] sm:$0xff] }
 0x54f   :  { %4066 = vmatprep.subr.bf16.mxu0 %v10740_v36  ;;  %4107 = vmatprep.subr.bf16.mxu1 %v10742_v30  ;;  %v12143_v36 = vld [vmem:[#allocation70_spill] sm:$0xff]  ;;  %v12144_v30 = vld [vmem:[#allocation71_spill] sm:$0xff] }
 0x552   :  { %4067 = vmatpush1.bf16.msra.mxu0 %v10748_v25  ;;  %4108 = vmatpush1.bf16.msra.mxu1 %v10750_v8  ;;  %v12145_v25 = vld [vmem:[#allocation72_spill] sm:$0xff]  ;;  %v12146_v8 = vld [vmem:[#allocation73_spill] sm:$0xff] }
 0x553   :  { %4068 = vmatprep.subr.bf16.mxu0 %v10754_v42  ;;  %4109 = vmatprep.subr.bf16.mxu1 %v10756_v14  ;;  %v12147_v42 = vld [vmem:[#allocation74_spill] sm:$0xff] }
 0x554   :  { %v10976_v14 = vld [vmem:[#allocation9 + $0xec] ss:$16 sps:$4 sm:$0xff]  }
 0x556   :  { %4069 = vmatpush1.bf16.msra.mxu0 %v10760_v38  ;;  %4110 = vmatpush1.bf16.msra.mxu1 %v12136_v20  ;;  %v12148_v38 = vld [vmem:[#allocation75_spill] sm:$0xff]  ;;  %v11120_v20 = vld [vmem:[#allocation10 + $0x2c] ss:$16 sps:$4 sm:$0xff]  }
 0x557   :  { %4070 = vmatprep.subr.bf16.mxu0 %v12137_v24  ;;  %4111 = vmatprep.subr.bf16.mxu1 %v12138_v12  ;;  %12156 = vst [vmem:[#allocation38_spill] sm:$0xff] %v11120_v20  ;;  %v11124_v24 = vld [vmem:[#allocation10 + $0x20] ss:$16 sps:$4 sm:$0xff]   ;;  %v11126_v12 = vld [vmem:[#allocation10 + $0x28] ss:$16 sps:$4 sm:$0xff]  }
 0x558   :  { %12157 = vst [vmem:[#allocation23_spill] sm:$0xff] %v11124_v24  ;;  %12158 = vst [vmem:[#allocation49_spill] sm:$0xff] %v11126_v12 }
 0x55a   :  { %4071 = vmatpush1.bf16.msra.mxu0 %v12139_v10  ;;  %4112 = vmatpush1.bf16.msra.mxu1 %v12140_v41  ;;  %v11130_v10 = vld [vmem:[#allocation10 + $0x4] ss:$16 sps:$4 sm:$0xff]   ;;  %v11132_v41 = vld [vmem:[#allocation10 + $0xc] ss:$16 sps:$4 sm:$0xff]  }
 0x55b   :  { %4072 = vmatprep.subr.bf16.mxu0 %v12141_v58  ;;  %4113 = vmatprep.subr.bf16.mxu1 %v12142_v7  ;;  %12159 = vst [vmem:[#allocation50_spill] sm:$0xff] %v11130_v10  ;;  %12160 = vst [vmem:[#allocation51_spill] sm:$0xff] %v11132_v41  ;;  %v11136_v58 = vld [vmem:[#allocation10] ss:$16 sps:$4 sm:$0xff]   ;;  %v11138_v7 = vld [vmem:[#allocation10 + $0x8] ss:$16 sps:$4 sm:$0xff]  }
 0x55c   :  { %12161 = vst [vmem:[#allocation52_spill] sm:$0xff] %v11136_v58  ;;  %12162 = vst [vmem:[#allocation53_spill] sm:$0xff] %v11138_v7 }
 0x55e   :  { %4073 = vmatpush1.bf16.msra.mxu0 %v12143_v36  ;;  %4114 = vmatpush1.bf16.msra.mxu1 %v12144_v30  ;;  %v11142_v36 = vld [vmem:[#allocation12 + $0xe4] ss:$16 sps:$4 sm:$0xff]   ;;  %v11144_v30 = vld [vmem:[#allocation12 + $0xec] ss:$16 sps:$4 sm:$0xff]  }
 0x55f   :  { %4074 = vmatprep.subr.bf16.mxu0 %v10790_v50  ;;  %4115 = vmatprep.subr.bf16.mxu1 %v12145_v25  ;;  %v10984_v50 = vld [vmem:[#allocation9 + $0xcc] ss:$16 sps:$4 sm:$0xff]   ;;  %12163 = vst [vmem:[#allocation54_spill] sm:$0xff] %v11142_v36  ;;  %12164 = vst [vmem:[#allocation55_spill] sm:$0xff] %v11144_v30 }
 0x562   :  { %4075 = vmatpush1.bf16.msra.mxu0 %v12146_v8  ;;  %4116 = vmatpush1.bf16.msra.mxu1 %v12147_v42 }
 0x563   :  { %4076 = vmatprep.subr.bf16.mxu0 %v10802_v17  ;;  %4117 = vmatprep.subr.bf16.mxu1 %v10804_v18  ;;  %v10988_v17 = vld [vmem:[#allocation9 + $0xc8] ss:$16 sps:$4 sm:$0xff]   ;;  %v10992_v18 = vld [vmem:[#allocation9 + $0xac] ss:$16 sps:$4 sm:$0xff]  }
 0x566   :  { %4077 = vmatpush1.bf16.msra.mxu0 %v12148_v38  ;;  %4118 = vmatpush1.bf16.msra.mxu1 %v12149_v1 }
 0x567   :  { %4370 = vmatprep.subr.bf16.mxu0 %v10814_v15  ;;  %4411 = vmatprep.subr.bf16.mxu1 %v10976_v14  ;;  %v10998_v15 = vld [vmem:[#allocation9 + $0xa8] ss:$16 sps:$4 sm:$0xff]  }
 0x569   :  { %4095 = vmatmul.mubr.bf16.vlgmr.msra.gmra.mxu0 %v3265_v40  ;;  %4136 = vmatmul.mubr.bf16.vlgmr.msra.gmra.mxu1 %v3265_v40 }
 0x56a   :  { %4371 = vmatpush1.bf16.msra.mxu0 %v10818_v26  ;;  %4412 = vmatpush1.bf16.msra.mxu1 %v10980_v45  ;;  %v11002_v26 = vld [vmem:[#allocation9 + $0x8c] ss:$16 sps:$4 sm:$0xff]  }
 0x56b   :  { %4372 = vmatprep.subr.bf16.mxu0 %v10824_v56  ;;  %4413 = vmatprep.subr.bf16.mxu1 %v10984_v50  ;;  %v11006_v56 = vld [vmem:[#allocation9 + $0x88] ss:$16 sps:$4 sm:$0xff]  }
 0x56c   :  { %4402 = vmatprep.mubr.bf16.mxu0 %v12017_v60  ;;  %4443 = vmatprep.mubr.bf16.mxu1 %v12017_v60 }
 0x56e   :  { %4373 = vmatpush1.bf16.msra.mxu0 %v10828_v28  ;;  %4414 = vmatpush1.bf16.msra.mxu1 %v10988_v17  ;;  %v11010_v28 = vld [vmem:[#allocation9 + $0x6c] ss:$16 sps:$4 sm:$0xff]  }
 0x56f   :  { %4374 = vmatprep.subr.bf16.mxu0 %v10832_v22  ;;  %4415 = vmatprep.subr.bf16.mxu1 %v10992_v18  ;;  %v11014_v22 = vld [vmem:[#allocation9 + $0x68] ss:$16 sps:$4 sm:$0xff]  }
 0x572   :  { %4375 = vmatpush1.bf16.msra.mxu0 %v10838_v13  ;;  %4416 = vmatpush1.bf16.msra.mxu1 %v10998_v15  ;;  %v11018_v13 = vld [vmem:[#allocation9 + $0x4c] ss:$16 sps:$4 sm:$0xff]  }
 0x573   :  { %4376 = vmatprep.subr.bf16.mxu0 %v10842_v16  ;;  %4417 = vmatprep.subr.bf16.mxu1 %v11002_v26  ;;  %v11022_v16 = vld [vmem:[#allocation9 + $0x48] ss:$16 sps:$4 sm:$0xff]  }
 0x576   :  { %4377 = vmatpush1.bf16.msra.mxu0 %v10846_v19  ;;  %4418 = vmatpush1.bf16.msra.mxu1 %v11006_v56  ;;  %v11026_v19 = vld [vmem:[#allocation9 + $0x2c] ss:$16 sps:$4 sm:$0xff]  }
 0x577   :  { %4378 = vmatprep.subr.bf16.mxu0 %v10850_v34  ;;  %4419 = vmatprep.subr.bf16.mxu1 %v11010_v28  ;;  %v11030_v34 = vld [vmem:[#allocation9 + $0x28] ss:$16 sps:$4 sm:$0xff]  }
 0x57a   :  { %4379 = vmatpush1.bf16.msra.mxu0 %v10854_v21  ;;  %4420 = vmatpush1.bf16.msra.mxu1 %v11014_v22  ;;  %v11034_v21 = vld [vmem:[#allocation9 + $0xc] ss:$16 sps:$4 sm:$0xff]  }
 0x57b   :  { %4380 = vmatprep.subr.bf16.mxu0 %v10858_v23  ;;  %4421 = vmatprep.subr.bf16.mxu1 %v11018_v13  ;;  %v11038_v23 = vld [vmem:[#allocation9 + $0x8] ss:$16 sps:$4 sm:$0xff]  }
 0x57e   :  { %4381 = vmatpush1.bf16.msra.mxu0 %v10862_v52  ;;  %4422 = vmatpush1.bf16.msra.mxu1 %v11022_v16  ;;  %v11048_v52 = vld [vmem:[#allocation10 + $0xe4] ss:$16 sps:$4 sm:$0xff]  }
 0x57f   :  { %4382 = vmatprep.subr.bf16.mxu0 %v10866_v27  ;;  %4423 = vmatprep.subr.bf16.mxu1 %v11026_v19  ;;  %v11050_v27 = vld [vmem:[#allocation10 + $0xec] ss:$16 sps:$4 sm:$0xff]  }
 0x582   :  { %4383 = vmatpush1.bf16.msra.mxu0 %v10870_v29  ;;  %4424 = vmatpush1.bf16.msra.mxu1 %v11030_v34  ;;  %v11052_v29 = vld [vmem:[#allocation10 + $0xe0] ss:$16 sps:$4 sm:$0xff]  }
 0x583   :  { %4384 = vmatprep.subr.bf16.mxu0 %v10874_v31  ;;  %4425 = vmatprep.subr.bf16.mxu1 %v11034_v21  ;;  %v11054_v31 = vld [vmem:[#allocation10 + $0xe8] ss:$16 sps:$4 sm:$0xff]  }
 0x586   :  { %4385 = vmatpush1.bf16.msra.mxu0 %v10878_v33  ;;  %4426 = vmatpush1.bf16.msra.mxu1 %v11038_v23  ;;  %v11060_v33 = vld [vmem:[#allocation10 + $0xc4] ss:$16 sps:$4 sm:$0xff]  }
 0x587   :  { %4695 = vmatprep.subr.bf16.mxu0 %v11048_v52  ;;  %4736 = vmatprep.subr.bf16.mxu1 %v11050_v27 }
 0x589   :  { %4403 = vmatmul.mubr.bf16.vlgmr.msra.gmra.mxu0 %v10942_v37  ;;  %4444 = vmatmul.mubr.bf16.vlgmr.msra.gmra.mxu1 %v10942_v37  ;;  %v11118_v37 = vld [vmem:[#allocation10 + $0x24] ss:$16 sps:$4 sm:$0xff]  }
 0x58a   :  { %4727 = vmatprep.mubr.bf16.mxu0 %v12017_v60  ;;  %4768 = vmatprep.mubr.bf16.mxu1 %v12017_v60  ;;  %12155 = vst [vmem:[#allocation37_spill] sm:$0xff] %v11118_v37 }
 0x58b   :  { %4696 = vmatpush1.bf16.msra.mxu0 %v11052_v29  ;;  %4737 = vmatpush1.bf16.msra.mxu1 %v11054_v31 }
 0x58c   :  { %4697 = vmatprep.subr.bf16.mxu0 %v11060_v33  ;;  %4738 = vmatprep.subr.bf16.mxu1 %v11062_v48 }
 0x58f   :  { %4698 = vmatpush1.bf16.msra.mxu0 %v11064_v44  ;;  %4739 = vmatpush1.bf16.msra.mxu1 %v11066_v51 }
 0x590   :  { %4699 = vmatprep.subr.bf16.mxu0 %v11072_v63  ;;  %4740 = vmatprep.subr.bf16.mxu1 %v11074_v32 }
 0x593   :  { %4700 = vmatpush1.bf16.msra.mxu0 %v11076_v39  ;;  %4741 = vmatpush1.bf16.msra.mxu1 %v11078_v59 }
 0x594   :  { %4701 = vmatprep.subr.bf16.mxu0 %v11084_v4  ;;  %4742 = vmatprep.subr.bf16.mxu1 %v11086_v54 }
 0x597   :  { %4702 = vmatpush1.bf16.msra.mxu0 %v11088_v43  ;;  %4743 = vmatpush1.bf16.msra.mxu1 %v11090_v62 }
 0x598   :  { %4703 = vmatprep.subr.bf16.mxu0 %v11094_v46  ;;  %4744 = vmatprep.subr.bf16.mxu1 %v11102_v49 }
 0x59b   :  { %4704 = vmatpush1.bf16.msra.mxu0 %v11098_v53  ;;  %4745 = vmatpush1.bf16.msra.mxu1 %v11100_v5 }
 0x59c   :  { %4705 = vmatprep.subr.bf16.mxu0 %v11105_v2  ;;  %4746 = vmatprep.subr.bf16.mxu1 %v11107_v57 }
 0x59f   :  { %4706 = vmatpush1.bf16.msra.mxu0 %v11112_v9  ;;  %4747 = vmatpush1.bf16.msra.mxu1 %v11114_v35 }
 0x5a0   :  { %4707 = vmatprep.subr.bf16.mxu0 %v11118_v37  ;;  %4748 = vmatprep.subr.bf16.mxu1 %v11120_v20 }
 0x5a3   :  { %4708 = vmatpush1.bf16.msra.mxu0 %v11124_v24  ;;  %4749 = vmatpush1.bf16.msra.mxu1 %v11126_v12 }
 0x5a4   :  { %4709 = vmatprep.subr.bf16.mxu0 %v11130_v10  ;;  %4750 = vmatprep.subr.bf16.mxu1 %v11132_v41  ;;  %v3606_v10 = vld [vmem:[%s11855_s6] sm:$0xf] }
 0x5a5   :  { %v3619_v57 = vrot.slane %v3606_v10, %v10247_v0 }
 0x5a7   :  { %4710 = vmatpush1.bf16.msra.mxu0 %v11136_v58  ;;  %4751 = vmatpush1.bf16.msra.mxu1 %v11138_v7  ;;  %v3611_v58 = vrot.slane %v3606_v10, %v12129_v6  ;;  %v3615_v7 = vrot.slane %v3606_v10, %v12130_v11 }
 0x5a8   :  { %4969 = vmatprep.subr.bf16.mxu0 %v11142_v36  ;;  %5010 = vmatprep.subr.bf16.mxu1 %v11144_v30 }
 0x609   :  { %v3822_v25 = vpop.f32.mrf.mxu0  ;;  %v3863_v8 = vpop.f32.mrf.mxu1 }
 0x60a   :  { %v3823_v12 = vadd.f32 %v3822_v25, %v3611_v58  ;;  %v3864_v6 = vadd.f32 %v3863_v8, %v3619_v57  ;;  %v3623_v58 = vrot.slane %v3606_v10, %v10249_v3 }
 0x60b   :  { %v3824_v42 = vpop.f32.mrf.mxu0  ;;  %v3865_v38 = vpop.f32.mrf.mxu1 }
 0x60c   :  { %v3825_v30 = vadd.f32 %v3824_v42, %v3615_v7  ;;  %v3866_v11 = vadd.f32 %v3865_v38, %v3623_v58  ;;  %v12166_v38 = vld [vmem:[#allocation30_spill] sm:$0xff] }
 0x60d   :  { %v3826_v1 = vpop.f32.mrf.mxu0  ;;  %v3867_v40 = vpop.f32.mrf.mxu1 }
 0x60f   :  { %v3827_v47 = vpop.f32.mrf.mxu0  ;;  %v3868_v41 = vpop.f32.mrf.mxu1 }
 0x629   :  { %v4096_v36 = vpop.f32.mrf.mxu0  ;;  %v4137_v24 = vpop.f32.mrf.mxu1 }
 0x62a   :  { %v4144_v20 = vadd.f32 %v4096_v36, %v3823_v12  ;;  %v4146_v25 = vadd.f32 %v4137_v24, %v3864_v6 }
 0x62b   :  { %v4098_v37 = vpop.f32.mrf.mxu0  ;;  %v4139_v35 = vpop.f32.mrf.mxu1 }
 0x62c   :  { %v8454_v9 = vmul.f32 -1.442695, %v4144_v20  ;;  %v4145_v1 = vadd.f32 %v4098_v37, %v3825_v30  ;;  %v8456_v7 = vmul.f32 -1.442695, %v4146_v25  ;;  %v4147_v36 = vadd.f32 %v4139_v35, %v3866_v11 }
 0x62d   :  { %v4100_v40 = vpop.f32.mrf.mxu0  ;;  %v4141_v47 = vpop.f32.mrf.mxu1 }
 0x62e   :  { %9684 = vpow2.f32 %v8454_v9  ;;  %v8455_v41 = vmul.f32 -1.442695, %v4145_v1 }
 0x62f   :  { %v4101_v2 = vpop.f32.mrf.mxu0  ;;  %v4142_v5 = vpop.f32.mrf.mxu1 }
 0x630   :  { %9686 = vpow2.f32 %v8455_v41  ;;  %v12165_v5 = vld [vmem:[#allocation29_spill] sm:$0xff] }
 0x631   :  { %9688 = vpow2.f32 %v8456_v7 }
 0x63b   :  { %v9685_v12 = vpop.eup %9684 }
 0x63c   :  { %v4157_v42 = vadd.f32 1.0, %v9685_v12 }
 0x63d   :  { %v9687_v20 = vpop.eup %9686 }
 0x63e   :  { %9690 = vrcp.f32 %v4157_v42  ;;  %v4158_v37 = vadd.f32 1.0, %v9687_v20  ;;  %v9689_v2 = vpop.eup %9688  ;;  %v12167_v20 = vld [vmem:[#allocation41_spill] sm:$0xff] }
 0x63f   :  { %9692 = vtanh.f32 %v4147_v36  ;;  %v4159_v35 = vadd.f32 1.0, %v9689_v2 }
 0x640   :  { %9694 = vrcp.f32 %v4158_v37 }
 0x649   :  { %v4404_v9 = vpop.f32.mrf.mxu0  ;;  %v4445_v30 = vpop.f32.mrf.mxu1 }
 0x64a   :  { %v4452_v1 = vadd.f32 %v4404_v9, %v12165_v5  ;;  %v4454_v37 = vadd.f32 %v4445_v30, %v12167_v20  ;;  %v12168_v5 = vld [vmem:[#allocation42_spill] sm:$0xff] }
 0x64b   :  { %v9691_v57 = vpop.eup %9690  ;;  %v4406_v8 = vpop.f32.mrf.mxu0  ;;  %v11174_v20 = vld [vmem:[#allocation12 + $0xe8] ss:$16 sps:$4 sm:$0xff]  }
 0x64c   :  { %v4447_v10 = vpop.f32.mrf.mxu1  ;;  %v9693_v6 = vpop.eup %9692  ;;  %v8489_v24 = vmul.f32 -1.442695, %v4452_v1  ;;  %v4453_v40 = vadd.f32 %v4406_v8, %v12166_v38  ;;  %v8491_v9 = vmul.f32 -1.442695, %v4454_v37 }
 0x64d   :  { %v9695_v11 = vpop.eup %9694  ;;  %v4408_v47 = vpop.f32.mrf.mxu0  ;;  %v4168_v25 = vmul.f32 %v9693_v6, %v9691_v57  ;;  %v4455_v2 = vadd.f32 %v4447_v10, %v12168_v5  ;;  %v11180_v5 = vld [vmem:[#allocation12 + $0xcc] ss:$16 sps:$4 sm:$0xff]  }
 0x64e   :  { %v4449_v41 = vpop.f32.mrf.mxu1  ;;  %v4167_v58 = vmul.f32 %v9695_v11, %v10933_v55  ;;  %9696 = vpow2.f32 %v8489_v24  ;;  %v8490_v7 = vmul.f32 -1.442695, %v4453_v40 }
 0x64f   :  { %v4409_v12 = vpop.f32.mrf.mxu0 }
 0x650   :  { %v4450_v36 = vpop.f32.mrf.mxu1  ;;  %v11160_v42 = vadd.f32 %v4168_v25, %v4167_v58  ;;  %9698 = vpow2.f32 %v8490_v7 }
 0x651   :  { %9700 = vrcp.f32 %v4159_v35  ;;  %v11172_v36 = vld [vmem:[#allocation12 + $0xe0] ss:$16 sps:$4 sm:$0xff]  }
 0x652   :  { %9702 = vtanh.f32 %v11160_v42 }
 0x653   :  { %9704 = vpow2.f32 %v8491_v9  ;;  %v11178_v9 = vld [vmem:[#allocation12 + $0xc4] ss:$16 sps:$4 sm:$0xff]  }
 0x654   :  { %9706 = vtanh.f32 %v4455_v2  ;;  %v11188_v2 = vld [vmem:[#allocation12 + $0xc8] ss:$16 sps:$4 sm:$0xff]  }
 0x65b   :  { %v9697_v1 = vpop.eup %9696 }
 0x65c   :  { %v4465_v8 = vadd.f32 1.0, %v9697_v1  ;;  %v11192_v1 = vld [vmem:[#allocation12 + $0xa4] ss:$16 sps:$4 sm:$0xff]  }
 0x65d   :  { %v9699_v55 = vpop.eup %9698 }
 0x65e   :  { %v9701_v57 = vpop.eup %9700  ;;  %9708 = vrcp.f32 %v4465_v8  ;;  %v4466_v6 = vadd.f32 1.0, %v9699_v55  ;;  %v11194_v8 = vld [vmem:[#allocation12 + $0xac] ss:$16 sps:$4 sm:$0xff]   ;;  %v11200_v55 = vld [vmem:[#allocation12 + $0xa0] ss:$16 sps:$4 sm:$0xff]  }
 0x65f   :  { %v9703_v24 = vpop.eup %9702 }
 0x660   :  { %9710 = vrcp.f32 %v4466_v6  ;;  %v11165_v38 = vmul.f32 %v9703_v24, %v9701_v57  ;;  %v9705_v40 = vpop.eup %9704  ;;  %v11202_v57 = vld [vmem:[#allocation12 + $0xa8] ss:$16 sps:$4 sm:$0xff]   ;;  %v11206_v6 = vld [vmem:[#allocation12 + $0x84] ss:$16 sps:$4 sm:$0xff]   ;;  %v11208_v24 = vld [vmem:[#allocation12 + $0x8c] ss:$16 sps:$4 sm:$0xff]  }
 0x661   :  { %v9707_v11 = vpop.eup %9706  ;;  %v4467_v10 = vadd.f32 1.0, %v9705_v40  ;;  %v11212_v40 = vld [vmem:[#allocation12 + $0x80] ss:$16 sps:$4 sm:$0xff]  }
 0x662   :  { %4173 = vst [vmem:[#allocation3 + $0x17] sm:$0x3f] %v11165_v38 }
 0x663   :  { %9712 = vrcp.f32 %v4467_v10  ;;  %v11226_v10 = vld [vmem:[#allocation12 + $0x68] ss:$16 sps:$4 sm:$0xff]  }
 0x664   :  { %12173 = vst [vmem:[#allocation60_spill] sm:$0xff] %v11226_v10 }
 0x66b   :  { %v9709_v30 = vpop.eup %9708 }
 0x66c   :  { %v4476_v35 = vmul.f32 %v9709_v30, %v9707_v11  ;;  %v11214_v11 = vld [vmem:[#allocation12 + $0x88] ss:$16 sps:$4 sm:$0xff]   ;;  %v11218_v30 = vld [vmem:[#allocation12 + $0x64] ss:$16 sps:$4 sm:$0xff]  }
 0x66d   :  { %v9711_v47 = vpop.eup %9710  ;;  %12169 = vst [vmem:[#allocation56_spill] sm:$0xff] %v11214_v11  ;;  %12170 = vst [vmem:[#allocation57_spill] sm:$0xff] %v11218_v30 }
 0x66e   :  { %v4475_v41 = vmul.f32 %v9711_v47, %v10939_v61  ;;  %v11186_v61 = vld [vmem:[#allocation12 + $0xc0] ss:$16 sps:$4 sm:$0xff]  }
 0x66f   :  { %v11224_v47 = vld [vmem:[#allocation12 + $0x60] ss:$16 sps:$4 sm:$0xff]  }
 0x670   :  { %v11169_v58 = vadd.f32 %v4476_v35, %v4475_v41  ;;  %v9713_v25 = vpop.eup %9712  ;;  %v11220_v35 = vld [vmem:[#allocation12 + $0x6c] ss:$16 sps:$4 sm:$0xff]   ;;  %12172 = vst [vmem:[#allocation59_spill] sm:$0xff] %v11224_v47  ;;  %v11230_v41 = vld [vmem:[#allocation12 + $0x44] ss:$16 sps:$4 sm:$0xff]  }
 0x671   :  { %12171 = vst [vmem:[#allocation58_spill] sm:$0xff] %v11220_v35  ;;  %12174 = vst [vmem:[#allocation61_spill] sm:$0xff] %v11230_v41 }
 0x672   :  { %9714 = vtanh.f32 %v11169_v58 }
 0x67f   :  { %v9715_v7 = vpop.eup %9714 }
 0x680   :  { %v4479_v12 = vmul.f32 %v9715_v7, %v9713_v25  ;;  %v11232_v25 = vld [vmem:[#allocation12 + $0x4c] ss:$16 sps:$4 sm:$0xff]   ;;  %v11236_v7 = vld [vmem:[#allocation12 + $0x40] ss:$16 sps:$4 sm:$0xff]  }
 0x681   :  { %12175 = vst [vmem:[#allocation62_spill] sm:$0xff] %v11232_v25  ;;  %12176 = vst [vmem:[#allocation28_spill] sm:$0xff] %v11236_v7 }
 0x682   :  { %v11176_v37 = vpack.c.bf16 %v4479_v12, %v4479_v12  ;;  %v11238_v12 = vld [vmem:[#allocation12 + $0x48] ss:$16 sps:$4 sm:$0xff]  }
 0x683   :  { %12177 = vst [vmem:[#allocation27_spill] sm:$0xff] %v11238_v12 }
 0x684   :  { %4728 = vmatmul.mubr.bf16.vlgmr.msra.gmra.mxu0 %v11176_v37  ;;  %4769 = vmatmul.mubr.bf16.vlgmr.msra.gmra.mxu1 %v11176_v37 }
 0x685   :  { %4970 = vmatpush1.bf16.msra.mxu0 %v11172_v36  ;;  %5011 = vmatpush1.bf16.msra.mxu1 %v11174_v20 }
 0x686   :  { %4971 = vmatprep.subr.bf16.mxu0 %v11178_v9  ;;  %5012 = vmatprep.subr.bf16.mxu1 %v11180_v5 }
 0x687   :  { %5001 = vmatprep.mubr.bf16.mxu0 %v12017_v60  ;;  %5042 = vmatprep.mubr.bf16.mxu1 %v12017_v60 }
 0x689   :  { %4972 = vmatpush1.bf16.msra.mxu0 %v11186_v61  ;;  %5013 = vmatpush1.bf16.msra.mxu1 %v11188_v2 }
 0x68a   :  { %4973 = vmatprep.subr.bf16.mxu0 %v11192_v1  ;;  %5014 = vmatprep.subr.bf16.mxu1 %v11194_v8 }
 0x68d   :  { %4974 = vmatpush1.bf16.msra.mxu0 %v11200_v55  ;;  %5015 = vmatpush1.bf16.msra.mxu1 %v11202_v57 }
 0x68e   :  { %4975 = vmatprep.subr.bf16.mxu0 %v11206_v6  ;;  %5016 = vmatprep.subr.bf16.mxu1 %v11208_v24 }
 0x691   :  { %4976 = vmatpush1.bf16.msra.mxu0 %v11212_v40  ;;  %5017 = vmatpush1.bf16.msra.mxu1 %v11214_v11  ;;  %v11242_v11 = vld [vmem:[#allocation12 + $0x24] ss:$16 sps:$4 sm:$0xff]  }
 0x692   :  { %4977 = vmatprep.subr.bf16.mxu0 %v11218_v30  ;;  %5018 = vmatprep.subr.bf16.mxu1 %v11220_v35  ;;  %v11244_v30 = vld [vmem:[#allocation12 + $0x2c] ss:$16 sps:$4 sm:$0xff]   ;;  %v11248_v35 = vld [vmem:[#allocation12 + $0x20] ss:$16 sps:$4 sm:$0xff]  }
 0x693   :  { %12178 = vst [vmem:[#allocation39_spill] sm:$0xff] %v11244_v30  ;;  %12179 = vst [vmem:[#allocation40_spill] sm:$0xff] %v11248_v35 }
 0x695   :  { %4978 = vmatpush1.bf16.msra.mxu0 %v11224_v47  ;;  %5019 = vmatpush1.bf16.msra.mxu1 %v11226_v10  ;;  %v11250_v47 = vld [vmem:[#allocation12 + $0x28] ss:$16 sps:$4 sm:$0xff]   ;;  %v11254_v10 = vld [vmem:[#allocation12 + $0x4] ss:$16 sps:$4 sm:$0xff]  }
 0x696   :  { %4979 = vmatprep.subr.bf16.mxu0 %v11230_v41  ;;  %5020 = vmatprep.subr.bf16.mxu1 %v11232_v25  ;;  %12180 = vst [vmem:[#allocation63_spill] sm:$0xff] %v11250_v47  ;;  %v11256_v41 = vld [vmem:[#allocation12 + $0xc] ss:$16 sps:$4 sm:$0xff]   ;;  %v11260_v25 = vld [vmem:[#allocation12] ss:$16 sps:$4 sm:$0xff]  }
 0x697   :  { %12181 = vst [vmem:[#allocation64_spill] sm:$0xff] %v11260_v25 }
 0x699   :  { %4980 = vmatpush1.bf16.msra.mxu0 %v11236_v7  ;;  %5021 = vmatpush1.bf16.msra.mxu1 %v11238_v12  ;;  %v11262_v7 = vld [vmem:[#allocation12 + $0x8] ss:$16 sps:$4 sm:$0xff]   ;;  %v11266_v12 = vld [vmem:[#allocation9 + $0xe4] ss:$16 sps:$4 sm:$0xff]  }
 0x69a   :  { %4981 = vmatprep.subr.bf16.mxu0 %v11242_v11  ;;  %5022 = vmatprep.subr.bf16.mxu1 %v11244_v30  ;;  %12182 = vst [vmem:[#allocation65_spill] sm:$0xff] %v11262_v7  ;;  %v11270_v30 = vld [vmem:[#allocation9 + $0xe0] ss:$16 sps:$4 sm:$0xff]  }
 0x69d   :  { %4982 = vmatpush1.bf16.msra.mxu0 %v11248_v35  ;;  %5023 = vmatpush1.bf16.msra.mxu1 %v11250_v47  ;;  %v4172_v35 = vpack.c.bf16 %v11165_v38, %v11165_v38  ;;  %v11276_v47 = vld [vmem:[#allocation9 + $0xc4] ss:$16 sps:$4 sm:$0xff]  }
 0x69e   :  { %4983 = vmatprep.subr.bf16.mxu0 %v11254_v10  ;;  %5024 = vmatprep.subr.bf16.mxu1 %v11256_v41  ;;  %v11302_v38 = vld [vmem:[#allocation9 + $0x64] ss:$16 sps:$4 sm:$0xff]  }
 0x6a1   :  { %4984 = vmatpush1.bf16.msra.mxu0 %v11260_v25  ;;  %5025 = vmatpush1.bf16.msra.mxu1 %v11262_v7  ;;  %v11280_v25 = vld [vmem:[#allocation9 + $0xc0] ss:$16 sps:$4 sm:$0xff]   ;;  %v11284_v7 = vld [vmem:[#allocation9 + $0xa4] ss:$16 sps:$4 sm:$0xff]  }
 0x6a2   :  { %5277 = vmatprep.subr.bf16.mxu0 %v11266_v12  ;;  %5318 = vmatprep.subr.bf16.mxu1 %v10976_v14  ;;  %v11290_v14 = vld [vmem:[#allocation9 + $0xa0] ss:$16 sps:$4 sm:$0xff]  }
 0x6a4   :  { %5002 = vmatmul.mubr.bf16.vlgmr.msra.gmra.mxu0 %v4172_v35  ;;  %5043 = vmatmul.mubr.bf16.vlgmr.msra.gmra.mxu1 %v4172_v35  ;;  %v12199_v35 = vld [vmem:[#allocation22_spill] sm:$0xff] }
 0x6a5   :  { %5278 = vmatpush1.bf16.msra.mxu0 %v11270_v30  ;;  %5319 = vmatpush1.bf16.msra.mxu1 %v10980_v45  ;;  %v11294_v45 = vld [vmem:[#allocation9 + $0x84] ss:$16 sps:$4 sm:$0xff]  }
 0x6a6   :  { %5279 = vmatprep.subr.bf16.mxu0 %v11276_v47  ;;  %5320 = vmatprep.subr.bf16.mxu1 %v10984_v50  ;;  %v11298_v50 = vld [vmem:[#allocation9 + $0x80] ss:$16 sps:$4 sm:$0xff]  }
 0x6a7   :  { %5309 = vmatprep.mubr.bf16.mxu0 %v12017_v60  ;;  %5350 = vmatprep.mubr.bf16.mxu1 %v12017_v60 }
 0x6a9   :  { %5280 = vmatpush1.bf16.msra.mxu0 %v11280_v25  ;;  %5321 = vmatpush1.bf16.msra.mxu1 %v10988_v17  ;;  %v11306_v17 = vld [vmem:[#allocation9 + $0x60] ss:$16 sps:$4 sm:$0xff]  }
 0x6aa   :  { %5281 = vmatprep.subr.bf16.mxu0 %v11284_v7  ;;  %5322 = vmatprep.subr.bf16.mxu1 %v10992_v18  ;;  %v11310_v18 = vld [vmem:[#allocation9 + $0x44] ss:$16 sps:$4 sm:$0xff]  }
 0x6ad   :  { %5282 = vmatpush1.bf16.msra.mxu0 %v11290_v14  ;;  %5323 = vmatpush1.bf16.msra.mxu1 %v10998_v15  ;;  %v11314_v15 = vld [vmem:[#allocation9 + $0x40] ss:$16 sps:$4 sm:$0xff]  }
 0x6ae   :  { %5283 = vmatprep.subr.bf16.mxu0 %v11294_v45  ;;  %5324 = vmatprep.subr.bf16.mxu1 %v11002_v26  ;;  %v11318_v26 = vld [vmem:[#allocation9 + $0x24] ss:$16 sps:$4 sm:$0xff]  }
 0x6b1   :  { %5284 = vmatpush1.bf16.msra.mxu0 %v11298_v50  ;;  %5325 = vmatpush1.bf16.msra.mxu1 %v11006_v56  ;;  %v11322_v56 = vld [vmem:[#allocation9 + $0x20] ss:$16 sps:$4 sm:$0xff]  }
 0x6b2   :  { %5285 = vmatprep.subr.bf16.mxu0 %v11302_v38  ;;  %5326 = vmatprep.subr.bf16.mxu1 %v11010_v28  ;;  %v11326_v28 = vld [vmem:[#allocation9 + $0x4] ss:$16 sps:$4 sm:$0xff]  }
 0x6b5   :  { %5286 = vmatpush1.bf16.msra.mxu0 %v11306_v17  ;;  %5327 = vmatpush1.bf16.msra.mxu1 %v11014_v22  ;;  %v11330_v22 = vld [vmem:[#allocation9] ss:$16 sps:$4 sm:$0xff]  }
 0x6b6   :  { %5287 = vmatprep.subr.bf16.mxu0 %v11310_v18  ;;  %5328 = vmatprep.subr.bf16.mxu1 %v11018_v13  ;;  %v12183_v13 = vld [vmem:[#allocation77_spill] sm:$0xff] }
 0x6b9   :  { %5288 = vmatpush1.bf16.msra.mxu0 %v11314_v15  ;;  %5329 = vmatpush1.bf16.msra.mxu1 %v11022_v16  ;;  %v12184_v16 = vld [vmem:[#allocation78_spill] sm:$0xff] }
 0x6ba   :  { %5289 = vmatprep.subr.bf16.mxu0 %v11318_v26  ;;  %5330 = vmatprep.subr.bf16.mxu1 %v11026_v19  ;;  %v12185_v19 = vld [vmem:[#allocation79_spill] sm:$0xff] }
 0x6bd   :  { %5290 = vmatpush1.bf16.msra.mxu0 %v11322_v56  ;;  %5331 = vmatpush1.bf16.msra.mxu1 %v11030_v34  ;;  %v12186_v34 = vld [vmem:[#allocation25_spill] sm:$0xff] }
 0x6be   :  { %5291 = vmatprep.subr.bf16.mxu0 %v11326_v28  ;;  %5332 = vmatprep.subr.bf16.mxu1 %v11034_v21  ;;  %v12187_v21 = vld [vmem:[#allocation26_spill] sm:$0xff] }
 0x6c1   :  { %5292 = vmatpush1.bf16.msra.mxu0 %v11330_v22  ;;  %5333 = vmatpush1.bf16.msra.mxu1 %v11038_v23  ;;  %v12188_v23 = vld [vmem:[#allocation37_spill] sm:$0xff] }
 0x6c2   :  { %5602 = vmatprep.subr.bf16.mxu0 %v11048_v52  ;;  %5643 = vmatprep.subr.bf16.mxu1 %v11050_v27  ;;  %v12189_v52 = vld [vmem:[#allocation38_spill] sm:$0xff]  ;;  %v12190_v27 = vld [vmem:[#allocation23_spill] sm:$0xff] }
 0x6c4   :  { %5310 = vmatmul.mubr.bf16.vlgmr.msra.gmra.mxu0 %v11176_v37  ;;  %5351 = vmatmul.mubr.bf16.vlgmr.msra.gmra.mxu1 %v11176_v37 }
 0x6c5   :  { %5603 = vmatpush1.bf16.msra.mxu0 %v11052_v29  ;;  %5644 = vmatpush1.bf16.msra.mxu1 %v11054_v31  ;;  %v12191_v29 = vld [vmem:[#allocation49_spill] sm:$0xff]  ;;  %v12192_v31 = vld [vmem:[#allocation50_spill] sm:$0xff] }
 0x6c6   :  { %5604 = vmatprep.subr.bf16.mxu0 %v11060_v33  ;;  %5645 = vmatprep.subr.bf16.mxu1 %v11062_v48  ;;  %v12193_v33 = vld [vmem:[#allocation51_spill] sm:$0xff]  ;;  %v12194_v48 = vld [vmem:[#allocation52_spill] sm:$0xff] }
 0x6c7   :  { %5634 = vmatprep.mubr.bf16.mxu0 %v12017_v60  ;;  %5675 = vmatprep.mubr.bf16.mxu1 %v12017_v60 }
 0x6c9   :  { %5605 = vmatpush1.bf16.msra.mxu0 %v11064_v44  ;;  %5646 = vmatpush1.bf16.msra.mxu1 %v11066_v51  ;;  %v12195_v44 = vld [vmem:[#allocation53_spill] sm:$0xff]  ;;  %v12196_v51 = vld [vmem:[#allocation54_spill] sm:$0xff] }
 0x6ca   :  { %5606 = vmatprep.subr.bf16.mxu0 %v11072_v63  ;;  %5647 = vmatprep.subr.bf16.mxu1 %v11074_v32  ;;  %v12197_v63 = vld [vmem:[#allocation55_spill] sm:$0xff] }
 0x6cd   :  { %5607 = vmatpush1.bf16.msra.mxu0 %v11076_v39  ;;  %5648 = vmatpush1.bf16.msra.mxu1 %v11078_v59 }
 0x6ce   :  { %5608 = vmatprep.subr.bf16.mxu0 %v11084_v4  ;;  %5649 = vmatprep.subr.bf16.mxu1 %v11086_v54 }
 0x6d1   :  { %5609 = vmatpush1.bf16.msra.mxu0 %v11088_v43  ;;  %5650 = vmatpush1.bf16.msra.mxu1 %v11090_v62 }
 0x6d2   :  { %5610 = vmatprep.subr.bf16.mxu0 %v11094_v46  ;;  %5651 = vmatprep.subr.bf16.mxu1 %v11102_v49  ;;  %v12198_v49 = vld [vmem:[#allocation21_spill] sm:$0xff] }
 0x6d5   :  { %5611 = vmatpush1.bf16.msra.mxu0 %v11098_v53  ;;  %5652 = vmatpush1.bf16.msra.mxu1 %v12183_v13  ;;  %v4513_v53 = vld [vmem:[%s11855_s6] sm:$0xf] }
 0x6d6   :  { %5612 = vmatprep.subr.bf16.mxu0 %v12184_v16  ;;  %5653 = vmatprep.subr.bf16.mxu1 %v12185_v19  ;;  %v4518_v37 = vrot.slane %v4513_v53, %v12198_v49  ;;  %v4522_v13 = vrot.slane %v4513_v53, %v12199_v35 }
 0x6d9   :  { %5613 = vmatpush1.bf16.msra.mxu0 %v12186_v34  ;;  %5654 = vmatpush1.bf16.msra.mxu1 %v12187_v21 }
 0x6da   :  { %5614 = vmatprep.subr.bf16.mxu0 %v12188_v23  ;;  %5655 = vmatprep.subr.bf16.mxu1 %v12189_v52 }
 0x6dd   :  { %5615 = vmatpush1.bf16.msra.mxu0 %v12190_v27  ;;  %5656 = vmatpush1.bf16.msra.mxu1 %v12191_v29 }
 0x6de   :  { %5616 = vmatprep.subr.bf16.mxu0 %v12192_v31  ;;  %5657 = vmatprep.subr.bf16.mxu1 %v12193_v33 }
 0x6e1   :  { %5617 = vmatpush1.bf16.msra.mxu0 %v12194_v48  ;;  %5658 = vmatpush1.bf16.msra.mxu1 %v12195_v44 }
 0x6e2   :  { %5876 = vmatprep.subr.bf16.mxu0 %v12196_v51  ;;  %5917 = vmatprep.subr.bf16.mxu1 %v12197_v63  ;;  %v4526_v51 = vrot.slane %v4513_v53, %v10247_v0 }
 0x744   :  { %v4729_v32 = vpop.f32.mrf.mxu0  ;;  %v4770_v39 = vpop.f32.mrf.mxu1 }
 0x745   :  { %v4730_v16 = vadd.f32 %v4729_v32, %v4518_v37  ;;  %v4530_v32 = vrot.slane %v4513_v53, %v10249_v3 }
 0x746   :  { %v4731_v59 = vpop.f32.mrf.mxu0  ;;  %v4772_v4 = vpop.f32.mrf.mxu1 }
 0x747   :  { %v4732_v21 = vadd.f32 %v4731_v59, %v4522_v13 }
 0x748   :  { %v4733_v54 = vpop.f32.mrf.mxu0  ;;  %v4774_v43 = vpop.f32.mrf.mxu1 }
 0x749   :  { %v4771_v43 = vadd.f32 %v4770_v39, %v4526_v51 }
 0x74a   :  { %v4734_v62 = vpop.f32.mrf.mxu0  ;;  %v4775_v46 = vpop.f32.mrf.mxu1 }
 0x74b   :  { %v4773_v46 = vadd.f32 %v4772_v4, %v4530_v32 }
 0x764   :  { %v5003_v19 = vpop.f32.mrf.mxu0  ;;  %v5044_v34 = vpop.f32.mrf.mxu1 }
 0x765   :  { %v5051_v23 = vadd.f32 %v5003_v19, %v4730_v16  ;;  %v5053_v62 = vadd.f32 %v5044_v34, %v4771_v43 }
 0x766   :  { %v5005_v52 = vpop.f32.mrf.mxu0  ;;  %v5046_v27 = vpop.f32.mrf.mxu1 }
 0x767   :  { %v8556_v29 = vmul.f32 -1.442695, %v5051_v23  ;;  %v5052_v31 = vadd.f32 %v5005_v52, %v4732_v21  ;;  %v8558_v59 = vmul.f32 -1.442695, %v5053_v62  ;;  %v5054_v13 = vadd.f32 %v5046_v27, %v4773_v46 }
 0x768   :  { %v5007_v33 = vpop.f32.mrf.mxu0  ;;  %v5048_v48 = vpop.f32.mrf.mxu1 }
 0x769   :  { %9716 = vpow2.f32 %v8556_v29  ;;  %v8557_v44 = vmul.f32 -1.442695, %v5052_v31  ;;  %v12200_v31 = vld [vmem:[#allocation24_spill] sm:$0xff]  ;;  %v12202_v48 = vld [vmem:[#allocation31_spill] sm:$0xff] }
 0x76a   :  { %v5008_v63 = vpop.f32.mrf.mxu0  ;;  %v5049_v54 = vpop.f32.mrf.mxu1  ;;  %v12201_v33 = vld [vmem:[#allocation32_spill] sm:$0xff] }
 0x76b   :  { %9718 = vpow2.f32 %v8557_v44  ;;  %v423_v39 = vadd.f32 %v12201_v33, %v12200_v31 }
 0x76c   :  { %9720 = vpow2.f32 %v8558_v59 }
 0x776   :  { %v9717_v37 = vpop.eup %9716 }
 0x777   :  { %v5064_v16 = vadd.f32 1.0, %v9717_v37 }
 0x778   :  { %v9719_v19 = vpop.eup %9718 }
 0x779   :  { %9722 = vrcp.f32 %v5064_v16  ;;  %v5065_v21 = vadd.f32 1.0, %v9719_v19  ;;  %v9721_v29 = vpop.eup %9720 }
 0x77a   :  { %9724 = vtanh.f32 %v5054_v13  ;;  %v5066_v43 = vadd.f32 1.0, %v9721_v29 }
 0x77b   :  { %9726 = vrcp.f32 %v5065_v21  ;;  %v12203_v21 = vld [vmem:[#allocation43_spill] sm:$0xff] }
 0x784   :  { %v5311_v23 = vpop.f32.mrf.mxu0  ;;  %v5352_v52 = vpop.f32.mrf.mxu1 }
 0x785   :  { %v5359_v53 = vadd.f32 %v5311_v23, %v12202_v48  ;;  %v5361_v23 = vadd.f32 %v5352_v52, %v12203_v21  ;;  %v12218_v21 = vld [vmem:[#allocation65_spill] sm:$0xff] }
 0x786   :  { %v9723_v34 = vpop.eup %9722  ;;  %v5313_v4 = vpop.f32.mrf.mxu0 }
 0x787   :  { %v5354_v44 = vpop.f32.mrf.mxu1  ;;  %v9725_v51 = vpop.eup %9724  ;;  %v8591_v27 = vmul.f32 -1.442695, %v5359_v53  ;;  %v5360_v63 = vadd.f32 %v5313_v4, %v423_v39  ;;  %v8593_v33 = vmul.f32 -1.442695, %v5361_v23  ;;  %v12204_v39 = vld [vmem:[#allocation44_spill] sm:$0xff] }
 0x788   :  { %v9727_v54 = vpop.eup %9726  ;;  %v5315_v32 = vpop.f32.mrf.mxu0  ;;  %v5075_v59 = vmul.f32 %v9725_v51, %v9723_v34  ;;  %v5362_v29 = vadd.f32 %v5354_v44, %v12204_v39  ;;  %v11432_v23 = vld [vmem:[#allocation9 + $0xe8] ss:$16 sps:$4 sm:$0xff]   ;;  %v11514_v39 = vld [vmem:[#allocation10 + $0xcc] ss:$16 sps:$4 sm:$0xff]  }
 0x789   :  { %v5356_v62 = vpop.f32.mrf.mxu1  ;;  %v5074_v46 = vmul.f32 %v9727_v54, %v11160_v42  ;;  %9728 = vpow2.f32 %v8591_v27  ;;  %v8592_v37 = vmul.f32 -1.442695, %v5360_v63 }
 0x78a   :  { %v5316_v13 = vpop.f32.mrf.mxu0 }
 0x78b   :  { %v5357_v16 = vpop.f32.mrf.mxu1  ;;  %v11385_v19 = vadd.f32 %v5075_v59, %v5074_v46  ;;  %9730 = vpow2.f32 %v8592_v37 }
 0x78c   :  { %9732 = vrcp.f32 %v5066_v43 }
 0x78d   :  { %9734 = vtanh.f32 %v11385_v19 }
 0x78e   :  { %9736 = vpow2.f32 %v8593_v33 }
 0x78f   :  { %9738 = vtanh.f32 %v5362_v29  ;;  %v11516_v29 = vld [vmem:[#allocation10 + $0xc0] ss:$16 sps:$4 sm:$0xff]  }
 0x796   :  { %v9729_v48 = vpop.eup %9728 }
 0x797   :  { %v5372_v53 = vadd.f32 1.0, %v9729_v48  ;;  %v11518_v48 = vld [vmem:[#allocation10 + $0xc8] ss:$16 sps:$4 sm:$0xff]  }
 0x798   :  { %v9731_v42 = vpop.eup %9730 }
 0x799   :  { %v9733_v34 = vpop.eup %9732  ;;  %9740 = vrcp.f32 %v5372_v53  ;;  %v5373_v4 = vadd.f32 1.0, %v9731_v42  ;;  %v11524_v53 = vld [vmem:[#allocation10 + $0xa4] ss:$16 sps:$4 sm:$0xff]   ;;  %v11526_v42 = vld [vmem:[#allocation10 + $0xac] ss:$16 sps:$4 sm:$0xff]  }
 0x79a   :  { %v9735_v51 = vpop.eup %9734 }
 0x79b   :  { %9742 = vrcp.f32 %v5373_v4  ;;  %v5078_v27 = vmul.f32 %v9735_v51, %v9733_v34  ;;  %v9737_v63 = vpop.eup %9736  ;;  %v11528_v34 = vld [vmem:[#allocation10 + $0xa0] ss:$16 sps:$4 sm:$0xff]   ;;  %v11530_v4 = vld [vmem:[#allocation10 + $0xa8] ss:$16 sps:$4 sm:$0xff]   ;;  %v11536_v51 = vld [vmem:[#allocation10 + $0x84] ss:$16 sps:$4 sm:$0xff]  }
 0x79c   :  { %v9739_v54 = vpop.eup %9738  ;;  %v5374_v62 = vadd.f32 1.0, %v9737_v63  ;;  %v11540_v63 = vld [vmem:[#allocation10 + $0x80] ss:$16 sps:$4 sm:$0xff]  }
 0x79d   :  { %5080 = vst [vmem:[#allocation3 + $0x1d] sm:$0x1f] %v5078_v27  ;;  %v5079_v33 = vpack.c.bf16 %v5078_v27, %v5078_v27  ;;  %v11538_v27 = vld [vmem:[#allocation10 + $0x8c] ss:$16 sps:$4 sm:$0xff]  }
 0x79e   :  { %9744 = vrcp.f32 %v5374_v62  ;;  %v11554_v62 = vld [vmem:[#allocation10 + $0x6c] ss:$16 sps:$4 sm:$0xff]  }
 0x7a6   :  { %v9741_v43 = vpop.eup %9740 }
 0x7a7   :  { %v5383_v32 = vmul.f32 %v9741_v43, %v9739_v54  ;;  %v11542_v54 = vld [vmem:[#allocation10 + $0x88] ss:$16 sps:$4 sm:$0xff]   ;;  %v11546_v43 = vld [vmem:[#allocation10 + $0x64] ss:$16 sps:$4 sm:$0xff]  }
 0x7a8   :  { %v9743_v52 = vpop.eup %9742 }
 0x7a9   :  { %v5382_v44 = vmul.f32 %v9743_v52, %v11169_v58  ;;  %v12205_v58 = vld [vmem:[#allocation56_spill] sm:$0xff] }
 0x7aa   :  { %v11552_v52 = vld [vmem:[#allocation10 + $0x68] ss:$16 sps:$4 sm:$0xff]  }
 0x7ab   :  { %v11391_v46 = vadd.f32 %v5383_v32, %v5382_v44  ;;  %v9745_v59 = vpop.eup %9744  ;;  %v11550_v32 = vld [vmem:[#allocation10 + $0x60] ss:$16 sps:$4 sm:$0xff]   ;;  %12219 = vst [vmem:[#allocation66_spill] sm:$0xff] %v11552_v52  ;;  %v11557_v44 = vld [vmem:[#allocation10 + $0x44] ss:$16 sps:$4 sm:$0xff]  }
 0x7ac   :  { %12220 = vst [vmem:[#allocation67_spill] sm:$0xff] %v11557_v44 }
 0x7ad   :  { %9746 = vtanh.f32 %v11391_v46 }
 0x7ba   :  { %v9747_v37 = vpop.eup %9746 }
 0x7bb   :  { %v5386_v13 = vmul.f32 %v9747_v37, %v9745_v59  ;;  %v11559_v59 = vld [vmem:[#allocation10 + $0x4c] ss:$16 sps:$4 sm:$0xff]   ;;  %v11564_v37 = vld [vmem:[#allocation10 + $0x40] ss:$16 sps:$4 sm:$0xff]  }
 0x7bc   :  { %12221 = vst [vmem:[#allocation68_spill] sm:$0xff] %v11559_v59  ;;  %12222 = vst [vmem:[#allocation69_spill] sm:$0xff] %v11564_v37 }
 0x7bd   :  { %v11394_v16 = vpack.c.bf16 %v5386_v13, %v5386_v13  ;;  %v11566_v13 = vld [vmem:[#allocation10 + $0x48] ss:$16 sps:$4 sm:$0xff]  }
 0x7be   :  { %12223 = vst [vmem:[#allocation70_spill] sm:$0xff] %v11566_v13 }
 0x7bf   :  { %5635 = vmatmul.mubr.bf16.vlgmr.msra.gmra.mxu0 %v11394_v16  ;;  %5676 = vmatmul.mubr.bf16.vlgmr.msra.gmra.mxu1 %v11394_v16 }
 0x7c0   :  { %5877 = vmatpush1.bf16.msra.mxu0 %v11172_v36  ;;  %5918 = vmatpush1.bf16.msra.mxu1 %v11174_v20  ;;  %v12206_v36 = vld [vmem:[#allocation57_spill] sm:$0xff]  ;;  %v12207_v20 = vld [vmem:[#allocation58_spill] sm:$0xff] }
 0x7c1   :  { %5878 = vmatprep.subr.bf16.mxu0 %v11178_v9  ;;  %5919 = vmatprep.subr.bf16.mxu1 %v11180_v5  ;;  %v12208_v9 = vld [vmem:[#allocation59_spill] sm:$0xff]  ;;  %v12209_v5 = vld [vmem:[#allocation60_spill] sm:$0xff] }
 0x7c2   :  { %5908 = vmatprep.mubr.bf16.mxu0 %v12017_v60  ;;  %5949 = vmatprep.mubr.bf16.mxu1 %v12017_v60 }
 0x7c4   :  { %5879 = vmatpush1.bf16.msra.mxu0 %v11186_v61  ;;  %5920 = vmatpush1.bf16.msra.mxu1 %v11188_v2  ;;  %v12210_v61 = vld [vmem:[#allocation61_spill] sm:$0xff]  ;;  %v12211_v2 = vld [vmem:[#allocation62_spill] sm:$0xff] }
 0x7c5   :  { %5880 = vmatprep.subr.bf16.mxu0 %v11192_v1  ;;  %5921 = vmatprep.subr.bf16.mxu1 %v11194_v8  ;;  %v12212_v1 = vld [vmem:[#allocation28_spill] sm:$0xff]  ;;  %v12213_v8 = vld [vmem:[#allocation27_spill] sm:$0xff] }
 0x7c8   :  { %5881 = vmatpush1.bf16.msra.mxu0 %v11200_v55  ;;  %5922 = vmatpush1.bf16.msra.mxu1 %v11202_v57  ;;  %v12214_v55 = vld [vmem:[#allocation39_spill] sm:$0xff]  ;;  %v12215_v57 = vld [vmem:[#allocation40_spill] sm:$0xff] }
 0x7c9   :  { %5882 = vmatprep.subr.bf16.mxu0 %v11206_v6  ;;  %5923 = vmatprep.subr.bf16.mxu1 %v11208_v24  ;;  %v12216_v6 = vld [vmem:[#allocation63_spill] sm:$0xff]  ;;  %v11428_v24 = vld [vmem:[#allocation9 + $0xec] ss:$16 sps:$4 sm:$0xff]  }
 0x7cc   :  { %5883 = vmatpush1.bf16.msra.mxu0 %v11212_v40  ;;  %5924 = vmatpush1.bf16.msra.mxu1 %v12205_v58  ;;  %v12217_v40 = vld [vmem:[#allocation64_spill] sm:$0xff] }
 0x7cd   :  { %5884 = vmatprep.subr.bf16.mxu0 %v12206_v36  ;;  %5925 = vmatprep.subr.bf16.mxu1 %v12207_v20  ;;  %v11572_v58 = vld [vmem:[#allocation10 + $0x2c] ss:$16 sps:$4 sm:$0xff]   ;;  %v11576_v36 = vld [vmem:[#allocation10 + $0x20] ss:$16 sps:$4 sm:$0xff]   ;;  %v11578_v20 = vld [vmem:[#allocation10 + $0x28] ss:$16 sps:$4 sm:$0xff]  }
 0x7ce   :  { %12225 = vst [vmem:[#allocation72_spill] sm:$0xff] %v11572_v58  ;;  %12226 = vst [vmem:[#allocation73_spill] sm:$0xff] %v11576_v36 }
 0x7cf   :  { %12227 = vst [vmem:[#allocation74_spill] sm:$0xff] %v11578_v20 }
 0x7d0   :  { %5885 = vmatpush1.bf16.msra.mxu0 %v12208_v9  ;;  %5926 = vmatpush1.bf16.msra.mxu1 %v12209_v5  ;;  %v11582_v9 = vld [vmem:[#allocation10 + $0x4] ss:$16 sps:$4 sm:$0xff]   ;;  %v11584_v5 = vld [vmem:[#allocation10 + $0xc] ss:$16 sps:$4 sm:$0xff]  }
 0x7d1   :  { %5886 = vmatprep.subr.bf16.mxu0 %v12210_v61  ;;  %5927 = vmatprep.subr.bf16.mxu1 %v12211_v2  ;;  %12228 = vst [vmem:[#allocation75_spill] sm:$0xff] %v11582_v9  ;;  %12229 = vst [vmem:[#allocation76_spill] sm:$0xff] %v11584_v5  ;;  %v11588_v61 = vld [vmem:[#allocation10] ss:$16 sps:$4 sm:$0xff]   ;;  %v11590_v2 = vld [vmem:[#allocation10 + $0x8] ss:$16 sps:$4 sm:$0xff]  }
 0x7d2   :  { %12230 = vst [vmem:[#allocation29_spill] sm:$0xff] %v11588_v61  ;;  %12231 = vst [vmem:[#allocation30_spill] sm:$0xff] %v11590_v2 }
 0x7d4   :  { %5887 = vmatpush1.bf16.msra.mxu0 %v12212_v1  ;;  %5928 = vmatpush1.bf16.msra.mxu1 %v12213_v8  ;;  %v11594_v1 = vld [vmem:[#allocation12 + $0xe4] ss:$16 sps:$4 sm:$0xff]   ;;  %v11596_v8 = vld [vmem:[#allocation12 + $0xec] ss:$16 sps:$4 sm:$0xff]  }
 0x7d5   :  { %5888 = vmatprep.subr.bf16.mxu0 %v11242_v11  ;;  %5929 = vmatprep.subr.bf16.mxu1 %v12214_v55  ;;  %v11436_v11 = vld [vmem:[#allocation9 + $0xcc] ss:$16 sps:$4 sm:$0xff]   ;;  %12232 = vst [vmem:[#allocation41_spill] sm:$0xff] %v11594_v1  ;;  %12233 = vst [vmem:[#allocation42_spill] sm:$0xff] %v11596_v8 }
 0x7d8   :  { %5889 = vmatpush1.bf16.msra.mxu0 %v12215_v57  ;;  %5930 = vmatpush1.bf16.msra.mxu1 %v12216_v6 }
 0x7d9   :  { %5890 = vmatprep.subr.bf16.mxu0 %v11254_v10  ;;  %5931 = vmatprep.subr.bf16.mxu1 %v11256_v41  ;;  %v11440_v10 = vld [vmem:[#allocation9 + $0xc8] ss:$16 sps:$4 sm:$0xff]   ;;  %v11444_v41 = vld [vmem:[#allocation9 + $0xac] ss:$16 sps:$4 sm:$0xff]  }
 0x7dc   :  { %5891 = vmatpush1.bf16.msra.mxu0 %v12217_v40  ;;  %5932 = vmatpush1.bf16.msra.mxu1 %v12218_v21 }
 0x7dd   :  { %6184 = vmatprep.subr.bf16.mxu0 %v11266_v12  ;;  %6225 = vmatprep.subr.bf16.mxu1 %v11428_v24  ;;  %v11450_v12 = vld [vmem:[#allocation9 + $0xa8] ss:$16 sps:$4 sm:$0xff]  }
 0x7df   :  { %5909 = vmatmul.mubr.bf16.vlgmr.msra.gmra.mxu0 %v5079_v33  ;;  %5950 = vmatmul.mubr.bf16.vlgmr.msra.gmra.mxu1 %v5079_v33 }
 0x7e0   :  { %6185 = vmatpush1.bf16.msra.mxu0 %v11270_v30  ;;  %6226 = vmatpush1.bf16.msra.mxu1 %v11432_v23  ;;  %v11454_v30 = vld [vmem:[#allocation9 + $0x8c] ss:$16 sps:$4 sm:$0xff]  }
 0x7e1   :  { %6186 = vmatprep.subr.bf16.mxu0 %v11276_v47  ;;  %6227 = vmatprep.subr.bf16.mxu1 %v11436_v11  ;;  %v11458_v47 = vld [vmem:[#allocation9 + $0x88] ss:$16 sps:$4 sm:$0xff]  }
 0x7e2   :  { %6216 = vmatprep.mubr.bf16.mxu0 %v12017_v60  ;;  %6257 = vmatprep.mubr.bf16.mxu1 %v12017_v60 }
 0x7e4   :  { %6187 = vmatpush1.bf16.msra.mxu0 %v11280_v25  ;;  %6228 = vmatpush1.bf16.msra.mxu1 %v11440_v10  ;;  %v11462_v25 = vld [vmem:[#allocation9 + $0x6c] ss:$16 sps:$4 sm:$0xff]  }
 0x7e5   :  { %6188 = vmatprep.subr.bf16.mxu0 %v11284_v7  ;;  %6229 = vmatprep.subr.bf16.mxu1 %v11444_v41  ;;  %v11466_v7 = vld [vmem:[#allocation9 + $0x68] ss:$16 sps:$4 sm:$0xff]  }
 0x7e8   :  { %6189 = vmatpush1.bf16.msra.mxu0 %v11290_v14  ;;  %6230 = vmatpush1.bf16.msra.mxu1 %v11450_v12  ;;  %v11470_v14 = vld [vmem:[#allocation9 + $0x4c] ss:$16 sps:$4 sm:$0xff]  }
 0x7e9   :  { %6190 = vmatprep.subr.bf16.mxu0 %v11294_v45  ;;  %6231 = vmatprep.subr.bf16.mxu1 %v11454_v30  ;;  %v11474_v45 = vld [vmem:[#allocation9 + $0x48] ss:$16 sps:$4 sm:$0xff]  }
 0x7ec   :  { %6191 = vmatpush1.bf16.msra.mxu0 %v11298_v50  ;;  %6232 = vmatpush1.bf16.msra.mxu1 %v11458_v47  ;;  %v11478_v50 = vld [vmem:[#allocation9 + $0x2c] ss:$16 sps:$4 sm:$0xff]  }
 0x7ed   :  { %6192 = vmatprep.subr.bf16.mxu0 %v11302_v38  ;;  %6233 = vmatprep.subr.bf16.mxu1 %v11462_v25  ;;  %v11482_v38 = vld [vmem:[#allocation9 + $0x28] ss:$16 sps:$4 sm:$0xff]  }
 0x7f0   :  { %6193 = vmatpush1.bf16.msra.mxu0 %v11306_v17  ;;  %6234 = vmatpush1.bf16.msra.mxu1 %v11466_v7  ;;  %v11486_v17 = vld [vmem:[#allocation9 + $0xc] ss:$16 sps:$4 sm:$0xff]  }
 0x7f1   :  { %6194 = vmatprep.subr.bf16.mxu0 %v11310_v18  ;;  %6235 = vmatprep.subr.bf16.mxu1 %v11470_v14  ;;  %v11490_v18 = vld [vmem:[#allocation9 + $0x8] ss:$16 sps:$4 sm:$0xff]  }
 0x7f4   :  { %6195 = vmatpush1.bf16.msra.mxu0 %v11314_v15  ;;  %6236 = vmatpush1.bf16.msra.mxu1 %v11474_v45  ;;  %v11500_v15 = vld [vmem:[#allocation10 + $0xe4] ss:$16 sps:$4 sm:$0xff]  }
 0x7f5   :  { %6196 = vmatprep.subr.bf16.mxu0 %v11318_v26  ;;  %6237 = vmatprep.subr.bf16.mxu1 %v11478_v50  ;;  %v11502_v26 = vld [vmem:[#allocation10 + $0xec] ss:$16 sps:$4 sm:$0xff]  }
 0x7f8   :  { %6197 = vmatpush1.bf16.msra.mxu0 %v11322_v56  ;;  %6238 = vmatpush1.bf16.msra.mxu1 %v11482_v38  ;;  %v11504_v56 = vld [vmem:[#allocation10 + $0xe0] ss:$16 sps:$4 sm:$0xff]  }
 0x7f9   :  { %6198 = vmatprep.subr.bf16.mxu0 %v11326_v28  ;;  %6239 = vmatprep.subr.bf16.mxu1 %v11486_v17  ;;  %v11506_v28 = vld [vmem:[#allocation10 + $0xe8] ss:$16 sps:$4 sm:$0xff]  }
 0x7fc   :  { %6199 = vmatpush1.bf16.msra.mxu0 %v11330_v22  ;;  %6240 = vmatpush1.bf16.msra.mxu1 %v11490_v18  ;;  %v11512_v22 = vld [vmem:[#allocation10 + $0xc4] ss:$16 sps:$4 sm:$0xff]  }
 0x7fd   :  { %6509 = vmatprep.subr.bf16.mxu0 %v11500_v15  ;;  %6550 = vmatprep.subr.bf16.mxu1 %v11502_v26 }
 0x7ff   :  { %6217 = vmatmul.mubr.bf16.vlgmr.msra.gmra.mxu0 %v11394_v16  ;;  %6258 = vmatmul.mubr.bf16.vlgmr.msra.gmra.mxu1 %v11394_v16  ;;  %v11570_v16 = vld [vmem:[#allocation10 + $0x24] ss:$16 sps:$4 sm:$0xff]  }
 0x800   :  { %6541 = vmatprep.mubr.bf16.mxu0 %v12017_v60  ;;  %6582 = vmatprep.mubr.bf16.mxu1 %v12017_v60  ;;  %12224 = vst [vmem:[#allocation71_spill] sm:$0xff] %v11570_v16 }
 0x801   :  { %6510 = vmatpush1.bf16.msra.mxu0 %v11504_v56  ;;  %6551 = vmatpush1.bf16.msra.mxu1 %v11506_v28 }
 0x802   :  { %6511 = vmatprep.subr.bf16.mxu0 %v11512_v22  ;;  %6552 = vmatprep.subr.bf16.mxu1 %v11514_v39 }
 0x805   :  { %6512 = vmatpush1.bf16.msra.mxu0 %v11516_v29  ;;  %6553 = vmatpush1.bf16.msra.mxu1 %v11518_v48 }
 0x806   :  { %6513 = vmatprep.subr.bf16.mxu0 %v11524_v53  ;;  %6554 = vmatprep.subr.bf16.mxu1 %v11526_v42 }
 0x809   :  { %6514 = vmatpush1.bf16.msra.mxu0 %v11528_v34  ;;  %6555 = vmatpush1.bf16.msra.mxu1 %v11530_v4 }
 0x80a   :  { %6515 = vmatprep.subr.bf16.mxu0 %v11536_v51  ;;  %6556 = vmatprep.subr.bf16.mxu1 %v11538_v27 }
 0x80d   :  { %6516 = vmatpush1.bf16.msra.mxu0 %v11540_v63  ;;  %6557 = vmatpush1.bf16.msra.mxu1 %v11542_v54 }
 0x80e   :  { %6517 = vmatprep.subr.bf16.mxu0 %v11546_v43  ;;  %6558 = vmatprep.subr.bf16.mxu1 %v11554_v62 }
 0x811   :  { %6518 = vmatpush1.bf16.msra.mxu0 %v11550_v32  ;;  %6559 = vmatpush1.bf16.msra.mxu1 %v11552_v52 }
 0x812   :  { %6519 = vmatprep.subr.bf16.mxu0 %v11557_v44  ;;  %6560 = vmatprep.subr.bf16.mxu1 %v11559_v59 }
 0x815   :  { %6520 = vmatpush1.bf16.msra.mxu0 %v11564_v37  ;;  %6561 = vmatpush1.bf16.msra.mxu1 %v11566_v13 }
 0x816   :  { %6521 = vmatprep.subr.bf16.mxu0 %v11570_v16  ;;  %6562 = vmatprep.subr.bf16.mxu1 %v11572_v58 }
 0x819   :  { %6522 = vmatpush1.bf16.msra.mxu0 %v11576_v36  ;;  %6563 = vmatpush1.bf16.msra.mxu1 %v11578_v20 }
 0x81a   :  { %6523 = vmatprep.subr.bf16.mxu0 %v11582_v9  ;;  %6564 = vmatprep.subr.bf16.mxu1 %v11584_v5  ;;  %v5420_v9 = vld [vmem:[%s11855_s6] sm:$0xf] }
 0x81b   :  { %v5433_v59 = vrot.slane %v5420_v9, %v10247_v0 }
 0x81d   :  { %6524 = vmatpush1.bf16.msra.mxu0 %v11588_v61  ;;  %6565 = vmatpush1.bf16.msra.mxu1 %v11590_v2  ;;  %v5425_v61 = vrot.slane %v5420_v9, %v12198_v49  ;;  %v5429_v2 = vrot.slane %v5420_v9, %v12199_v35 }
 0x81e   :  { %6783 = vmatprep.subr.bf16.mxu0 %v11594_v1  ;;  %6824 = vmatprep.subr.bf16.mxu1 %v11596_v8 }
 0x87f   :  { %v5636_v55 = vpop.f32.mrf.mxu0  ;;  %v5677_v57 = vpop.f32.mrf.mxu1 }
 0x880   :  { %v5637_v20 = vadd.f32 %v5636_v55, %v5425_v61  ;;  %v5678_v49 = vadd.f32 %v5677_v57, %v5433_v59  ;;  %v5437_v61 = vrot.slane %v5420_v9, %v10249_v3 }
 0x881   :  { %v5638_v6 = vpop.f32.mrf.mxu0  ;;  %v5679_v40 = vpop.f32.mrf.mxu1 }
 0x882   :  { %v5639_v8 = vadd.f32 %v5638_v6, %v5429_v2  ;;  %v5680_v35 = vadd.f32 %v5679_v40, %v5437_v61  ;;  %v12235_v40 = vld [vmem:[#allocation34_spill] sm:$0xff] }
 0x883   :  { %v5640_v21 = vpop.f32.mrf.mxu0  ;;  %v5681_v33 = vpop.f32.mrf.mxu1 }
 0x885   :  { %v5641_v31 = vpop.f32.mrf.mxu0  ;;  %v5682_v5 = vpop.f32.mrf.mxu1 }
 0x89f   :  { %v5910_v1 = vpop.f32.mrf.mxu0  ;;  %v5951_v36 = vpop.f32.mrf.mxu1 }
 0x8a0   :  { %v5958_v58 = vadd.f32 %v5910_v1, %v5637_v20  ;;  %v5960_v55 = vadd.f32 %v5951_v36, %v5678_v49 }
 0x8a1   :  { %v5912_v16 = vpop.f32.mrf.mxu0  ;;  %v5953_v13 = vpop.f32.mrf.mxu1 }
 0x8a2   :  { %v8658_v37 = vmul.f32 -1.442695, %v5958_v58  ;;  %v5959_v21 = vadd.f32 %v5912_v16, %v5639_v8  ;;  %v8660_v2 = vmul.f32 -1.442695, %v5960_v55  ;;  %v5961_v1 = vadd.f32 %v5953_v13, %v5680_v35 }
 0x8a3   :  { %v5914_v33 = vpop.f32.mrf.mxu0  ;;  %v5955_v31 = vpop.f32.mrf.mxu1 }
 0x8a4   :  { %9748 = vpow2.f32 %v8658_v37  ;;  %v8659_v5 = vmul.f32 -1.442695, %v5959_v21 }
 0x8a5   :  { %v5915_v44 = vpop.f32.mrf.mxu0  ;;  %v5956_v52 = vpop.f32.mrf.mxu1 }
 0x8a6   :  { %9750 = vpow2.f32 %v8659_v5  ;;  %v12234_v52 = vld [vmem:[#allocation33_spill] sm:$0xff] }
 0x8a7   :  { %9752 = vpow2.f32 %v8660_v2 }
 0x8b1   :  { %v9749_v20 = vpop.eup %9748 }
 0x8b2   :  { %v5971_v6 = vadd.f32 1.0, %v9749_v20 }
 0x8b3   :  { %v9751_v58 = vpop.eup %9750 }
 0x8b4   :  { %9754 = vrcp.f32 %v5971_v6  ;;  %v5972_v16 = vadd.f32 1.0, %v9751_v58  ;;  %v9753_v44 = vpop.eup %9752  ;;  %v12236_v58 = vld [vmem:[#allocation45_spill] sm:$0xff] }
 0x8b5   :  { %9756 = vtanh.f32 %v5961_v1  ;;  %v5973_v13 = vadd.f32 1.0, %v9753_v44 }
 0x8b6   :  { %9758 = vrcp.f32 %v5972_v16 }
 0x8bf   :  { %v6218_v37 = vpop.f32.mrf.mxu0  ;;  %v6259_v8 = vpop.f32.mrf.mxu1 }
 0x8c0   :  { %v6266_v21 = vadd.f32 %v6218_v37, %v12234_v52  ;;  %v6268_v16 = vadd.f32 %v6259_v8, %v12236_v58  ;;  %v12237_v52 = vld [vmem:[#allocation46_spill] sm:$0xff] }
 0x8c1   :  { %v9755_v59 = vpop.eup %9754  ;;  %v6220_v57 = vpop.f32.mrf.mxu0  ;;  %v11626_v58 = vld [vmem:[#allocation12 + $0xe8] ss:$16 sps:$4 sm:$0xff]  }
 0x8c2   :  { %v6261_v9 = vpop.f32.mrf.mxu1  ;;  %v9757_v49 = vpop.eup %9756  ;;  %v8693_v36 = vmul.f32 -1.442695, %v6266_v21  ;;  %v6267_v33 = vadd.f32 %v6220_v57, %v12235_v40  ;;  %v8695_v37 = vmul.f32 -1.442695, %v6268_v16 }
 0x8c3   :  { %v9759_v35 = vpop.eup %9758  ;;  %v6222_v31 = vpop.f32.mrf.mxu0  ;;  %v5982_v55 = vmul.f32 %v9757_v49, %v9755_v59  ;;  %v6269_v44 = vadd.f32 %v6261_v9, %v12237_v52  ;;  %v11632_v52 = vld [vmem:[#allocation12 + $0xcc] ss:$16 sps:$4 sm:$0xff]  }
 0x8c4   :  { %v6263_v5 = vpop.f32.mrf.mxu1  ;;  %v5981_v61 = vmul.f32 %v9759_v35, %v11385_v19  ;;  %9760 = vpow2.f32 %v8693_v36  ;;  %v8694_v2 = vmul.f32 -1.442695, %v6267_v33 }
 0x8c5   :  { %v6223_v20 = vpop.f32.mrf.mxu0 }
 0x8c6   :  { %v6264_v1 = vpop.f32.mrf.mxu1  ;;  %v11612_v6 = vadd.f32 %v5982_v55, %v5981_v61  ;;  %9762 = vpow2.f32 %v8694_v2 }
 0x8c7   :  { %9764 = vrcp.f32 %v5973_v13  ;;  %v11624_v1 = vld [vmem:[#allocation12 + $0xe0] ss:$16 sps:$4 sm:$0xff]  }
 0x8c8   :  { %9766 = vtanh.f32 %v11612_v6 }
 0x8c9   :  { %9768 = vpow2.f32 %v8695_v37  ;;  %v11630_v37 = vld [vmem:[#allocation12 + $0xc4] ss:$16 sps:$4 sm:$0xff]  }
 0x8ca   :  { %9770 = vtanh.f32 %v6269_v44  ;;  %v11640_v44 = vld [vmem:[#allocation12 + $0xc8] ss:$16 sps:$4 sm:$0xff]  }
 0x8d1   :  { %v9761_v21 = vpop.eup %9760 }
 0x8d2   :  { %v6279_v57 = vadd.f32 1.0, %v9761_v21  ;;  %v11644_v21 = vld [vmem:[#allocation12 + $0xa4] ss:$16 sps:$4 sm:$0xff]  }
 0x8d3   :  { %v9763_v19 = vpop.eup %9762 }
 0x8d4   :  { %v9765_v59 = vpop.eup %9764  ;;  %9772 = vrcp.f32 %v6279_v57  ;;  %v6280_v49 = vadd.f32 1.0, %v9763_v19  ;;  %v11646_v57 = vld [vmem:[#allocation12 + $0xac] ss:$16 sps:$4 sm:$0xff]   ;;  %v11652_v19 = vld [vmem:[#allocation12 + $0xa0] ss:$16 sps:$4 sm:$0xff]  }
 0x8d5   :  { %v9767_v36 = vpop.eup %9766 }
 0x8d6   :  { %9774 = vrcp.f32 %v6280_v49  ;;  %v11617_v40 = vmul.f32 %v9767_v36, %v9765_v59  ;;  %v9769_v33 = vpop.eup %9768  ;;  %v11654_v59 = vld [vmem:[#allocation12 + $0xa8] ss:$16 sps:$4 sm:$0xff]   ;;  %v11658_v49 = vld [vmem:[#allocation12 + $0x84] ss:$16 sps:$4 sm:$0xff]   ;;  %v11660_v36 = vld [vmem:[#allocation12 + $0x8c] ss:$16 sps:$4 sm:$0xff]  }
 0x8d7   :  { %v9771_v35 = vpop.eup %9770  ;;  %v6281_v9 = vadd.f32 1.0, %v9769_v33  ;;  %v11664_v33 = vld [vmem:[#allocation12 + $0x80] ss:$16 sps:$4 sm:$0xff]  }
 0x8d8   :  { %5987 = vst [vmem:[#allocation3 + $0x22] sm:$0xf] %v11617_v40 }
 0x8d9   :  { %9776 = vrcp.f32 %v6281_v9  ;;  %v11678_v9 = vld [vmem:[#allocation12 + $0x68] ss:$16 sps:$4 sm:$0xff]  }
 0x8da   :  { %12242 = vst [vmem:[#allocation26_spill] sm:$0xff] %v11678_v9 }
 0x8e1   :  { %v9773_v8 = vpop.eup %9772 }
 0x8e2   :  { %v6290_v13 = vmul.f32 %v9773_v8, %v9771_v35  ;;  %v11666_v35 = vld [vmem:[#allocation12 + $0x88] ss:$16 sps:$4 sm:$0xff]   ;;  %v11670_v8 = vld [vmem:[#allocation12 + $0x64] ss:$16 sps:$4 sm:$0xff]  }
 0x8e3   :  { %v9775_v31 = vpop.eup %9774  ;;  %12238 = vst [vmem:[#allocation77_spill] sm:$0xff] %v11666_v35  ;;  %12239 = vst [vmem:[#allocation78_spill] sm:$0xff] %v11670_v8 }
 0x8e4   :  { %v6289_v5 = vmul.f32 %v9775_v31, %v11391_v46  ;;  %v11638_v46 = vld [vmem:[#allocation12 + $0xc0] ss:$16 sps:$4 sm:$0xff]  }
 0x8e5   :  { %v11676_v31 = vld [vmem:[#allocation12 + $0x60] ss:$16 sps:$4 sm:$0xff]  }
 0x8e6   :  { %v11621_v61 = vadd.f32 %v6290_v13, %v6289_v5  ;;  %v9777_v55 = vpop.eup %9776  ;;  %v11672_v13 = vld [vmem:[#allocation12 + $0x6c] ss:$16 sps:$4 sm:$0xff]   ;;  %12241 = vst [vmem:[#allocation25_spill] sm:$0xff] %v11676_v31  ;;  %v11682_v5 = vld [vmem:[#allocation12 + $0x44] ss:$16 sps:$4 sm:$0xff]  }
 0x8e7   :  { %12240 = vst [vmem:[#allocation79_spill] sm:$0xff] %v11672_v13  ;;  %12243 = vst [vmem:[#allocation37_spill] sm:$0xff] %v11682_v5 }
 0x8e8   :  { %9778 = vtanh.f32 %v11621_v61 }
 0x8f5   :  { %v9779_v2 = vpop.eup %9778 }
 0x8f6   :  { %v6293_v20 = vmul.f32 %v9779_v2, %v9777_v55  ;;  %v11684_v55 = vld [vmem:[#allocation12 + $0x4c] ss:$16 sps:$4 sm:$0xff]   ;;  %v11688_v2 = vld [vmem:[#allocation12 + $0x40] ss:$16 sps:$4 sm:$0xff]  }
 0x8f7   :  { %12244 = vst [vmem:[#allocation38_spill] sm:$0xff] %v11684_v55  ;;  %12245 = vst [vmem:[#allocation23_spill] sm:$0xff] %v11688_v2 }
 0x8f8   :  { %v11628_v16 = vpack.c.bf16 %v6293_v20, %v6293_v20  ;;  %v11690_v20 = vld [vmem:[#allocation12 + $0x48] ss:$16 sps:$4 sm:$0xff]  }
 0x8f9   :  { %12246 = vst [vmem:[#allocation49_spill] sm:$0xff] %v11690_v20 }
 0x8fa   :  { %6542 = vmatmul.mubr.bf16.vlgmr.msra.gmra.mxu0 %v11628_v16  ;;  %6583 = vmatmul.mubr.bf16.vlgmr.msra.gmra.mxu1 %v11628_v16 }
 0x8fb   :  { %6784 = vmatpush1.bf16.msra.mxu0 %v11624_v1  ;;  %6825 = vmatpush1.bf16.msra.mxu1 %v11626_v58 }
 0x8fc   :  { %6785 = vmatprep.subr.bf16.mxu0 %v11630_v37  ;;  %6826 = vmatprep.subr.bf16.mxu1 %v11632_v52 }
 0x8fd   :  { %6815 = vmatprep.mubr.bf16.mxu0 %v12017_v60  ;;  %6856 = vmatprep.mubr.bf16.mxu1 %v12017_v60 }
 0x8ff   :  { %6786 = vmatpush1.bf16.msra.mxu0 %v11638_v46  ;;  %6827 = vmatpush1.bf16.msra.mxu1 %v11640_v44 }
 0x900   :  { %6787 = vmatprep.subr.bf16.mxu0 %v11644_v21  ;;  %6828 = vmatprep.subr.bf16.mxu1 %v11646_v57 }
 0x903   :  { %6788 = vmatpush1.bf16.msra.mxu0 %v11652_v19  ;;  %6829 = vmatpush1.bf16.msra.mxu1 %v11654_v59 }
 0x904   :  { %6789 = vmatprep.subr.bf16.mxu0 %v11658_v49  ;;  %6830 = vmatprep.subr.bf16.mxu1 %v11660_v36 }
 0x907   :  { %6790 = vmatpush1.bf16.msra.mxu0 %v11664_v33  ;;  %6831 = vmatpush1.bf16.msra.mxu1 %v11666_v35  ;;  %v11694_v35 = vld [vmem:[#allocation12 + $0x24] ss:$16 sps:$4 sm:$0xff]  }
 0x908   :  { %6791 = vmatprep.subr.bf16.mxu0 %v11670_v8  ;;  %6832 = vmatprep.subr.bf16.mxu1 %v11672_v13  ;;  %12247 = vst [vmem:[#allocation50_spill] sm:$0xff] %v11694_v35  ;;  %v11696_v8 = vld [vmem:[#allocation12 + $0x2c] ss:$16 sps:$4 sm:$0xff]   ;;  %v11700_v13 = vld [vmem:[#allocation12 + $0x20] ss:$16 sps:$4 sm:$0xff]  }
 0x909   :  { %12248 = vst [vmem:[#allocation51_spill] sm:$0xff] %v11696_v8 }
 0x90b   :  { %6792 = vmatpush1.bf16.msra.mxu0 %v11676_v31  ;;  %6833 = vmatpush1.bf16.msra.mxu1 %v11678_v9  ;;  %v11702_v31 = vld [vmem:[#allocation12 + $0x28] ss:$16 sps:$4 sm:$0xff]   ;;  %v11706_v9 = vld [vmem:[#allocation12 + $0x4] ss:$16 sps:$4 sm:$0xff]  }
 0x90c   :  { %6793 = vmatprep.subr.bf16.mxu0 %v11682_v5  ;;  %6834 = vmatprep.subr.bf16.mxu1 %v11684_v55  ;;  %12249 = vst [vmem:[#allocation52_spill] sm:$0xff] %v11702_v31  ;;  %12250 = vst [vmem:[#allocation53_spill] sm:$0xff] %v11706_v9  ;;  %v11708_v5 = vld [vmem:[#allocation12 + $0xc] ss:$16 sps:$4 sm:$0xff]   ;;  %v11712_v55 = vld [vmem:[#allocation12] ss:$16 sps:$4 sm:$0xff]  }
 0x90d   :  { %12251 = vst [vmem:[#allocation54_spill] sm:$0xff] %v11712_v55 }
 0x90f   :  { %6794 = vmatpush1.bf16.msra.mxu0 %v11688_v2  ;;  %6835 = vmatpush1.bf16.msra.mxu1 %v11690_v20  ;;  %v11714_v2 = vld [vmem:[#allocation12 + $0x8] ss:$16 sps:$4 sm:$0xff]   ;;  %v9526_v20 = vld [vmem:[#allocation9 + $0xe4] ss:$16 sps:$4 sm:$0xff]  }
 0x910   :  { %6795 = vmatprep.subr.bf16.mxu0 %v11694_v35  ;;  %6836 = vmatprep.subr.bf16.mxu1 %v11696_v8  ;;  %v9524_v8 = vld [vmem:[#allocation9 + $0xe0] ss:$16 sps:$4 sm:$0xff]   ;;  %v5986_v35 = vpack.c.bf16 %v11617_v40, %v11617_v40 }
 0x911   :  { %v9530_v40 = vld [vmem:[#allocation9 + $0xa0] ss:$16 sps:$4 sm:$0xff]  }
 0x913   :  { %6796 = vmatpush1.bf16.msra.mxu0 %v11700_v13  ;;  %6837 = vmatpush1.bf16.msra.mxu1 %v11702_v31  ;;  %v9529_v31 = vld [vmem:[#allocation9 + $0xc4] ss:$16 sps:$4 sm:$0xff]  }
 0x914   :  { %6797 = vmatprep.subr.bf16.mxu0 %v11706_v9  ;;  %6838 = vmatprep.subr.bf16.mxu1 %v11708_v5  ;;  %v9527_v9 = vld [vmem:[#allocation9 + $0xc0] ss:$16 sps:$4 sm:$0xff]  }
 0x917   :  { %6798 = vmatpush1.bf16.msra.mxu0 %v11712_v55  ;;  %6839 = vmatpush1.bf16.msra.mxu1 %v11714_v2  ;;  %v9532_v55 = vld [vmem:[#allocation9 + $0xa4] ss:$16 sps:$4 sm:$0xff]  }
 0x918   :  { %7091 = vmatprep.subr.bf16.mxu0 %v9526_v20  ;;  %7132 = vmatprep.subr.bf16.mxu1 %v11428_v24  ;;  %v9535_v24 = vld [vmem:[#allocation9 + $0x84] ss:$16 sps:$4 sm:$0xff]  }
 0x91a   :  { %6816 = vmatmul.mubr.bf16.vlgmr.msra.gmra.mxu0 %v5986_v35  ;;  %6857 = vmatmul.mubr.bf16.vlgmr.msra.gmra.mxu1 %v5986_v35  ;;  %v9536_v35 = vld [vmem:[#allocation9 + $0x60] ss:$16 sps:$4 sm:$0xff]  }
 0x91b   :  { %7092 = vmatpush1.bf16.msra.mxu0 %v9524_v8  ;;  %7133 = vmatpush1.bf16.msra.mxu1 %v11432_v23  ;;  %v9533_v23 = vld [vmem:[#allocation9 + $0x80] ss:$16 sps:$4 sm:$0xff]  }
 0x91c   :  { %7093 = vmatprep.subr.bf16.mxu0 %v9529_v31  ;;  %7134 = vmatprep.subr.bf16.mxu1 %v11436_v11  ;;  %v9538_v11 = vld [vmem:[#allocation9 + $0x64] ss:$16 sps:$4 sm:$0xff]  }
 0x91d   :  { %7123 = vmatprep.mubr.bf16.mxu0 %v12017_v60  ;;  %7164 = vmatprep.mubr.bf16.mxu1 %v12017_v60 }
 0x91f   :  { %7094 = vmatpush1.bf16.msra.mxu0 %v9527_v9  ;;  %7135 = vmatpush1.bf16.msra.mxu1 %v11440_v10  ;;  %v9541_v10 = vld [vmem:[#allocation9 + $0x44] ss:$16 sps:$4 sm:$0xff]  }
 0x920   :  { %7095 = vmatprep.subr.bf16.mxu0 %v9532_v55  ;;  %7136 = vmatprep.subr.bf16.mxu1 %v11444_v41  ;;  %v9539_v41 = vld [vmem:[#allocation9 + $0x40] ss:$16 sps:$4 sm:$0xff]  }
 0x923   :  { %7096 = vmatpush1.bf16.msra.mxu0 %v9530_v40  ;;  %7137 = vmatpush1.bf16.msra.mxu1 %v11450_v12  ;;  %v9544_v12 = vld [vmem:[#allocation9 + $0x24] ss:$16 sps:$4 sm:$0xff]  }
 0x924   :  { %7097 = vmatprep.subr.bf16.mxu0 %v9535_v24  ;;  %7138 = vmatprep.subr.bf16.mxu1 %v11454_v30  ;;  %v9542_v30 = vld [vmem:[#allocation9 + $0x20] ss:$16 sps:$4 sm:$0xff]  }
 0x927   :  { %7098 = vmatpush1.bf16.msra.mxu0 %v9533_v23  ;;  %7139 = vmatpush1.bf16.msra.mxu1 %v11458_v47  ;;  %v9547_v47 = vld [vmem:[#allocation9 + $0x4] ss:$16 sps:$4 sm:$0xff]  }
 0x928   :  { %7099 = vmatprep.subr.bf16.mxu0 %v9538_v11  ;;  %7140 = vmatprep.subr.bf16.mxu1 %v11462_v25  ;;  %v9545_v25 = vld [vmem:[#allocation9] ss:$16 sps:$4 sm:$0xff]  }
 0x92b   :  { %7100 = vmatpush1.bf16.msra.mxu0 %v9536_v35  ;;  %7141 = vmatpush1.bf16.msra.mxu1 %v11466_v7  ;;  %v12252_v7 = vld [vmem:[#allocation66_spill] sm:$0xff] }
 0x92c   :  { %7101 = vmatprep.subr.bf16.mxu0 %v9541_v10  ;;  %7142 = vmatprep.subr.bf16.mxu1 %v11470_v14  ;;  %v12253_v14 = vld [vmem:[#allocation67_spill] sm:$0xff] }
 0x92f   :  { %7102 = vmatpush1.bf16.msra.mxu0 %v9539_v41  ;;  %7143 = vmatpush1.bf16.msra.mxu1 %v11474_v45  ;;  %v12254_v45 = vld [vmem:[#allocation68_spill] sm:$0xff] }
 0x930   :  { %7103 = vmatprep.subr.bf16.mxu0 %v9544_v12  ;;  %7144 = vmatprep.subr.bf16.mxu1 %v11478_v50  ;;  %v12255_v50 = vld [vmem:[#allocation69_spill] sm:$0xff] }
 0x933   :  { %7104 = vmatpush1.bf16.msra.mxu0 %v9542_v30  ;;  %7145 = vmatpush1.bf16.msra.mxu1 %v11482_v38  ;;  %v12256_v38 = vld [vmem:[#allocation70_spill] sm:$0xff] }
 0x934   :  { %7105 = vmatprep.subr.bf16.mxu0 %v9547_v47  ;;  %7146 = vmatprep.subr.bf16.mxu1 %v11486_v17  ;;  %v12257_v17 = vld [vmem:[#allocation71_spill] sm:$0xff] }
 0x937   :  { %7106 = vmatpush1.bf16.msra.mxu0 %v9545_v25  ;;  %7147 = vmatpush1.bf16.msra.mxu1 %v11490_v18  ;;  %v12258_v18 = vld [vmem:[#allocation72_spill] sm:$0xff] }
 0x938   :  { %7416 = vmatprep.subr.bf16.mxu0 %v11500_v15  ;;  %7457 = vmatprep.subr.bf16.mxu1 %v11502_v26  ;;  %v12259_v15 = vld [vmem:[#allocation73_spill] sm:$0xff]  ;;  %v12260_v26 = vld [vmem:[#allocation74_spill] sm:$0xff] }
 0x93a   :  { %7124 = vmatmul.mubr.bf16.vlgmr.msra.gmra.mxu0 %v11628_v16  ;;  %7165 = vmatmul.mubr.bf16.vlgmr.msra.gmra.mxu1 %v11628_v16  ;;  %v12268_v16 = vld [vmem:[#allocation22_spill] sm:$0xff] }
 0x93b   :  { %7417 = vmatpush1.bf16.msra.mxu0 %v11504_v56  ;;  %7458 = vmatpush1.bf16.msra.mxu1 %v11506_v28  ;;  %v12261_v56 = vld [vmem:[#allocation75_spill] sm:$0xff]  ;;  %v12262_v28 = vld [vmem:[#allocation76_spill] sm:$0xff] }
 0x93c   :  { %7418 = vmatprep.subr.bf16.mxu0 %v11512_v22  ;;  %7459 = vmatprep.subr.bf16.mxu1 %v11514_v39  ;;  %v12263_v22 = vld [vmem:[#allocation29_spill] sm:$0xff]  ;;  %v12264_v39 = vld [vmem:[#allocation30_spill] sm:$0xff] }
 0x93d   :  { %7448 = vmatprep.mubr.bf16.mxu0 %v12017_v60  ;;  %7489 = vmatprep.mubr.bf16.mxu1 %v12017_v60 }
 0x93f   :  { %7419 = vmatpush1.bf16.msra.mxu0 %v11516_v29  ;;  %7460 = vmatpush1.bf16.msra.mxu1 %v11518_v48  ;;  %v12265_v29 = vld [vmem:[#allocation41_spill] sm:$0xff]  ;;  %v12266_v48 = vld [vmem:[#allocation42_spill] sm:$0xff] }
 0x940   :  { %7420 = vmatprep.subr.bf16.mxu0 %v11524_v53  ;;  %7461 = vmatprep.subr.bf16.mxu1 %v11526_v42 }
 0x943   :  { %7421 = vmatpush1.bf16.msra.mxu0 %v11528_v34  ;;  %7462 = vmatpush1.bf16.msra.mxu1 %v11530_v4 }
 0x944   :  { %7422 = vmatprep.subr.bf16.mxu0 %v11536_v51  ;;  %7463 = vmatprep.subr.bf16.mxu1 %v11538_v27 }
 0x947   :  { %7423 = vmatpush1.bf16.msra.mxu0 %v11540_v63  ;;  %7464 = vmatpush1.bf16.msra.mxu1 %v11542_v54 }
 0x948   :  { %7424 = vmatprep.subr.bf16.mxu0 %v11546_v43  ;;  %7465 = vmatprep.subr.bf16.mxu1 %v11554_v62  ;;  %v6327_v43 = vld [vmem:[%s11855_s6] sm:$0xf] }
 0x949   :  { %v6336_v8 = vrot.slane %v6327_v43, %v12268_v16  ;;  %v6340_v30 = vrot.slane %v6327_v43, %v10247_v0 }
 0x94b   :  { %7425 = vmatpush1.bf16.msra.mxu0 %v11550_v32  ;;  %7466 = vmatpush1.bf16.msra.mxu1 %v12252_v7  ;;  %v12267_v32 = vld [vmem:[#allocation21_spill] sm:$0xff] }
 0x94c   :  { %7426 = vmatprep.subr.bf16.mxu0 %v12253_v14  ;;  %7467 = vmatprep.subr.bf16.mxu1 %v12254_v45  ;;  %v6332_v62 = vrot.slane %v6327_v43, %v12267_v32  ;;  %v6344_v14 = vrot.slane %v6327_v43, %v10249_v3 }
 0x94f   :  { %7427 = vmatpush1.bf16.msra.mxu0 %v12255_v50  ;;  %7468 = vmatpush1.bf16.msra.mxu1 %v12256_v38 }
 0x950   :  { %7428 = vmatprep.subr.bf16.mxu0 %v12257_v17  ;;  %7469 = vmatprep.subr.bf16.mxu1 %v12258_v18 }
 0x953   :  { %7429 = vmatpush1.bf16.msra.mxu0 %v12259_v15  ;;  %7470 = vmatpush1.bf16.msra.mxu1 %v12260_v26 }
 0x954   :  { %7430 = vmatprep.subr.bf16.mxu0 %v12261_v56  ;;  %7471 = vmatprep.subr.bf16.mxu1 %v12262_v28 }
 0x957   :  { %7431 = vmatpush1.bf16.msra.mxu0 %v12263_v22  ;;  %7472 = vmatpush1.bf16.msra.mxu1 %v12264_v39 }
 0x958   :  { %7690 = vmatprep.subr.bf16.mxu0 %v12265_v29  ;;  %7731 = vmatprep.subr.bf16.mxu1 %v12266_v48  ;;  %v12269_v29 = vld [vmem:[#allocation24_spill] sm:$0xff] }
 0x959   :  { %v12270_v48 = vld [vmem:[#allocation36_spill] sm:$0xff] }
 0x9ba   :  { %v6543_v53 = vpop.f32.mrf.mxu0  ;;  %v6584_v42 = vpop.f32.mrf.mxu1 }
 0x9bb   :  { %v6544_v31 = vadd.f32 %v6543_v53, %v6332_v62  ;;  %v6585_v7 = vadd.f32 %v6584_v42, %v6340_v30  ;;  %v433_v53 = vadd.f32 %v12270_v48, %v12269_v29  ;;  %v12271_v42 = vld [vmem:[#allocation35_spill] sm:$0xff] }
 0x9bc   :  { %v6545_v34 = vpop.f32.mrf.mxu0  ;;  %v6586_v4 = vpop.f32.mrf.mxu1 }
 0x9bd   :  { %v6546_v20 = vadd.f32 %v6545_v34, %v6336_v8  ;;  %v6587_v50 = vadd.f32 %v6586_v4, %v6344_v14 }
 0x9be   :  { %v6547_v51 = vpop.f32.mrf.mxu0  ;;  %v6588_v27 = vpop.f32.mrf.mxu1 }
 0x9c0   :  { %v6548_v63 = vpop.f32.mrf.mxu0  ;;  %v6589_v54 = vpop.f32.mrf.mxu1 }
 0x9da   :  { %v6817_v9 = vpop.f32.mrf.mxu0  ;;  %v6858_v55 = vpop.f32.mrf.mxu1 }
 0x9db   :  { %v6865_v40 = vadd.f32 %v6817_v9, %v6544_v31  ;;  %v6867_v45 = vadd.f32 %v6858_v55, %v6585_v7 }
 0x9dc   :  { %v6819_v24 = vpop.f32.mrf.mxu0  ;;  %v6860_v23 = vpop.f32.mrf.mxu1 }
 0x9dd   :  { %v8760_v11 = vmul.f32 -1.442695, %v6865_v40  ;;  %v6866_v35 = vadd.f32 %v6819_v24, %v6546_v20  ;;  %v8762_v38 = vmul.f32 -1.442695, %v6867_v45  ;;  %v6868_v18 = vadd.f32 %v6860_v23, %v6587_v50 }
 0x9de   :  { %v6821_v10 = vpop.f32.mrf.mxu0  ;;  %v6862_v41 = vpop.f32.mrf.mxu1 }
 0x9df   :  { %9780 = vpow2.f32 %v8760_v11  ;;  %v8761_v12 = vmul.f32 -1.442695, %v6866_v35  ;;  %v12272_v35 = vld [vmem:[#allocation47_spill] sm:$0xff] }
 0x9e0   :  { %v6822_v47 = vpop.f32.mrf.mxu0  ;;  %v6863_v25 = vpop.f32.mrf.mxu1 }
 0x9e1   :  { %9782 = vpow2.f32 %v8761_v12  ;;  %v12273_v12 = vld [vmem:[#allocation48_spill] sm:$0xff] }
 0x9e2   :  { %9784 = vpow2.f32 %v8762_v38 }
 0x9ec   :  { %v9781_v17 = vpop.eup %9780 }
 0x9ed   :  { %v6878_v15 = vadd.f32 1.0, %v9781_v17 }
 0x9ee   :  { %v9783_v26 = vpop.eup %9782 }
 0x9ef   :  { %9786 = vrcp.f32 %v6878_v15  ;;  %v6879_v56 = vadd.f32 1.0, %v9783_v26  ;;  %v9785_v39 = vpop.eup %9784 }
 0x9f0   :  { %9788 = vtanh.f32 %v6868_v18  ;;  %v6880_v8 = vadd.f32 1.0, %v9785_v39 }
 0x9f1   :  { %9790 = vrcp.f32 %v6879_v56 }
 0x9fa   :  { %v7125_v28 = vpop.f32.mrf.mxu0  ;;  %v7166_v22 = vpop.f32.mrf.mxu1 }
 0x9fb   :  { %v7173_v34 = vadd.f32 %v7125_v28, %v12271_v42  ;;  %v7175_v10 = vadd.f32 %v7166_v22, %v12272_v35  ;;  %v12287_v42 = vld [vmem:[#allocation54_spill] sm:$0xff] }
 0x9fc   :  { %v9787_v51 = vpop.eup %9786  ;;  %v7127_v4 = vpop.f32.mrf.mxu0  ;;  %v7804_v35 = vld [vmem:[#allocation3 + $0x18] sm:$0xff] }
 0x9fd   :  { %v7168_v27 = vpop.f32.mrf.mxu1  ;;  %v9789_v63 = vpop.eup %9788  ;;  %v8795_v54 = vmul.f32 -1.442695, %v7173_v34  ;;  %v7174_v43 = vadd.f32 %v7127_v4, %v433_v53  ;;  %v8797_v41 = vmul.f32 -1.442695, %v7175_v10  ;;  %v9548_v34 = vld [vmem:[#allocation13 + $0x70] ss:$8 sps:$4 sm:$0xff]  }
 0x9fe   :  { %v9791_v62 = vpop.eup %9790  ;;  %v7129_v31 = vpop.f32.mrf.mxu0  ;;  %v6889_v20 = vmul.f32 %v9789_v63, %v9787_v51  ;;  %v7176_v30 = vadd.f32 %v7168_v27, %v12273_v12  ;;  %v9553_v4 = vld [vmem:[#allocation13 + $0x64] ss:$8 sps:$4 sm:$0xff]   ;;  %v9551_v27 = vld [vmem:[#allocation13 + $0x60] ss:$8 sps:$4 sm:$0xff]   ;;  %v9554_v63 = vld [vmem:[#allocation13 + $0x50] ss:$8 sps:$4 sm:$0xff]  }
 0x9ff   :  { %v7170_v9 = vpop.f32.mrf.mxu1  ;;  %v6888_v55 = vmul.f32 %v9791_v62, %v11612_v6  ;;  %9792 = vpow2.f32 %v8795_v54  ;;  %v8796_v40 = vmul.f32 -1.442695, %v7174_v43  ;;  %v9557_v54 = vld [vmem:[#allocation13 + $0x40] ss:$8 sps:$4 sm:$0xff]   ;;  %v9560_v43 = vld [vmem:[#allocation13 + $0x30] ss:$8 sps:$4 sm:$0xff]  }
 0xa00   :  { %v7130_v24 = vpop.f32.mrf.mxu0  ;;  %v9565_v62 = vld [vmem:[#allocation13 + $0x24] ss:$8 sps:$4 sm:$0xff]   ;;  %v9568_v31 = vld [vmem:[#allocation13 + $0x14] ss:$8 sps:$4 sm:$0xff]   ;;  %v9566_v9 = vld [vmem:[#allocation13 + $0x10] ss:$8 sps:$4 sm:$0xff]  }
 0xa01   :  { %v7171_v23 = vpop.f32.mrf.mxu1  ;;  %v11789_v11 = vadd.f32 %v6889_v20, %v6888_v55  ;;  %9794 = vpow2.f32 %v8796_v40  ;;  %v9571_v55 = vld [vmem:[#allocation13 + $0x4] ss:$8 sps:$4 sm:$0xff]   ;;  %v9569_v20 = vld [vmem:[#allocation13] ss:$8 sps:$4 sm:$0xff]   ;;  %v7802_v40 = vld [vmem:[#allocation3 + $0x8] sm:$0xff] }
 0xa02   :  { %9796 = vrcp.f32 %v6880_v8  ;;  %v9563_v8 = vld [vmem:[#allocation13 + $0x20] ss:$8 sps:$4 sm:$0xff]   ;;  %v7801_v24 = vld [vmem:[#allocation3] sm:$0xff] }
 0xa03   :  { %9798 = vtanh.f32 %v11789_v11  ;;  %v7807_v23 = vpack.c.bf16 %v7802_v40, %v7801_v24  ;;  %v7803_v10 = vld [vmem:[#allocation3 + $0x10] sm:$0xff] }
 0xa04   :  { %9800 = vpow2.f32 %v8797_v41  ;;  %v7808_v41 = vpack.c.bf16 %v7804_v35, %v7803_v10 }
 0xa05   :  { %9802 = vtanh.f32 %v7176_v30 }
 0xa0c   :  { %v9793_v47 = vpop.eup %9792 }
 0xa0d   :  { %v7186_v25 = vadd.f32 1.0, %v9793_v47 }
 0xa0e   :  { %v9795_v6 = vpop.eup %9794 }
 0xa0f   :  { %v9797_v7 = vpop.eup %9796  ;;  %9804 = vrcp.f32 %v7186_v25  ;;  %v7187_v14 = vadd.f32 1.0, %v9795_v6 }
 0xa10   :  { %v9799_v45 = vpop.eup %9798 }
 0xa11   :  { %9806 = vrcp.f32 %v7187_v14  ;;  %v6892_v50 = vmul.f32 %v9799_v45, %v9797_v7  ;;  %v9801_v38 = vpop.eup %9800 }
 0xa12   :  { %v9803_v17 = vpop.eup %9802  ;;  %v7188_v56 = vadd.f32 1.0, %v9801_v38 }
 0xa13   :  { %6894 = vst [vmem:[#allocation3 + $0x26] sm:$0x7] %v6892_v50  ;;  %v6893_v51 = vpack.c.bf16 %v6892_v50, %v6892_v50  ;;  %v7234_v50 = vld [vmem:[%s11855_s6] sm:$0xf] }
 0xa14   :  { %9808 = vrcp.f32 %v7188_v56  ;;  %v7239_v38 = vrot.slane %v7234_v50, %v12267_v32 }
 0xa1c   :  { %v9805_v18 = vpop.eup %9804 }
 0xa1d   :  { %v7197_v15 = vmul.f32 %v9805_v18, %v9803_v17  ;;  %v7243_v17 = vrot.slane %v7234_v50, %v12268_v16 }
 0xa1e   :  { %v9807_v26 = vpop.eup %9806 }
 0xa1f   :  { %v7196_v28 = vmul.f32 %v9807_v26, %v11621_v61  ;;  %v12274_v61 = vld [vmem:[#allocation77_spill] sm:$0xff] }
 0xa21   :  { %v7198_v22 = vadd.f32 %v7197_v15, %v7196_v28  ;;  %v9809_v39 = vpop.eup %9808 }
 0xa23   :  { %9810 = vtanh.f32 %v7198_v22 }
 0xa30   :  { %v9811_v29 = vpop.eup %9810 }
 0xa31   :  { %v7200_v48 = vmul.f32 %v9811_v29, %v9809_v39 }
 0xa33   :  { %v7201_v53 = vpack.c.bf16 %v7200_v48, %v7200_v48 }
 0xa35   :  { %7449 = vmatmul.mubr.bf16.vlgmr.msra.gmra.mxu0 %v7201_v53  ;;  %7490 = vmatmul.mubr.bf16.vlgmr.msra.gmra.mxu1 %v7201_v53 }
 0xa36   :  { %7691 = vmatpush1.bf16.msra.mxu0 %v11624_v1  ;;  %7732 = vmatpush1.bf16.msra.mxu1 %v11626_v58  ;;  %v12275_v1 = vld [vmem:[#allocation78_spill] sm:$0xff]  ;;  %v12276_v58 = vld [vmem:[#allocation79_spill] sm:$0xff] }
 0xa37   :  { %7692 = vmatprep.subr.bf16.mxu0 %v11630_v37  ;;  %7733 = vmatprep.subr.bf16.mxu1 %v11632_v52  ;;  %v12277_v37 = vld [vmem:[#allocation25_spill] sm:$0xff]  ;;  %v12278_v52 = vld [vmem:[#allocation26_spill] sm:$0xff] }
 0xa38   :  { %7722 = vmatprep.mubr.bf16.mxu0 %v12017_v60  ;;  %7763 = vmatprep.mubr.bf16.mxu1 %v12017_v60 }
 0xa3a   :  { %7693 = vmatpush1.bf16.msra.mxu0 %v11638_v46  ;;  %7734 = vmatpush1.bf16.msra.mxu1 %v11640_v44  ;;  %v12279_v46 = vld [vmem:[#allocation37_spill] sm:$0xff]  ;;  %v12280_v44 = vld [vmem:[#allocation38_spill] sm:$0xff] }
 0xa3b   :  { %7694 = vmatprep.subr.bf16.mxu0 %v11644_v21  ;;  %7735 = vmatprep.subr.bf16.mxu1 %v11646_v57  ;;  %v12281_v21 = vld [vmem:[#allocation23_spill] sm:$0xff]  ;;  %v12282_v57 = vld [vmem:[#allocation49_spill] sm:$0xff] }
 0xa3e   :  { %7695 = vmatpush1.bf16.msra.mxu0 %v11652_v19  ;;  %7736 = vmatpush1.bf16.msra.mxu1 %v11654_v59  ;;  %v12283_v19 = vld [vmem:[#allocation50_spill] sm:$0xff]  ;;  %v12284_v59 = vld [vmem:[#allocation51_spill] sm:$0xff] }
 0xa3f   :  { %7696 = vmatprep.subr.bf16.mxu0 %v11658_v49  ;;  %7737 = vmatprep.subr.bf16.mxu1 %v11660_v36  ;;  %v12285_v49 = vld [vmem:[#allocation52_spill] sm:$0xff]  ;;  %v12286_v36 = vld [vmem:[#allocation53_spill] sm:$0xff] }
 0xa42   :  { %7697 = vmatpush1.bf16.msra.mxu0 %v11664_v33  ;;  %7738 = vmatpush1.bf16.msra.mxu1 %v12274_v61  ;;  %v9550_v33 = vld [vmem:[#allocation13 + $0x74] ss:$8 sps:$4 sm:$0xff]  }
 0xa43   :  { %7698 = vmatprep.subr.bf16.mxu0 %v12275_v1  ;;  %7739 = vmatprep.subr.bf16.mxu1 %v12276_v58  ;;  %v7247_v1 = vrot.slane %v7234_v50, %v10247_v0  ;;  %v7826_v0 = vld [vmem:[%s11857_s8] sm:$0x3]  ;;  %s10008_s8 = smov [#allocation15]  }
 0xa44   :  { %s7998_s16 = sshll.u32 %s10008_s8, 4  ;;  %s7999_s16 = int_to_ptr.vmem [resolvable:$true] %s7998_s16 }
 0xa45   :  { %s9964_s17 = scalar_lea.vmem %s7999_s16, 1536  ;;  %p9969_p3 = scmp.lt.s32.totalorder %s7999_s16, %s7999_s16 }
 0xa46   :  { %7699 = vmatpush1.bf16.msra.mxu0 %v12277_v37  ;;  %7740 = vmatpush1.bf16.msra.mxu1 %v12278_v52  ;;  %p9965_p2 = scmp.ne.s32.totalorder %s7999_s16, %s9964_s17  ;;  %p9970_p4 = scmp.lt.s32.totalorder %s9964_s17, %s9964_s17 }
 0xa47   :  { %7700 = vmatprep.subr.bf16.mxu0 %v12279_v46  ;;  %7741 = vmatprep.subr.bf16.mxu1 %v12280_v44  ;;  %v7251_v46 = vrot.slane %v7234_v50, %v10249_v3  ;;  %v7835_v3 = vrot.slane %v7826_v0, %v12268_v16 }
 0xa48   :  { %p9971_p5 = por %p9970_p4, %p9969_p3 }
 0xa4a   :  { %7701 = vmatpush1.bf16.msra.mxu0 %v12281_v21  ;;  %7742 = vmatpush1.bf16.msra.mxu1 %v12282_v57  ;;  %p9972_p6 = pnand %p9971_p5, %p9965_p2 }
 0xa4b   :  { %7702 = vmatprep.subr.bf16.mxu0 %v12283_v19  ;;  %7743 = vmatprep.subr.bf16.mxu1 %v12284_v59 }
 0xa4e   :  { %7703 = vmatpush1.bf16.msra.mxu0 %v11700_v13  ;;  %7744 = vmatpush1.bf16.msra.mxu1 %v12285_v49  ;;  %v9556_v13 = vld [vmem:[#allocation13 + $0x54] ss:$8 sps:$4 sm:$0xff]  }
 0xa4f   :  { %7704 = vmatprep.subr.bf16.mxu0 %v12286_v36  ;;  %7745 = vmatprep.subr.bf16.mxu1 %v11708_v5  ;;  %v9559_v5 = vld [vmem:[#allocation13 + $0x44] ss:$8 sps:$4 sm:$0xff]  }
 0xa52   :  { %7705 = vmatpush1.bf16.msra.mxu0 %v12287_v42  ;;  %7746 = vmatpush1.bf16.msra.mxu1 %v11714_v2  ;;  %v9562_v2 = vld [vmem:[#allocation13 + $0x34] ss:$8 sps:$4 sm:$0xff]   ;;  %v7831_v42 = vrot.slane %v7826_v0, %v12267_v32 }
 0xa53   :  { %7918 = vmatprep.subr.bf16.mxu0 %v9550_v33 }
 0xa55   :  { %7723 = vmatmul.mubr.bf16.vlgmr.msra.gmra.mxu0 %v6893_v51  ;;  %7764 = vmatmul.mubr.bf16.vlgmr.msra.gmra.mxu1 %v6893_v51 }
 0xa56   :  { %7919 = vmatpush1.bf16.msra.mxu0 %v9548_v34  ;;  %7950 = vmatprep.mubr.bf16.mxu0 %v12017_v60 }
 0xa57   :  { %7920 = vmatprep.subr.bf16.mxu0 %v9553_v4 }
 0xa5a   :  { %7921 = vmatpush1.bf16.msra.mxu0 %v9551_v27 }
 0xa5b   :  { %7922 = vmatprep.subr.bf16.mxu0 %v9556_v13 }
 0xa5e   :  { %7923 = vmatpush1.bf16.msra.mxu0 %v9554_v63 }
 0xa5f   :  { %7924 = vmatprep.subr.bf16.mxu0 %v9559_v5 }
 0xa62   :  { %7925 = vmatpush1.bf16.msra.mxu0 %v9557_v54 }
 0xa63   :  { %7926 = vmatprep.subr.bf16.mxu0 %v9562_v2 }
 0xa66   :  { %7927 = vmatpush1.bf16.msra.mxu0 %v9560_v43 }
 0xa67   :  { %7928 = vmatprep.subr.bf16.mxu0 %v9565_v62 }
 0xa6a   :  { %7929 = vmatpush1.bf16.msra.mxu0 %v9563_v8 }
 0xa6b   :  { %7930 = vmatprep.subr.bf16.mxu0 %v9568_v31 }
 0xa6e   :  { %7931 = vmatpush1.bf16.msra.mxu0 %v9566_v9 }
 0xa6f   :  { %7932 = vmatprep.subr.bf16.mxu0 %v9571_v55 }
 0xa72   :  { %7933 = vmatpush1.bf16.msra.mxu0 %v9569_v20 }
 0xa75   :  { %7951 = vmatmul.mubr.bf16.vlgmr.msra.gmra.mxu0 %v7807_v23 }
 0xa76   :  { %7960 = vmatprep.mubr.bf16.mxu0 %v12017_v60 }
 0xa7d   :  { %7961 = vmatmul.mubr.bf16.gmra.mxu0 %v7808_v41 }
 0xa7e   :  { %7970 = vmatprep.mubr.bf16.mxu0 %v12017_v60 }
 0xaf5   :  { %v7450_v12 = vpop.f32.mrf.mxu0  ;;  %v7491_v30 = vpop.f32.mrf.mxu1 }
 0xaf6   :  { %v7451_v18 = vadd.f32 %v7450_v12, %v7239_v38  ;;  %v7492_v52 = vadd.f32 %v7491_v30, %v7247_v1 }
 0xaf7   :  { %v7452_v47 = vpop.f32.mrf.mxu0  ;;  %v7493_v25 = vpop.f32.mrf.mxu1 }
 0xaf8   :  { %v7453_v60 = vadd.f32 %v7452_v47, %v7243_v17  ;;  %v7494_v21 = vadd.f32 %v7493_v25, %v7251_v46  ;;  %v7805_v47 = vld [vmem:[#allocation3 + $0x20] sm:$0xff] }
 0xaf9   :  { %v7454_v6 = vpop.f32.mrf.mxu0  ;;  %v7495_v7 = vpop.f32.mrf.mxu1 }
 0xafb   :  { %v7455_v14 = vpop.f32.mrf.mxu0  ;;  %v7496_v45 = vpop.f32.mrf.mxu1 }
 0xb15   :  { %v7724_v15 = vpop.f32.mrf.mxu0  ;;  %v7765_v26 = vpop.f32.mrf.mxu1 }
 0xb16   :  { %v7772_v56 = vadd.f32 %v7724_v15, %v7451_v18  ;;  %v7774_v44 = vadd.f32 %v7765_v26, %v7492_v52 }
 0xb17   :  { %v7726_v28 = vpop.f32.mrf.mxu0  ;;  %v7767_v22 = vpop.f32.mrf.mxu1 }
 0xb18   :  { %v8862_v39 = vmul.f32 -1.442695, %v7772_v56  ;;  %v7773_v29 = vadd.f32 %v7726_v28, %v7453_v60  ;;  %v8864_v57 = vmul.f32 -1.442695, %v7774_v44  ;;  %v7775_v59 = vadd.f32 %v7767_v22, %v7494_v21 }
 0xb19   :  { %v7728_v48 = vpop.f32.mrf.mxu0  ;;  %v7769_v53 = vpop.f32.mrf.mxu1 }
 0xb1a   :  { %9812 = vpow2.f32 %v8862_v39  ;;  %v8863_v61 = vmul.f32 -1.442695, %v7773_v29 }
 0xb1b   :  { %v7729_v58 = vpop.f32.mrf.mxu0  ;;  %v7770_v37 = vpop.f32.mrf.mxu1 }
 0xb1c   :  { %9814 = vpow2.f32 %v8863_v61 }
 0xb1d   :  { %9816 = vpow2.f32 %v8864_v57 }
 0xb27   :  { %v9813_v19 = vpop.eup %9812 }
 0xb28   :  { %v7785_v49 = vadd.f32 1.0, %v9813_v19 }
 0xb29   :  { %v9815_v36 = vpop.eup %9814 }
 0xb2a   :  { %9818 = vrcp.f32 %v7785_v49  ;;  %v7786_v33 = vadd.f32 1.0, %v9815_v36  ;;  %v9817_v51 = vpop.eup %9816 }
 0xb2b   :  { %9820 = vtanh.f32 %v7775_v59  ;;  %v7787_v2 = vadd.f32 1.0, %v9817_v51 }
 0xb2c   :  { %9822 = vrcp.f32 %v7786_v33 }
 0xb2d   :  { %9824 = vrcp.f32 %v7787_v2 }
 0xb35   :  { %v7952_v34 = vpop.f32.mrf.mxu0 }
 0xb36   :  { %v7953_v4 = vadd.f32 %v7952_v34, %v7831_v42 }
 0xb37   :  { %v9819_v27 = vpop.eup %9818  ;;  %v7954_v13 = vpop.f32.mrf.mxu0 }
 0xb38   :  { %v9821_v63 = vpop.eup %9820  ;;  %7981 = vst [vmem:[#allocation15] sm:$0xff] %v7953_v4  ;;  %v7955_v5 = vadd.f32 %v7954_v13, %v7835_v3 }
 0xb39   :  { %v9823_v54 = vpop.eup %9822  ;;  %v7956_v43 = vpop.f32.mrf.mxu0  ;;  %v7796_v8 = vmul.f32 %v9821_v63, %v9819_v27 }
 0xb3a   :  { %v7795_v62 = vmul.f32 %v9823_v54, %v11789_v11  ;;  %7982 = vst [vmem:[#allocation15 + $0x8] sm:$0xff] %v7955_v5  ;;  %v7957_v31 = vadd.f32 %v7956_v43, %v7831_v42  ;;  %v9825_v41 = vpop.eup %9824 }
 0xb3b   :  { %v7958_v9 = vpop.f32.mrf.mxu0 }
 0xb3c   :  { %v7797_v32 = vadd.f32 %v7796_v8, %v7795_v62  ;;  %7983 = vst [vmem:[#allocation15 + $0x10] sm:$0xff] %v7957_v31  ;;  %v7959_v16 = vadd.f32 %v7958_v9, %v7835_v3 }
 0xb3d   :  { %v7962_v55 = vpop.f32.mrf.mxu0 }
 0xb3e   :  { %9826 = vtanh.f32 %v7797_v32  ;;  %7984 = vst [vmem:[#allocation15 + $0x18] sm:$0xff] %v7959_v16  ;;  %v7963_v20 = vadd.f32 %v7962_v55, %v7831_v42 }
 0xb3f   :  { %v7964_v40 = vpop.f32.mrf.mxu0 }
 0xb40   :  { %7985 = vst [vmem:[#allocation15 + $0x20] sm:$0xff] %v7963_v20  ;;  %v7965_v24 = vadd.f32 %v7964_v40, %v7835_v3 }
 0xb41   :  { %v7966_v23 = vpop.f32.mrf.mxu0 }
 0xb42   :  { %7986 = vst [vmem:[#allocation15 + $0x28] sm:$0xff] %v7965_v24  ;;  %v7967_v35 = vadd.f32 %v7966_v23, %v7831_v42 }
 0xb43   :  { %v7968_v10 = vpop.f32.mrf.mxu0 }
 0xb44   :  { %7987 = vst [vmem:[#allocation15 + $0x30] sm:$0xff] %v7967_v35  ;;  %v7969_v11 = vadd.f32 %v7968_v10, %v7835_v3 }
 0xb46   :  { %7988 = vst [vmem:[#allocation15 + $0x38] sm:$0xff] %v7969_v11 }
 0xb4b   :  { %v9827_v12 = vpop.eup %9826 }
 0xb4c   :  { %v7799_v30 = vmul.f32 %v9827_v12, %v9825_v41 }
 0xb4e   :  { %7800 = vst [vmem:[#allocation3 + $0x29] sm:$0x3] %v7799_v30 }
 0xb55   :  { %v7806_v25 = vld [vmem:[#allocation3 + $0x28] sm:$0xff] }
 0xb56   :  { %v7809_v6 = vpack.c.bf16 %v7806_v25, %v7805_v47 }
 0xb58   :  { %7971 = vmatmul.mubr.bf16.gmra.mxu0 %v7809_v6 }
 0xc18   :  { %v7972_v7 = vpop.f32.mrf.mxu0 }
 0xc19   :  { %v7973_v14 = vadd.f32 %v7972_v7, %v7831_v42 }
 0xc1a   :  { %v7974_v45 = vpop.f32.mrf.mxu0 }
 0xc1b   :  { %7989 = vst [vmem:[#allocation15 + $0x40] sm:$0xff] %v7973_v14  ;;  %v7975_v50 = vadd.f32 %v7974_v45, %v7835_v3 }
 0xc1c   :  { %v7976_v38 = vpop.f32.mrf.mxu0 }
 0xc1d   :  { %7990 = vst [vmem:[#allocation15 + $0x48] sm:$0xff] %v7975_v50  ;;  %v7977_v17 = vadd.f32 %v7976_v38, %v7831_v42 }
 0xc1e   :  { %v7978_v18 = vpop.f32.mrf.mxu0 }
 0xc1f   :  { %7991 = vst [vmem:[#allocation15 + $0x50] sm:$0xff] %v7977_v17  ;;  %v7979_v15 = vadd.f32 %v7978_v18, %v7835_v3 }
 0xc21   :  { %7992 = vst [vmem:[#allocation15 + $0x58] sm:$0xff] %v7979_v15 }
 0xc22   :  { %9975 = shalt.err (!%p9972_p6)
}
 0xc23   :  { %8004 = dma.vmem_to_hbm [thread:$0]  %s7999_s16, 1536, %s11858_s9, [#allocation6], %s9995_s12, %s9995_s12, %s9996_s13  }
 0xc24   :  { %9992 = dma.done.wait [#allocation6], 1536  }
 0xc25   :  { %9993 = vsyncadd [#allocation6], 4294965760 }
 0xc26   :  { %8008 = vsyncpa [#allocation5], 1 }
 0xc27   :  { %8009 = vsyncpa [#allocation8], 1 }
 0xc28   :  { %8010 = vsyncpa [#allocation11], 1 }
 0xc29   :  { %8011 = vsyncpa [#allocation14], 1 }
 0xc2a   :  { %8012 = vsyncpa [#allocation6], 1 }

</bundles_post_ra>
